<compile_context>
chip_gen: v7x
topology: tpu7x:2x2x1
jax: 0.10.0
libtpu: 0.0.40
codegen_flags: <defaults>
</compile_context>

<pallas_src>
import jax
import jax.numpy as jnp
from jax.experimental import pallas as pl
from jax.experimental.pallas import tpu as pltpu


def _precip_head_kernel(x_ref, top_ref, bot_ref, w_ref, b_ref, out_ref, acc_ref):
    # x_ref:   (1, Cin, TH, W)   VMEM  -- current latitude band (no padding)
    # top_ref: (1, Cin, 8, W)    VMEM  -- 8-row band containing the row above
    #                                     the tile (clamped/garbage on tile 0)
    # bot_ref: (1, Cin, 8, W)    VMEM  -- 8-row band containing the row below
    #                                     the tile (clamped/garbage on last tile)
    # w_ref:   (9*Cin*Cout,)     SMEM  -- flat conv weights, order [kh][kw][ci][co]
    # b_ref:   (Cout,)           SMEM  -- conv bias
    # out_ref: (1, Cout, TH, W)  VMEM
    # acc_ref: (Cout, TH, W)     VMEM scratch, f32
    Cin = x_ref.shape[1]
    Cout = out_ref.shape[1]
    TH = out_ref.shape[2]
    W = out_ref.shape[3]

    i = pl.program_id(1)
    nh = pl.num_programs(1)
    # Zero latitude (top/bottom of the globe) rows: mask halo rows that fall
    # outside [0, H).  Scalar 0/1 multipliers broadcast on the VPU.
    top_valid = (i > 0).astype(jnp.float32)
    bot_valid = (i < nh - 1).astype(jnp.float32)

    # Initialize accumulators with the conv bias.
    for co in range(Cout):
        acc_ref[co] = jnp.full((TH, W), b_ref[co], dtype=jnp.float32)

    for dy in range(3):  # vertical tap: input row = output row + dy - 1
        # Per-input-channel vertical bands for this tap.
        taps_v = []
        for ci in range(Cin):
            mid = x_ref[0, ci].astype(jnp.float32)                      # (TH, W)
            if dy == 0:
                top_row = top_ref[0, ci, 7:8, :].astype(jnp.float32) * top_valid
                taps_v.append(jnp.concatenate([top_row, mid[: TH - 1]], axis=0))
            elif dy == 1:
                taps_v.append(mid)
            else:
                bot_row = bot_ref[0, ci, 0:1, :].astype(jnp.float32) * bot_valid
                taps_v.append(jnp.concatenate([mid[1:], bot_row], axis=0))

        for dx in range(3):  # horizontal tap: circular longitude shift
            # tap[..., w] = x[..., (w + dx - 1) mod W]  ->  lane roll by (1 - dx)
            if dx == 1:
                taps = taps_v
            else:
                taps = [pltpu.roll(t, shift=(1 - dx) % W, axis=1) for t in taps_v]

            base = (dy * 3 + dx) * Cin * Cout
            for co in range(Cout):
                # Reduce over Cin in registers, one VMEM RMW per (tap, co).
                delta = taps[0] * w_ref[base + co]
                for ci in range(1, Cin):
                    delta = delta + taps[ci] * w_ref[base + ci * Cout + co]
                acc_ref[co] = acc_ref[co] + delta

    for co in range(Cout):
        out_ref[0, co] = jnp.maximum(acc_ref[co], 0.0).astype(out_ref.dtype)


def _pick_tile_h(H, cap=128):
    """Largest multiple-of-8 divisor of H, capped so blocks fit v7x VMEM."""
    assert H % 8 == 0, "H must be a multiple of 8"
    best = 8
    th = 8
    while th <= min(H, cap):
        if H % th == 0:
            best = th
        th += 8
    return best


def precip_net_forward(x_nchw, conv_w, conv_b, tile_h=None):
    """
    x_nchw : (B, C, H, W)       -- PyTorch NCHW layout (kept; W is lane-dense)
    conv_w : (Cout, Cin, 3, 3)  -- PyTorch Conv2d OIHW weight layout
    conv_b : (Cout,)
    returns (B, Cout, H, W)
    """
    B, C, H, W = x_nchw.shape
    Cout = conv_w.shape[0]

    # backbone == identity (see TODO above)

    if tile_h is None:
        tile_h = _pick_tile_h(H)
    assert tile_h % 8 == 0 and H % tile_h == 0, "tile_h must be a mult-of-8 divisor of H"
    nh = H // tile_h
    tb = tile_h // 8      # H-tile size in 8-row blocks
    hb = H // 8           # total number of 8-row blocks in H

    # PyTorch OIHW -> flat [kh][kw][ci][co] scalars for SMEM.
    w_flat = jnp.transpose(conv_w, (2, 3, 1, 0)).reshape(-1).astype(jnp.float32)
    b_flat = conv_b.astype(jnp.float32)

    # Main band: the TH rows of this tile.
    main_spec = pl.BlockSpec((1, C, tile_h, W), lambda b, i: (b, 0, i, 0))
    # Halo bands: 8-row neighbour blocks of the SAME array, clamped at the
    # boundaries (boundary rows are zero-masked in-kernel).
    top_spec = pl.BlockSpec(
        (1, C, 8, W), lambda b, i: (b, 0, jnp.maximum(i * tb - 1, 0), 0))
    bot_spec = pl.BlockSpec(
        (1, C, 8, W), lambda b, i: (b, 0, jnp.minimum((i + 1) * tb, hb - 1), 0))

    return pl.pallas_call(
        _precip_head_kernel,
        out_shape=jax.ShapeDtypeStruct((B, Cout, H, W), x_nchw.dtype),
        grid=(B, nh),
        in_specs=[
            main_spec,
            top_spec,
            bot_spec,
            pl.BlockSpec(memory_space=pltpu.MemorySpace.SMEM),
            pl.BlockSpec(memory_space=pltpu.MemorySpace.SMEM),
        ],
        out_specs=pl.BlockSpec((1, Cout, tile_h, W), lambda b, i: (b, 0, i, 0)),
        scratch_shapes=[pltpu.VMEM((Cout, tile_h, W), jnp.float32)],
        compiler_params=pltpu.CompilerParams(
            dimension_semantics=("parallel", "parallel"),
            vmem_limit_bytes=48 * 1024 * 1024,
        ),
    )(x_nchw, x_nchw, x_nchw, w_flat, b_flat)


def _reference_forward(x_nchw, conv_w, conv_b):
    """Pure-JAX reference (PeriodicPad2d + conv + ReLU), NCHW throughout."""
    # circular pad in W
    xp = jnp.concatenate([x_nchw[..., -1:], x_nchw, x_nchw[..., :1]], axis=-1)
    # zero pad in H
    xp = jnp.pad(xp, ((0, 0), (0, 0), (1, 1), (0, 0)))
    out = jax.lax.conv_general_dilated(
        xp, conv_w, window_strides=(1, 1), padding="VALID",
        dimension_numbers=("NCHW", "OIHW", "NCHW"),
    ) + conv_b[None, :, None, None]
    return jnp.maximum(out, 0.0)


if __name__ == "__main__":
    # Small shapes consistent with the module: N_out_channels = 4, 16x16 grid.
    B, C, H, W = 2, 4, 16, 16

    key = jax.random.PRNGKey(0)
    kx, kw, kb = jax.random.split(key, 3)

    x = jax.random.normal(kx, (B, C, H, W), dtype=jnp.float32)
    conv_w = 0.1 * jax.random.normal(kw, (C, C, 3, 3), dtype=jnp.float32)
    conv_b = 0.1 * jax.random.normal(kb, (C,), dtype=jnp.float32)

    ref = jax.block_until_ready(_reference_forward(x, conv_w, conv_b))

    # Multi-tile path: exercises cross-tile halos AND both zero latitude rows.
    out_tiled = jax.block_until_ready(precip_net_forward(x, conv_w, conv_b, tile_h=8))
    assert out_tiled.shape == (B, C, H, W)
    assert jnp.allclose(out_tiled, ref, atol=1e-5, rtol=1e-5), "tiled mismatch vs JAX reference"

    # Single-tile path (auto tile size) must match too.
    out_single = jax.block_until_ready(precip_net_forward(x, conv_w, conv_b))
    assert jnp.allclose(out_single, ref, atol=1e-5, rtol=1e-5), "single-tile mismatch vs JAX reference"

    print("KERNEL_OK")
</pallas_src>

<mosaic_0001>
module attributes {stable_mosaic.version = 11 : i64} {
  func.func @_precip_head_kernel(%arg0: i32, %arg1: i32, %arg2: memref<1x4x8x16xf32, #tpu.memory_space<vmem>>, %arg3: memref<1x4x8x16xf32, #tpu.memory_space<vmem>>, %arg4: memref<1x4x8x16xf32, #tpu.memory_space<vmem>>, %arg5: memref<144xf32, #tpu.memory_space<smem>>, %arg6: memref<4xf32, #tpu.memory_space<smem>>, %arg7: memref<1x4x8x16xf32, #tpu.memory_space<vmem>>, %arg8: memref<4x8x16xf32, #tpu.memory_space<vmem>>) attributes {dimension_semantics = [#tpu.dimension_semantics<parallel>, #tpu.dimension_semantics<parallel>], iteration_bounds = array<i64: 2, 2>, scalar_prefetch = 0 : i64, scratch_operands = 1 : i64, tpu.core_type = #tpu.core_type<tc>, window_params = [{transform_indices = @transform_0, window_bounds = array<i64: 1, 4, 8, 16>}, {transform_indices = @transform_1, window_bounds = array<i64: 1, 4, 8, 16>}, {transform_indices = @transform_2, window_bounds = array<i64: 1, 4, 8, 16>}, {transform_indices = @transform_3, window_bounds = array<i64: 144>}, {transform_indices = @transform_4, window_bounds = array<i64: 4>}, {transform_indices = @transform_5, window_bounds = array<i64: 1, 4, 8, 16>}]} {
    %c0_i32 = arith.constant 0 : i32
    %0 = arith.cmpi sgt, %arg1, %c0_i32 : i32
    %1 = arith.extui %0 : i1 to i32
    %2 = arith.sitofp %1 : i32 to f32
    %c1_i32 = arith.constant 1 : i32
    %3 = arith.cmpi slt, %arg1, %c1_i32 : i32
    %4 = arith.extui %3 : i1 to i32
    %5 = arith.sitofp %4 : i32 to f32
    %c0 = arith.constant 0 : index
    %6 = memref.load %arg6[%c0] : memref<4xf32, #tpu.memory_space<smem>>
    %7 = vector.broadcast %6 : f32 to vector<8x16xf32>
    %c0_0 = arith.constant 0 : index
    %c0_1 = arith.constant 0 : index
    %c0_2 = arith.constant 0 : index
    %8 = vector.load %arg8[%c0_0, %c0_1, %c0_2] : memref<4x8x16xf32, #tpu.memory_space<vmem>>, vector<1x8x16xf32>
    %9 = vector.shape_cast %8 : vector<1x8x16xf32> to vector<8x16xf32>
    %10 = vector.shape_cast %7 : vector<8x16xf32> to vector<1x8x16xf32>
    tpu.vector_store %arg8[%c0_0, %c0_1, %c0_2], %10 {strides = array<i32>} : memref<4x8x16xf32, #tpu.memory_space<vmem>>, vector<1x8x16xf32>,
    %c1 = arith.constant 1 : index
    %11 = memref.load %arg6[%c1] : memref<4xf32, #tpu.memory_space<smem>>
    %12 = vector.broadcast %11 : f32 to vector<8x16xf32>
    %c1_3 = arith.constant 1 : index
    %c0_4 = arith.constant 0 : index
    %c0_5 = arith.constant 0 : index
    %13 = vector.load %arg8[%c1_3, %c0_4, %c0_5] : memref<4x8x16xf32, #tpu.memory_space<vmem>>, vector<1x8x16xf32>
    %14 = vector.shape_cast %13 : vector<1x8x16xf32> to vector<8x16xf32>
    %15 = vector.shape_cast %12 : vector<8x16xf32> to vector<1x8x16xf32>
    tpu.vector_store %arg8[%c1_3, %c0_4, %c0_5], %15 {strides = array<i32>} : memref<4x8x16xf32, #tpu.memory_space<vmem>>, vector<1x8x16xf32>,
    %c2 = arith.constant 2 : index
    %16 = memref.load %arg6[%c2] : memref<4xf32, #tpu.memory_space<smem>>
    %17 = vector.broadcast %16 : f32 to vector<8x16xf32>
    %c2_6 = arith.constant 2 : index
    %c0_7 = arith.constant 0 : index
    %c0_8 = arith.constant 0 : index
    %18 = vector.load %arg8[%c2_6, %c0_7, %c0_8] : memref<4x8x16xf32, #tpu.memory_space<vmem>>, vector<1x8x16xf32>
    %19 = vector.shape_cast %18 : vector<1x8x16xf32> to vector<8x16xf32>
    %20 = vector.shape_cast %17 : vector<8x16xf32> to vector<1x8x16xf32>
    tpu.vector_store %arg8[%c2_6, %c0_7, %c0_8], %20 {strides = array<i32>} : memref<4x8x16xf32, #tpu.memory_space<vmem>>, vector<1x8x16xf32>,
    %c3 = arith.constant 3 : index
    %21 = memref.load %arg6[%c3] : memref<4xf32, #tpu.memory_space<smem>>
    %22 = vector.broadcast %21 : f32 to vector<8x16xf32>
    %c3_9 = arith.constant 3 : index
    %c0_10 = arith.constant 0 : index
    %c0_11 = arith.constant 0 : index
    %23 = vector.load %arg8[%c3_9, %c0_10, %c0_11] : memref<4x8x16xf32, #tpu.memory_space<vmem>>, vector<1x8x16xf32>
    %24 = vector.shape_cast %23 : vector<1x8x16xf32> to vector<8x16xf32>
    %25 = vector.shape_cast %22 : vector<8x16xf32> to vector<1x8x16xf32>
    tpu.vector_store %arg8[%c3_9, %c0_10, %c0_11], %25 {strides = array<i32>} : memref<4x8x16xf32, #tpu.memory_space<vmem>>, vector<1x8x16xf32>,
    %c0_12 = arith.constant 0 : index
    %c0_13 = arith.constant 0 : index
    %c0_14 = arith.constant 0 : index
    %c0_15 = arith.constant 0 : index
    %26 = vector.load %arg2[%c0_12, %c0_13, %c0_14, %c0_15] : memref<1x4x8x16xf32, #tpu.memory_space<vmem>>, vector<1x1x8x16xf32>
    %27 = vector.shape_cast %26 : vector<1x1x8x16xf32> to vector<8x16xf32>
    %c0_16 = arith.constant 0 : index
    %c0_17 = arith.constant 0 : index
    %c7 = arith.constant 7 : index
    %c0_18 = arith.constant 0 : index
    %28 = vector.load %arg3[%c0_16, %c0_17, %c7, %c0_18] : memref<1x4x8x16xf32, #tpu.memory_space<vmem>>, vector<1x1x1x16xf32>
    %29 = vector.shape_cast %28 : vector<1x1x1x16xf32> to vector<1x16xf32>
    %30 = vector.broadcast %2 : f32 to vector<1x16xf32>
    %31 = arith.mulf %29, %30 : vector<1x16xf32>
    %32 = vector.extract_strided_slice %27 {offsets = [0, 0], sizes = [7, 16], strides = [1, 1]} : vector<8x16xf32> to vector<7x16xf32>
    %33 = tpu.concatenate %31, %32 in 0 : vector<1x16xf32>, vector<7x16xf32> -> vector<8x16xf32>
    %c0_19 = arith.constant 0 : index
    %c1_20 = arith.constant 1 : index
    %c0_21 = arith.constant 0 : index
    %c0_22 = arith.constant 0 : index
    %34 = vector.load %arg2[%c0_19, %c1_20, %c0_21, %c0_22] : memref<1x4x8x16xf32, #tpu.memory_space<vmem>>, vector<1x1x8x16xf32>
    %35 = vector.shape_cast %34 : vector<1x1x8x16xf32> to vector<8x16xf32>
    %c0_23 = arith.constant 0 : index
    %c1_24 = arith.constant 1 : index
    %c7_25 = arith.constant 7 : index
    %c0_26 = arith.constant 0 : index
    %36 = vector.load %arg3[%c0_23, %c1_24, %c7_25, %c0_26] : memref<1x4x8x16xf32, #tpu.memory_space<vmem>>, vector<1x1x1x16xf32>
    %37 = vector.shape_cast %36 : vector<1x1x1x16xf32> to vector<1x16xf32>
    %38 = vector.broadcast %2 : f32 to vector<1x16xf32>
    %39 = arith.mulf %37, %38 : vector<1x16xf32>
    %40 = vector.extract_strided_slice %35 {offsets = [0, 0], sizes = [7, 16], strides = [1, 1]} : vector<8x16xf32> to vector<7x16xf32>
    %41 = tpu.concatenate %39, %40 in 0 : vector<1x16xf32>, vector<7x16xf32> -> vector<8x16xf32>
    %c0_27 = arith.constant 0 : index
    %c2_28 = arith.constant 2 : index
    %c0_29 = arith.constant 0 : index
    %c0_30 = arith.constant 0 : index
    %42 = vector.load %arg2[%c0_27, %c2_28, %c0_29, %c0_30] : memref<1x4x8x16xf32, #tpu.memory_space<vmem>>, vector<1x1x8x16xf32>
    %43 = vector.shape_cast %42 : vector<1x1x8x16xf32> to vector<8x16xf32>
    %c0_31 = arith.constant 0 : index
    %c2_32 = arith.constant 2 : index
    %c7_33 = arith.constant 7 : index
    %c0_34 = arith.constant 0 : index
    %44 = vector.load %arg3[%c0_31, %c2_32, %c7_33, %c0_34] : memref<1x4x8x16xf32, #tpu.memory_space<vmem>>, vector<1x1x1x16xf32>
    %45 = vector.shape_cast %44 : vector<1x1x1x16xf32> to vector<1x16xf32>
    %46 = vector.broadcast %2 : f32 to vector<1x16xf32>
    %47 = arith.mulf %45, %46 : vector<1x16xf32>
    %48 = vector.extract_strided_slice %43 {offsets = [0, 0], sizes = [7, 16], strides = [1, 1]} : vector<8x16xf32> to vector<7x16xf32>
    %49 = tpu.concatenate %47, %48 in 0 : vector<1x16xf32>, vector<7x16xf32> -> vector<8x16xf32>
    %c0_35 = arith.constant 0 : index
    %c3_36 = arith.constant 3 : index
    %c0_37 = arith.constant 0 : index
    %c0_38 = arith.constant 0 : index
    %50 = vector.load %arg2[%c0_35, %c3_36, %c0_37, %c0_38] : memref<1x4x8x16xf32, #tpu.memory_space<vmem>>, vector<1x1x8x16xf32>
    %51 = vector.shape_cast %50 : vector<1x1x8x16xf32> to vector<8x16xf32>
    %c0_39 = arith.constant 0 : index
    %c3_40 = arith.constant 3 : index
    %c7_41 = arith.constant 7 : index
    %c0_42 = arith.constant 0 : index
    %52 = vector.load %arg3[%c0_39, %c3_40, %c7_41, %c0_42] : memref<1x4x8x16xf32, #tpu.memory_space<vmem>>, vector<1x1x1x16xf32>
    %53 = vector.shape_cast %52 : vector<1x1x1x16xf32> to vector<1x16xf32>
    %54 = vector.broadcast %2 : f32 to vector<1x16xf32>
    %55 = arith.mulf %53, %54 : vector<1x16xf32>
    %56 = vector.extract_strided_slice %51 {offsets = [0, 0], sizes = [7, 16], strides = [1, 1]} : vector<8x16xf32> to vector<7x16xf32>
    %57 = tpu.concatenate %55, %56 in 0 : vector<1x16xf32>, vector<7x16xf32> -> vector<8x16xf32>
    %c1_i32_43 = arith.constant 1 : i32
    %58 = tpu.dynamic_rotate %33 by %c1_i32_43 dim 1 : vector<8x16xf32>, i32 -> vector<8x16xf32>
    %c1_i32_44 = arith.constant 1 : i32
    %59 = tpu.dynamic_rotate %41 by %c1_i32_44 dim 1 : vector<8x16xf32>, i32 -> vector<8x16xf32>
    %c1_i32_45 = arith.constant 1 : i32
    %60 = tpu.dynamic_rotate %49 by %c1_i32_45 dim 1 : vector<8x16xf32>, i32 -> vector<8x16xf32>
    %c1_i32_46 = arith.constant 1 : i32
    %61 = tpu.dynamic_rotate %57 by %c1_i32_46 dim 1 : vector<8x16xf32>, i32 -> vector<8x16xf32>
    %c0_47 = arith.constant 0 : index
    %62 = memref.load %arg5[%c0_47] : memref<144xf32, #tpu.memory_space<smem>>
    %63 = vector.broadcast %62 : f32 to vector<8x16xf32>
    %64 = arith.mulf %58, %63 : vector<8x16xf32>
    %c4 = arith.constant 4 : index
    %65 = memref.load %arg5[%c4] : memref<144xf32, #tpu.memory_space<smem>>
    %66 = vector.broadcast %65 : f32 to vector<8x16xf32>
    %67 = arith.mulf %59, %66 : vector<8x16xf32>
    %68 = arith.addf %64, %67 : vector<8x16xf32>
    %c8 = arith.constant 8 : index
    %69 = memref.load %arg5[%c8] : memref<144xf32, #tpu.memory_space<smem>>
    %70 = vector.broadcast %69 : f32 to vector<8x16xf32>
    %71 = arith.mulf %60, %70 : vector<8x16xf32>
    %72 = arith.addf %68, %71 : vector<8x16xf32>
    %c12 = arith.constant 12 : index
    %73 = memref.load %arg5[%c12] : memref<144xf32, #tpu.memory_space<smem>>
    %74 = vector.broadcast %73 : f32 to vector<8x16xf32>
    %75 = arith.mulf %61, %74 : vector<8x16xf32>
    %76 = arith.addf %72, %75 : vector<8x16xf32>
    %c0_48 = arith.constant 0 : index
    %c0_49 = arith.constant 0 : index
    %c0_50 = arith.constant 0 : index
    %77 = vector.load %arg8[%c0_48, %c0_49, %c0_50] : memref<4x8x16xf32, #tpu.memory_space<vmem>>, vector<1x8x16xf32>
    %78 = vector.shape_cast %77 : vector<1x8x16xf32> to vector<8x16xf32>
    %79 = arith.addf %78, %76 : vector<8x16xf32>
    %c0_51 = arith.constant 0 : index
    %c0_52 = arith.constant 0 : index
    %c0_53 = arith.constant 0 : index
    %80 = vector.load %arg8[%c0_51, %c0_52, %c0_53] : memref<4x8x16xf32, #tpu.memory_space<vmem>>, vector<1x8x16xf32>
    %81 = vector.shape_cast %80 : vector<1x8x16xf32> to vector<8x16xf32>
    %82 = vector.shape_cast %79 : vector<8x16xf32> to vector<1x8x16xf32>
    tpu.vector_store %arg8[%c0_51, %c0_52, %c0_53], %82 {strides = array<i32>} : memref<4x8x16xf32, #tpu.memory_space<vmem>>, vector<1x8x16xf32>,
    %c1_54 = arith.constant 1 : index
    %83 = memref.load %arg5[%c1_54] : memref<144xf32, #tpu.memory_space<smem>>
    %84 = vector.broadcast %83 : f32 to vector<8x16xf32>
    %85 = arith.mulf %58, %84 : vector<8x16xf32>
    %c5 = arith.constant 5 : index
    %86 = memref.load %arg5[%c5] : memref<144xf32, #tpu.memory_space<smem>>
    %87 = vector.broadcast %86 : f32 to vector<8x16xf32>
    %88 = arith.mulf %59, %87 : vector<8x16xf32>
    %89 = arith.addf %85, %88 : vector<8x16xf32>
    %c9 = arith.constant 9 : index
    %90 = memref.load %arg5[%c9] : memref<144xf32, #tpu.memory_space<smem>>
    %91 = vector.broadcast %90 : f32 to vector<8x16xf32>
    %92 = arith.mulf %60, %91 : vector<8x16xf32>
    %93 = arith.addf %89, %92 : vector<8x16xf32>
    %c13 = arith.constant 13 : index
    %94 = memref.load %arg5[%c13] : memref<144xf32, #tpu.memory_space<smem>>
    %95 = vector.broadcast %94 : f32 to vector<8x16xf32>
    %96 = arith.mulf %61, %95 : vector<8x16xf32>
    %97 = arith.addf %93, %96 : vector<8x16xf32>
    %c1_55 = arith.constant 1 : index
    %c0_56 = arith.constant 0 : index
    %c0_57 = arith.constant 0 : index
    %98 = vector.load %arg8[%c1_55, %c0_56, %c0_57] : memref<4x8x16xf32, #tpu.memory_space<vmem>>, vector<1x8x16xf32>
    %99 = vector.shape_cast %98 : vector<1x8x16xf32> to vector<8x16xf32>
    %100 = arith.addf %99, %97 : vector<8x16xf32>
    %c1_58 = arith.constant 1 : index
    %c0_59 = arith.constant 0 : index
    %c0_60 = arith.constant 0 : index
    %101 = vector.load %arg8[%c1_58, %c0_59, %c0_60] : memref<4x8x16xf32, #tpu.memory_space<vmem>>, vector<1x8x16xf32>
    %102 = vector.shape_cast %101 : vector<1x8x16xf32> to vector<8x16xf32>
    %103 = vector.shape_cast %100 : vector<8x16xf32> to vector<1x8x16xf32>
    tpu.vector_store %arg8[%c1_58, %c0_59, %c0_60], %103 {strides = array<i32>} : memref<4x8x16xf32, #tpu.memory_space<vmem>>, vector<1x8x16xf32>,
    %c2_61 = arith.constant 2 : index
    %104 = memref.load %arg5[%c2_61] : memref<144xf32, #tpu.memory_space<smem>>
    %105 = vector.broadcast %104 : f32 to vector<8x16xf32>
    %106 = arith.mulf %58, %105 : vector<8x16xf32>
    %c6 = arith.constant 6 : index
    %107 = memref.load %arg5[%c6] : memref<144xf32, #tpu.memory_space<smem>>
    %108 = vector.broadcast %107 : f32 to vector<8x16xf32>
    %109 = arith.mulf %59, %108 : vector<8x16xf32>
    %110 = arith.addf %106, %109 : vector<8x16xf32>
    %c10 = arith.constant 10 : index
    %111 = memref.load %arg5[%c10] : memref<144xf32, #tpu.memory_space<smem>>
    %112 = vector.broadcast %111 : f32 to vector<8x16xf32>
    %113 = arith.mulf %60, %112 : vector<8x16xf32>
    %114 = arith.addf %110, %113 : vector<8x16xf32>
    %c14 = arith.constant 14 : index
    %115 = memref.load %arg5[%c14] : memref<144xf32, #tpu.memory_space<smem>>
    %116 = vector.broadcast %115 : f32 to vector<8x16xf32>
    %117 = arith.mulf %61, %116 : vector<8x16xf32>
    %118 = arith.addf %114, %117 : vector<8x16xf32>
    %c2_62 = arith.constant 2 : index
    %c0_63 = arith.constant 0 : index
    %c0_64 = arith.constant 0 : index
    %119 = vector.load %arg8[%c2_62, %c0_63, %c0_64] : memref<4x8x16xf32, #tpu.memory_space<vmem>>, vector<1x8x16xf32>
    %120 = vector.shape_cast %119 : vector<1x8x16xf32> to vector<8x16xf32>
    %121 = arith.addf %120, %118 : vector<8x16xf32>
    %c2_65 = arith.constant 2 : index
    %c0_66 = arith.constant 0 : index
    %c0_67 = arith.constant 0 : index
    %122 = vector.load %arg8[%c2_65, %c0_66, %c0_67] : memref<4x8x16xf32, #tpu.memory_space<vmem>>, vector<1x8x16xf32>
    %123 = vector.shape_cast %122 : vector<1x8x16xf32> to vector<8x16xf32>
    %124 = vector.shape_cast %121 : vector<8x16xf32> to vector<1x8x16xf32>
    tpu.vector_store %arg8[%c2_65, %c0_66, %c0_67], %124 {strides = array<i32>} : memref<4x8x16xf32, #tpu.memory_space<vmem>>, vector<1x8x16xf32>,
    %c3_68 = arith.constant 3 : index
    %125 = memref.load %arg5[%c3_68] : memref<144xf32, #tpu.memory_space<smem>>
    %126 = vector.broadcast %125 : f32 to vector<8x16xf32>
    %127 = arith.mulf %58, %126 : vector<8x16xf32>
    %c7_69 = arith.constant 7 : index
    %128 = memref.load %arg5[%c7_69] : memref<144xf32, #tpu.memory_space<smem>>
    %129 = vector.broadcast %128 : f32 to vector<8x16xf32>
    %130 = arith.mulf %59, %129 : vector<8x16xf32>
    %131 = arith.addf %127, %130 : vector<8x16xf32>
    %c11 = arith.constant 11 : index
    %132 = memref.load %arg5[%c11] : memref<144xf32, #tpu.memory_space<smem>>
    %133 = vector.broadcast %132 : f32 to vector<8x16xf32>
    %134 = arith.mulf %60, %133 : vector<8x16xf32>
    %135 = arith.addf %131, %134 : vector<8x16xf32>
    %c15 = arith.constant 15 : index
    %136 = memref.load %arg5[%c15] : memref<144xf32, #tpu.memory_space<smem>>
    %137 = vector.broadcast %136 : f32 to vector<8x16xf32>
    %138 = arith.mulf %61, %137 : vector<8x16xf32>
    %139 = arith.addf %135, %138 : vector<8x16xf32>
    %c3_70 = arith.constant 3 : index
    %c0_71 = arith.constant 0 : index
    %c0_72 = arith.constant 0 : index
    %140 = vector.load %arg8[%c3_70, %c0_71, %c0_72] : memref<4x8x16xf32, #tpu.memory_space<vmem>>, vector<1x8x16xf32>
    %141 = vector.shape_cast %140 : vector<1x8x16xf32> to vector<8x16xf32>
    %142 = arith.addf %141, %139 : vector<8x16xf32>
    %c3_73 = arith.constant 3 : index
    %c0_74 = arith.constant 0 : index
    %c0_75 = arith.constant 0 : index
    %143 = vector.load %arg8[%c3_73, %c0_74, %c0_75] : memref<4x8x16xf32, #tpu.memory_space<vmem>>, vector<1x8x16xf32>
    %144 = vector.shape_cast %143 : vector<1x8x16xf32> to vector<8x16xf32>
    %145 = vector.shape_cast %142 : vector<8x16xf32> to vector<1x8x16xf32>
    tpu.vector_store %arg8[%c3_73, %c0_74, %c0_75], %145 {strides = array<i32>} : memref<4x8x16xf32, #tpu.memory_space<vmem>>, vector<1x8x16xf32>,
    %c16 = arith.constant 16 : index
    %146 = memref.load %arg5[%c16] : memref<144xf32, #tpu.memory_space<smem>>
    %147 = vector.broadcast %146 : f32 to vector<8x16xf32>
    %148 = arith.mulf %33, %147 : vector<8x16xf32>
    %c20 = arith.constant 20 : index
    %149 = memref.load %arg5[%c20] : memref<144xf32, #tpu.memory_space<smem>>
    %150 = vector.broadcast %149 : f32 to vector<8x16xf32>
    %151 = arith.mulf %41, %150 : vector<8x16xf32>
    %152 = arith.addf %148, %151 : vector<8x16xf32>
    %c24 = arith.constant 24 : index
    %153 = memref.load %arg5[%c24] : memref<144xf32, #tpu.memory_space<smem>>
    %154 = vector.broadcast %153 : f32 to vector<8x16xf32>
    %155 = arith.mulf %49, %154 : vector<8x16xf32>
    %156 = arith.addf %152, %155 : vector<8x16xf32>
    %c28 = arith.constant 28 : index
    %157 = memref.load %arg5[%c28] : memref<144xf32, #tpu.memory_space<smem>>
    %158 = vector.broadcast %157 : f32 to vector<8x16xf32>
    %159 = arith.mulf %57, %158 : vector<8x16xf32>
    %160 = arith.addf %156, %159 : vector<8x16xf32>
    %c0_76 = arith.constant 0 : index
    %c0_77 = arith.constant 0 : index
    %c0_78 = arith.constant 0 : index
    %161 = vector.load %arg8[%c0_76, %c0_77, %c0_78] : memref<4x8x16xf32, #tpu.memory_space<vmem>>, vector<1x8x16xf32>
    %162 = vector.shape_cast %161 : vector<1x8x16xf32> to vector<8x16xf32>
    %163 = arith.addf %162, %160 : vector<8x16xf32>
    %c0_79 = arith.constant 0 : index
    %c0_80 = arith.constant 0 : index
    %c0_81 = arith.constant 0 : index
    %164 = vector.load %arg8[%c0_79, %c0_80, %c0_81] : memref<4x8x16xf32, #tpu.memory_space<vmem>>, vector<1x8x16xf32>
    %165 = vector.shape_cast %164 : vector<1x8x16xf32> to vector<8x16xf32>
    %166 = vector.shape_cast %163 : vector<8x16xf32> to vector<1x8x16xf32>
    tpu.vector_store %arg8[%c0_79, %c0_80, %c0_81], %166 {strides = array<i32>} : memref<4x8x16xf32, #tpu.memory_space<vmem>>, vector<1x8x16xf32>,
    %c17 = arith.constant 17 : index
    %167 = memref.load %arg5[%c17] : memref<144xf32, #tpu.memory_space<smem>>
    %168 = vector.broadcast %167 : f32 to vector<8x16xf32>
    %169 = arith.mulf %33, %168 : vector<8x16xf32>
    %c21 = arith.constant 21 : index
    %170 = memref.load %arg5[%c21] : memref<144xf32, #tpu.memory_space<smem>>
    %171 = vector.broadcast %170 : f32 to vector<8x16xf32>
    %172 = arith.mulf %41, %171 : vector<8x16xf32>
    %173 = arith.addf %169, %172 : vector<8x16xf32>
    %c25 = arith.constant 25 : index
    %174 = memref.load %arg5[%c25] : memref<144xf32, #tpu.memory_space<smem>>
    %175 = vector.broadcast %174 : f32 to vector<8x16xf32>
    %176 = arith.mulf %49, %175 : vector<8x16xf32>
    %177 = arith.addf %173, %176 : vector<8x16xf32>
    %c29 = arith.constant 29 : index
    %178 = memref.load %arg5[%c29] : memref<144xf32, #tpu.memory_space<smem>>
    %179 = vector.broadcast %178 : f32 to vector<8x16xf32>
    %180 = arith.mulf %57, %179 : vector<8x16xf32>
    %181 = arith.addf %177, %180 : vector<8x16xf32>
    %c1_82 = arith.constant 1 : index
    %c0_83 = arith.constant 0 : index
    %c0_84 = arith.constant 0 : index
    %182 = vector.load %arg8[%c1_82, %c0_83, %c0_84] : memref<4x8x16xf32, #tpu.memory_space<vmem>>, vector<1x8x16xf32>
    %183 = vector.shape_cast %182 : vector<1x8x16xf32> to vector<8x16xf32>
    %184 = arith.addf %183, %181 : vector<8x16xf32>
    %c1_85 = arith.constant 1 : index
    %c0_86 = arith.constant 0 : index
    %c0_87 = arith.constant 0 : index
    %185 = vector.load %arg8[%c1_85, %c0_86, %c0_87] : memref<4x8x16xf32, #tpu.memory_space<vmem>>, vector<1x8x16xf32>
    %186 = vector.shape_cast %185 : vector<1x8x16xf32> to vector<8x16xf32>
    %187 = vector.shape_cast %184 : vector<8x16xf32> to vector<1x8x16xf32>
    tpu.vector_store %arg8[%c1_85, %c0_86, %c0_87], %187 {strides = array<i32>} : memref<4x8x16xf32, #tpu.memory_space<vmem>>, vector<1x8x16xf32>,
    %c18 = arith.constant 18 : index
    %188 = memref.load %arg5[%c18] : memref<144xf32, #tpu.memory_space<smem>>
    %189 = vector.broadcast %188 : f32 to vector<8x16xf32>
    %190 = arith.mulf %33, %189 : vector<8x16xf32>
    %c22 = arith.constant 22 : index
    %191 = memref.load %arg5[%c22] : memref<144xf32, #tpu.memory_space<smem>>
    %192 = vector.broadcast %191 : f32 to vector<8x16xf32>
    %193 = arith.mulf %41, %192 : vector<8x16xf32>
    %194 = arith.addf %190, %193 : vector<8x16xf32>
    %c26 = arith.constant 26 : index
    %195 = memref.load %arg5[%c26] : memref<144xf32, #tpu.memory_space<smem>>
    %196 = vector.broadcast %195 : f32 to vector<8x16xf32>
    %197 = arith.mulf %49, %196 : vector<8x16xf32>
    %198 = arith.addf %194, %197 : vector<8x16xf32>
    %c30 = arith.constant 30 : index
    %199 = memref.load %arg5[%c30] : memref<144xf32, #tpu.memory_space<smem>>
    %200 = vector.broadcast %199 : f32 to vector<8x16xf32>
    %201 = arith.mulf %57, %200 : vector<8x16xf32>
    %202 = arith.addf %198, %201 : vector<8x16xf32>
    %c2_88 = arith.constant 2 : index
    %c0_89 = arith.constant 0 : index
    %c0_90 = arith.constant 0 : index
    %203 = vector.load %arg8[%c2_88, %c0_89, %c0_90] : memref<4x8x16xf32, #tpu.memory_space<vmem>>, vector<1x8x16xf32>
    %204 = vector.shape_cast %203 : vector<1x8x16xf32> to vector<8x16xf32>
    %205 = arith.addf %204, %202 : vector<8x16xf32>
    %c2_91 = arith.constant 2 : index
    %c0_92 = arith.constant 0 : index
    %c0_93 = arith.constant 0 : index
    %206 = vector.load %arg8[%c2_91, %c0_92, %c0_93] : memref<4x8x16xf32, #tpu.memory_space<vmem>>, vector<1x8x16xf32>
    %207 = vector.shape_cast %206 : vector<1x8x16xf32> to vector<8x16xf32>
    %208 = vector.shape_cast %205 : vector<8x16xf32> to vector<1x8x16xf32>
    tpu.vector_store %arg8[%c2_91, %c0_92, %c0_93], %208 {strides = array<i32>} : memref<4x8x16xf32, #tpu.memory_space<vmem>>, vector<1x8x16xf32>,
    %c19 = arith.constant 19 : index
    %209 = memref.load %arg5[%c19] : memref<144xf32, #tpu.memory_space<smem>>
    %210 = vector.broadcast %209 : f32 to vector<8x16xf32>
    %211 = arith.mulf %33, %210 : vector<8x16xf32>
    %c23 = arith.constant 23 : index
    %212 = memref.load %arg5[%c23] : memref<144xf32, #tpu.memory_space<smem>>
    %213 = vector.broadcast %212 : f32 to vector<8x16xf32>
    %214 = arith.mulf %41, %213 : vector<8x16xf32>
    %215 = arith.addf %211, %214 : vector<8x16xf32>
    %c27 = arith.constant 27 : index
    %216 = memref.load %arg5[%c27] : memref<144xf32, #tpu.memory_space<smem>>
    %217 = vector.broadcast %216 : f32 to vector<8x16xf32>
    %218 = arith.mulf %49, %217 : vector<8x16xf32>
    %219 = arith.addf %215, %218 : vector<8x16xf32>
    %c31 = arith.constant 31 : index
    %220 = memref.load %arg5[%c31] : memref<144xf32, #tpu.memory_space<smem>>
    %221 = vector.broadcast %220 : f32 to vector<8x16xf32>
    %222 = arith.mulf %57, %221 : vector<8x16xf32>
    %223 = arith.addf %219, %222 : vector<8x16xf32>
    %c3_94 = arith.constant 3 : index
    %c0_95 = arith.constant 0 : index
    %c0_96 = arith.constant 0 : index
    %224 = vector.load %arg8[%c3_94, %c0_95, %c0_96] : memref<4x8x16xf32, #tpu.memory_space<vmem>>, vector<1x8x16xf32>
    %225 = vector.shape_cast %224 : vector<1x8x16xf32> to vector<8x16xf32>
    %226 = arith.addf %225, %223 : vector<8x16xf32>
    %c3_97 = arith.constant 3 : index
    %c0_98 = arith.constant 0 : index
    %c0_99 = arith.constant 0 : index
    %227 = vector.load %arg8[%c3_97, %c0_98, %c0_99] : memref<4x8x16xf32, #tpu.memory_space<vmem>>, vector<1x8x16xf32>
    %228 = vector.shape_cast %227 : vector<1x8x16xf32> to vector<8x16xf32>
    %229 = vector.shape_cast %226 : vector<8x16xf32> to vector<1x8x16xf32>
    tpu.vector_store %arg8[%c3_97, %c0_98, %c0_99], %229 {strides = array<i32>} : memref<4x8x16xf32, #tpu.memory_space<vmem>>, vector<1x8x16xf32>,
    %c15_i32 = arith.constant 15 : i32
    %230 = tpu.dynamic_rotate %33 by %c15_i32 dim 1 : vector<8x16xf32>, i32 -> vector<8x16xf32>
    %c15_i32_100 = arith.constant 15 : i32
    %231 = tpu.dynamic_rotate %41 by %c15_i32_100 dim 1 : vector<8x16xf32>, i32 -> vector<8x16xf32>
    %c15_i32_101 = arith.constant 15 : i32
    %232 = tpu.dynamic_rotate %49 by %c15_i32_101 dim 1 : vector<8x16xf32>, i32 -> vector<8x16xf32>
    %c15_i32_102 = arith.constant 15 : i32
    %233 = tpu.dynamic_rotate %57 by %c15_i32_102 dim 1 : vector<8x16xf32>, i32 -> vector<8x16xf32>
    %c32 = arith.constant 32 : index
    %234 = memref.load %arg5[%c32] : memref<144xf32, #tpu.memory_space<smem>>
    %235 = vector.broadcast %234 : f32 to vector<8x16xf32>
    %236 = arith.mulf %230, %235 : vector<8x16xf32>
    %c36 = arith.constant 36 : index
    %237 = memref.load %arg5[%c36] : memref<144xf32, #tpu.memory_space<smem>>
    %238 = vector.broadcast %237 : f32 to vector<8x16xf32>
    %239 = arith.mulf %231, %238 : vector<8x16xf32>
    %240 = arith.addf %236, %239 : vector<8x16xf32>
    %c40 = arith.constant 40 : index
    %241 = memref.load %arg5[%c40] : memref<144xf32, #tpu.memory_space<smem>>
    %242 = vector.broadcast %241 : f32 to vector<8x16xf32>
    %243 = arith.mulf %232, %242 : vector<8x16xf32>
    %244 = arith.addf %240, %243 : vector<8x16xf32>
    %c44 = arith.constant 44 : index
    %245 = memref.load %arg5[%c44] : memref<144xf32, #tpu.memory_space<smem>>
    %246 = vector.broadcast %245 : f32 to vector<8x16xf32>
    %247 = arith.mulf %233, %246 : vector<8x16xf32>
    %248 = arith.addf %244, %247 : vector<8x16xf32>
    %c0_103 = arith.constant 0 : index
    %c0_104 = arith.constant 0 : index
    %c0_105 = arith.constant 0 : index
    %249 = vector.load %arg8[%c0_103, %c0_104, %c0_105] : memref<4x8x16xf32, #tpu.memory_space<vmem>>, vector<1x8x16xf32>
    %250 = vector.shape_cast %249 : vector<1x8x16xf32> to vector<8x16xf32>
    %251 = arith.addf %250, %248 : vector<8x16xf32>
    %c0_106 = arith.constant 0 : index
    %c0_107 = arith.constant 0 : index
    %c0_108 = arith.constant 0 : index
    %252 = vector.load %arg8[%c0_106, %c0_107, %c0_108] : memref<4x8x16xf32, #tpu.memory_space<vmem>>, vector<1x8x16xf32>
    %253 = vector.shape_cast %252 : vector<1x8x16xf32> to vector<8x16xf32>
    %254 = vector.shape_cast %251 : vector<8x16xf32> to vector<1x8x16xf32>
    tpu.vector_store %arg8[%c0_106, %c0_107, %c0_108], %254 {strides = array<i32>} : memref<4x8x16xf32, #tpu.memory_space<vmem>>, vector<1x8x16xf32>,
    %c33 = arith.constant 33 : index
    %255 = memref.load %arg5[%c33] : memref<144xf32, #tpu.memory_space<smem>>
    %256 = vector.broadcast %255 : f32 to vector<8x16xf32>
    %257 = arith.mulf %230, %256 : vector<8x16xf32>
    %c37 = arith.constant 37 : index
    %258 = memref.load %arg5[%c37] : memref<144xf32, #tpu.memory_space<smem>>
    %259 = vector.broadcast %258 : f32 to vector<8x16xf32>
    %260 = arith.mulf %231, %259 : vector<8x16xf32>
    %261 = arith.addf %257, %260 : vector<8x16xf32>
    %c41 = arith.constant 41 : index
    %262 = memref.load %arg5[%c41] : memref<144xf32, #tpu.memory_space<smem>>
    %263 = vector.broadcast %262 : f32 to vector<8x16xf32>
    %264 = arith.mulf %232, %263 : vector<8x16xf32>
    %265 = arith.addf %261, %264 : vector<8x16xf32>
    %c45 = arith.constant 45 : index
    %266 = memref.load %arg5[%c45] : memref<144xf32, #tpu.memory_space<smem>>
    %267 = vector.broadcast %266 : f32 to vector<8x16xf32>
    %268 = arith.mulf %233, %267 : vector<8x16xf32>
    %269 = arith.addf %265, %268 : vector<8x16xf32>
    %c1_109 = arith.constant 1 : index
    %c0_110 = arith.constant 0 : index
    %c0_111 = arith.constant 0 : index
    %270 = vector.load %arg8[%c1_109, %c0_110, %c0_111] : memref<4x8x16xf32, #tpu.memory_space<vmem>>, vector<1x8x16xf32>
    %271 = vector.shape_cast %270 : vector<1x8x16xf32> to vector<8x16xf32>
    %272 = arith.addf %271, %269 : vector<8x16xf32>
    %c1_112 = arith.constant 1 : index
    %c0_113 = arith.constant 0 : index
    %c0_114 = arith.constant 0 : index
    %273 = vector.load %arg8[%c1_112, %c0_113, %c0_114] : memref<4x8x16xf32, #tpu.memory_space<vmem>>, vector<1x8x16xf32>
    %274 = vector.shape_cast %273 : vector<1x8x16xf32> to vector<8x16xf32>
    %275 = vector.shape_cast %272 : vector<8x16xf32> to vector<1x8x16xf32>
    tpu.vector_store %arg8[%c1_112, %c0_113, %c0_114], %275 {strides = array<i32>} : memref<4x8x16xf32, #tpu.memory_space<vmem>>, vector<1x8x16xf32>,
    %c34 = arith.constant 34 : index
    %276 = memref.load %arg5[%c34] : memref<144xf32, #tpu.memory_space<smem>>
    %277 = vector.broadcast %276 : f32 to vector<8x16xf32>
    %278 = arith.mulf %230, %277 : vector<8x16xf32>
    %c38 = arith.constant 38 : index
    %279 = memref.load %arg5[%c38] : memref<144xf32, #tpu.memory_space<smem>>
    %280 = vector.broadcast %279 : f32 to vector<8x16xf32>
    %281 = arith.mulf %231, %280 : vector<8x16xf32>
    %282 = arith.addf %278, %281 : vector<8x16xf32>
    %c42 = arith.constant 42 : index
    %283 = memref.load %arg5[%c42] : memref<144xf32, #tpu.memory_space<smem>>
    %284 = vector.broadcast %283 : f32 to vector<8x16xf32>
    %285 = arith.mulf %232, %284 : vector<8x16xf32>
    %286 = arith.addf %282, %285 : vector<8x16xf32>
    %c46 = arith.constant 46 : index
    %287 = memref.load %arg5[%c46] : memref<144xf32, #tpu.memory_space<smem>>
    %288 = vector.broadcast %287 : f32 to vector<8x16xf32>
    %289 = arith.mulf %233, %288 : vector<8x16xf32>
    %290 = arith.addf %286, %289 : vector<8x16xf32>
    %c2_115 = arith.constant 2 : index
    %c0_116 = arith.constant 0 : index
    %c0_117 = arith.constant 0 : index
    %291 = vector.load %arg8[%c2_115, %c0_116, %c0_117] : memref<4x8x16xf32, #tpu.memory_space<vmem>>, vector<1x8x16xf32>
    %292 = vector.shape_cast %291 : vector<1x8x16xf32> to vector<8x16xf32>
    %293 = arith.addf %292, %290 : vector<8x16xf32>
    %c2_118 = arith.constant 2 : index
    %c0_119 = arith.constant 0 : index
    %c0_120 = arith.constant 0 : index
    %294 = vector.load %arg8[%c2_118, %c0_119, %c0_120] : memref<4x8x16xf32, #tpu.memory_space<vmem>>, vector<1x8x16xf32>
    %295 = vector.shape_cast %294 : vector<1x8x16xf32> to vector<8x16xf32>
    %296 = vector.shape_cast %293 : vector<8x16xf32> to vector<1x8x16xf32>
    tpu.vector_store %arg8[%c2_118, %c0_119, %c0_120], %296 {strides = array<i32>} : memref<4x8x16xf32, #tpu.memory_space<vmem>>, vector<1x8x16xf32>,
    %c35 = arith.constant 35 : index
    %297 = memref.load %arg5[%c35] : memref<144xf32, #tpu.memory_space<smem>>
    %298 = vector.broadcast %297 : f32 to vector<8x16xf32>
    %299 = arith.mulf %230, %298 : vector<8x16xf32>
    %c39 = arith.constant 39 : index
    %300 = memref.load %arg5[%c39] : memref<144xf32, #tpu.memory_space<smem>>
    %301 = vector.broadcast %300 : f32 to vector<8x16xf32>
    %302 = arith.mulf %231, %301 : vector<8x16xf32>
    %303 = arith.addf %299, %302 : vector<8x16xf32>
    %c43 = arith.constant 43 : index
    %304 = memref.load %arg5[%c43] : memref<144xf32, #tpu.memory_space<smem>>
    %305 = vector.broadcast %304 : f32 to vector<8x16xf32>
    %306 = arith.mulf %232, %305 : vector<8x16xf32>
    %307 = arith.addf %303, %306 : vector<8x16xf32>
    %c47 = arith.constant 47 : index
    %308 = memref.load %arg5[%c47] : memref<144xf32, #tpu.memory_space<smem>>
    %309 = vector.broadcast %308 : f32 to vector<8x16xf32>
    %310 = arith.mulf %233, %309 : vector<8x16xf32>
    %311 = arith.addf %307, %310 : vector<8x16xf32>
    %c3_121 = arith.constant 3 : index
    %c0_122 = arith.constant 0 : index
    %c0_123 = arith.constant 0 : index
    %312 = vector.load %arg8[%c3_121, %c0_122, %c0_123] : memref<4x8x16xf32, #tpu.memory_space<vmem>>, vector<1x8x16xf32>
    %313 = vector.shape_cast %312 : vector<1x8x16xf32> to vector<8x16xf32>
    %314 = arith.addf %313, %311 : vector<8x16xf32>
    %c3_124 = arith.constant 3 : index
    %c0_125 = arith.constant 0 : index
    %c0_126 = arith.constant 0 : index
    %315 = vector.load %arg8[%c3_124, %c0_125, %c0_126] : memref<4x8x16xf32, #tpu.memory_space<vmem>>, vector<1x8x16xf32>
    %316 = vector.shape_cast %315 : vector<1x8x16xf32> to vector<8x16xf32>
    %317 = vector.shape_cast %314 : vector<8x16xf32> to vector<1x8x16xf32>
    tpu.vector_store %arg8[%c3_124, %c0_125, %c0_126], %317 {strides = array<i32>} : memref<4x8x16xf32, #tpu.memory_space<vmem>>, vector<1x8x16xf32>,
    %c0_127 = arith.constant 0 : index
    %c0_128 = arith.constant 0 : index
    %c0_129 = arith.constant 0 : index
    %c0_130 = arith.constant 0 : index
    %318 = vector.load %arg2[%c0_127, %c0_128, %c0_129, %c0_130] : memref<1x4x8x16xf32, #tpu.memory_space<vmem>>, vector<1x1x8x16xf32>
    %319 = vector.shape_cast %318 : vector<1x1x8x16xf32> to vector<8x16xf32>
    %c0_131 = arith.constant 0 : index
    %c1_132 = arith.constant 1 : index
    %c0_133 = arith.constant 0 : index
    %c0_134 = arith.constant 0 : index
    %320 = vector.load %arg2[%c0_131, %c1_132, %c0_133, %c0_134] : memref<1x4x8x16xf32, #tpu.memory_space<vmem>>, vector<1x1x8x16xf32>
    %321 = vector.shape_cast %320 : vector<1x1x8x16xf32> to vector<8x16xf32>
    %c0_135 = arith.constant 0 : index
    %c2_136 = arith.constant 2 : index
    %c0_137 = arith.constant 0 : index
    %c0_138 = arith.constant 0 : index
    %322 = vector.load %arg2[%c0_135, %c2_136, %c0_137, %c0_138] : memref<1x4x8x16xf32, #tpu.memory_space<vmem>>, vector<1x1x8x16xf32>
    %323 = vector.shape_cast %322 : vector<1x1x8x16xf32> to vector<8x16xf32>
    %c0_139 = arith.constant 0 : index
    %c3_140 = arith.constant 3 : index
    %c0_141 = arith.constant 0 : index
    %c0_142 = arith.constant 0 : index
    %324 = vector.load %arg2[%c0_139, %c3_140, %c0_141, %c0_142] : memref<1x4x8x16xf32, #tpu.memory_space<vmem>>, vector<1x1x8x16xf32>
    %325 = vector.shape_cast %324 : vector<1x1x8x16xf32> to vector<8x16xf32>
    %c1_i32_143 = arith.constant 1 : i32
    %326 = tpu.dynamic_rotate %319 by %c1_i32_143 dim 1 : vector<8x16xf32>, i32 -> vector<8x16xf32>
    %c1_i32_144 = arith.constant 1 : i32
    %327 = tpu.dynamic_rotate %321 by %c1_i32_144 dim 1 : vector<8x16xf32>, i32 -> vector<8x16xf32>
    %c1_i32_145 = arith.constant 1 : i32
    %328 = tpu.dynamic_rotate %323 by %c1_i32_145 dim 1 : vector<8x16xf32>, i32 -> vector<8x16xf32>
    %c1_i32_146 = arith.constant 1 : i32
    %329 = tpu.dynamic_rotate %325 by %c1_i32_146 dim 1 : vector<8x16xf32>, i32 -> vector<8x16xf32>
    %c48 = arith.constant 48 : index
    %330 = memref.load %arg5[%c48] : memref<144xf32, #tpu.memory_space<smem>>
    %331 = vector.broadcast %330 : f32 to vector<8x16xf32>
    %332 = arith.mulf %326, %331 : vector<8x16xf32>
    %c52 = arith.constant 52 : index
    %333 = memref.load %arg5[%c52] : memref<144xf32, #tpu.memory_space<smem>>
    %334 = vector.broadcast %333 : f32 to vector<8x16xf32>
    %335 = arith.mulf %327, %334 : vector<8x16xf32>
    %336 = arith.addf %332, %335 : vector<8x16xf32>
    %c56 = arith.constant 56 : index
    %337 = memref.load %arg5[%c56] : memref<144xf32, #tpu.memory_space<smem>>
    %338 = vector.broadcast %337 : f32 to vector<8x16xf32>
    %339 = arith.mulf %328, %338 : vector<8x16xf32>
    %340 = arith.addf %336, %339 : vector<8x16xf32>
    %c60 = arith.constant 60 : index
    %341 = memref.load %arg5[%c60] : memref<144xf32, #tpu.memory_space<smem>>
    %342 = vector.broadcast %341 : f32 to vector<8x16xf32>
    %343 = arith.mulf %329, %342 : vector<8x16xf32>
    %344 = arith.addf %340, %343 : vector<8x16xf32>
    %c0_147 = arith.constant 0 : index
    %c0_148 = arith.constant 0 : index
    %c0_149 = arith.constant 0 : index
    %345 = vector.load %arg8[%c0_147, %c0_148, %c0_149] : memref<4x8x16xf32, #tpu.memory_space<vmem>>, vector<1x8x16xf32>
    %346 = vector.shape_cast %345 : vector<1x8x16xf32> to vector<8x16xf32>
    %347 = arith.addf %346, %344 : vector<8x16xf32>
    %c0_150 = arith.constant 0 : index
    %c0_151 = arith.constant 0 : index
    %c0_152 = arith.constant 0 : index
    %348 = vector.load %arg8[%c0_150, %c0_151, %c0_152] : memref<4x8x16xf32, #tpu.memory_space<vmem>>, vector<1x8x16xf32>
    %349 = vector.shape_cast %348 : vector<1x8x16xf32> to vector<8x16xf32>
    %350 = vector.shape_cast %347 : vector<8x16xf32> to vector<1x8x16xf32>
    tpu.vector_store %arg8[%c0_150, %c0_151, %c0_152], %350 {strides = array<i32>} : memref<4x8x16xf32, #tpu.memory_space<vmem>>, vector<1x8x16xf32>,
    %c49 = arith.constant 49 : index
    %351 = memref.load %arg5[%c49] : memref<144xf32, #tpu.memory_space<smem>>
    %352 = vector.broadcast %351 : f32 to vector<8x16xf32>
    %353 = arith.mulf %326, %352 : vector<8x16xf32>
    %c53 = arith.constant 53 : index
    %354 = memref.load %arg5[%c53] : memref<144xf32, #tpu.memory_space<smem>>
    %355 = vector.broadcast %354 : f32 to vector<8x16xf32>
    %356 = arith.mulf %327, %355 : vector<8x16xf32>
    %357 = arith.addf %353, %356 : vector<8x16xf32>
    %c57 = arith.constant 57 : index
    %358 = memref.load %arg5[%c57] : memref<144xf32, #tpu.memory_space<smem>>
    %359 = vector.broadcast %358 : f32 to vector<8x16xf32>
    %360 = arith.mulf %328, %359 : vector<8x16xf32>
    %361 = arith.addf %357, %360 : vector<8x16xf32>
    %c61 = arith.constant 61 : index
    %362 = memref.load %arg5[%c61] : memref<144xf32, #tpu.memory_space<smem>>
    %363 = vector.broadcast %362 : f32 to vector<8x16xf32>
    %364 = arith.mulf %329, %363 : vector<8x16xf32>
    %365 = arith.addf %361, %364 : vector<8x16xf32>
    %c1_153 = arith.constant 1 : index
    %c0_154 = arith.constant 0 : index
    %c0_155 = arith.constant 0 : index
    %366 = vector.load %arg8[%c1_153, %c0_154, %c0_155] : memref<4x8x16xf32, #tpu.memory_space<vmem>>, vector<1x8x16xf32>
    %367 = vector.shape_cast %366 : vector<1x8x16xf32> to vector<8x16xf32>
    %368 = arith.addf %367, %365 : vector<8x16xf32>
    %c1_156 = arith.constant 1 : index
    %c0_157 = arith.constant 0 : index
    %c0_158 = arith.constant 0 : index
    %369 = vector.load %arg8[%c1_156, %c0_157, %c0_158] : memref<4x8x16xf32, #tpu.memory_space<vmem>>, vector<1x8x16xf32>
    %370 = vector.shape_cast %369 : vector<1x8x16xf32> to vector<8x16xf32>
    %371 = vector.shape_cast %368 : vector<8x16xf32> to vector<1x8x16xf32>
    tpu.vector_store %arg8[%c1_156, %c0_157, %c0_158], %371 {strides = array<i32>} : memref<4x8x16xf32, #tpu.memory_space<vmem>>, vector<1x8x16xf32>,
    %c50 = arith.constant 50 : index
    %372 = memref.load %arg5[%c50] : memref<144xf32, #tpu.memory_space<smem>>
    %373 = vector.broadcast %372 : f32 to vector<8x16xf32>
    %374 = arith.mulf %326, %373 : vector<8x16xf32>
    %c54 = arith.constant 54 : index
    %375 = memref.load %arg5[%c54] : memref<144xf32, #tpu.memory_space<smem>>
    %376 = vector.broadcast %375 : f32 to vector<8x16xf32>
    %377 = arith.mulf %327, %376 : vector<8x16xf32>
    %378 = arith.addf %374, %377 : vector<8x16xf32>
    %c58 = arith.constant 58 : index
    %379 = memref.load %arg5[%c58] : memref<144xf32, #tpu.memory_space<smem>>
    %380 = vector.broadcast %379 : f32 to vector<8x16xf32>
    %381 = arith.mulf %328, %380 : vector<8x16xf32>
    %382 = arith.addf %378, %381 : vector<8x16xf32>
    %c62 = arith.constant 62 : index
    %383 = memref.load %arg5[%c62] : memref<144xf32, #tpu.memory_space<smem>>
    %384 = vector.broadcast %383 : f32 to vector<8x16xf32>
    %385 = arith.mulf %329, %384 : vector<8x16xf32>
    %386 = arith.addf %382, %385 : vector<8x16xf32>
    %c2_159 = arith.constant 2 : index
    %c0_160 = arith.constant 0 : index
    %c0_161 = arith.constant 0 : index
    %387 = vector.load %arg8[%c2_159, %c0_160, %c0_161] : memref<4x8x16xf32, #tpu.memory_space<vmem>>, vector<1x8x16xf32>
    %388 = vector.shape_cast %387 : vector<1x8x16xf32> to vector<8x16xf32>
    %389 = arith.addf %388, %386 : vector<8x16xf32>
    %c2_162 = arith.constant 2 : index
    %c0_163 = arith.constant 0 : index
    %c0_164 = arith.constant 0 : index
    %390 = vector.load %arg8[%c2_162, %c0_163, %c0_164] : memref<4x8x16xf32, #tpu.memory_space<vmem>>, vector<1x8x16xf32>
    %391 = vector.shape_cast %390 : vector<1x8x16xf32> to vector<8x16xf32>
    %392 = vector.shape_cast %389 : vector<8x16xf32> to vector<1x8x16xf32>
    tpu.vector_store %arg8[%c2_162, %c0_163, %c0_164], %392 {strides = array<i32>} : memref<4x8x16xf32, #tpu.memory_space<vmem>>, vector<1x8x16xf32>,
    %c51 = arith.constant 51 : index
    %393 = memref.load %arg5[%c51] : memref<144xf32, #tpu.memory_space<smem>>
    %394 = vector.broadcast %393 : f32 to vector<8x16xf32>
    %395 = arith.mulf %326, %394 : vector<8x16xf32>
    %c55 = arith.constant 55 : index
    %396 = memref.load %arg5[%c55] : memref<144xf32, #tpu.memory_space<smem>>
    %397 = vector.broadcast %396 : f32 to vector<8x16xf32>
    %398 = arith.mulf %327, %397 : vector<8x16xf32>
    %399 = arith.addf %395, %398 : vector<8x16xf32>
    %c59 = arith.constant 59 : index
    %400 = memref.load %arg5[%c59] : memref<144xf32, #tpu.memory_space<smem>>
    %401 = vector.broadcast %400 : f32 to vector<8x16xf32>
    %402 = arith.mulf %328, %401 : vector<8x16xf32>
    %403 = arith.addf %399, %402 : vector<8x16xf32>
    %c63 = arith.constant 63 : index
    %404 = memref.load %arg5[%c63] : memref<144xf32, #tpu.memory_space<smem>>
    %405 = vector.broadcast %404 : f32 to vector<8x16xf32>
    %406 = arith.mulf %329, %405 : vector<8x16xf32>
    %407 = arith.addf %403, %406 : vector<8x16xf32>
    %c3_165 = arith.constant 3 : index
    %c0_166 = arith.constant 0 : index
    %c0_167 = arith.constant 0 : index
    %408 = vector.load %arg8[%c3_165, %c0_166, %c0_167] : memref<4x8x16xf32, #tpu.memory_space<vmem>>, vector<1x8x16xf32>
    %409 = vector.shape_cast %408 : vector<1x8x16xf32> to vector<8x16xf32>
    %410 = arith.addf %409, %407 : vector<8x16xf32>
    %c3_168 = arith.constant 3 : index
    %c0_169 = arith.constant 0 : index
    %c0_170 = arith.constant 0 : index
    %411 = vector.load %arg8[%c3_168, %c0_169, %c0_170] : memref<4x8x16xf32, #tpu.memory_space<vmem>>, vector<1x8x16xf32>
    %412 = vector.shape_cast %411 : vector<1x8x16xf32> to vector<8x16xf32>
    %413 = vector.shape_cast %410 : vector<8x16xf32> to vector<1x8x16xf32>
    tpu.vector_store %arg8[%c3_168, %c0_169, %c0_170], %413 {strides = array<i32>} : memref<4x8x16xf32, #tpu.memory_space<vmem>>, vector<1x8x16xf32>,
    %c64 = arith.constant 64 : index
    %414 = memref.load %arg5[%c64] : memref<144xf32, #tpu.memory_space<smem>>
    %415 = vector.broadcast %414 : f32 to vector<8x16xf32>
    %416 = arith.mulf %319, %415 : vector<8x16xf32>
    %c68 = arith.constant 68 : index
    %417 = memref.load %arg5[%c68] : memref<144xf32, #tpu.memory_space<smem>>
    %418 = vector.broadcast %417 : f32 to vector<8x16xf32>
    %419 = arith.mulf %321, %418 : vector<8x16xf32>
    %420 = arith.addf %416, %419 : vector<8x16xf32>
    %c72 = arith.constant 72 : index
    %421 = memref.load %arg5[%c72] : memref<144xf32, #tpu.memory_space<smem>>
    %422 = vector.broadcast %421 : f32 to vector<8x16xf32>
    %423 = arith.mulf %323, %422 : vector<8x16xf32>
    %424 = arith.addf %420, %423 : vector<8x16xf32>
    %c76 = arith.constant 76 : index
    %425 = memref.load %arg5[%c76] : memref<144xf32, #tpu.memory_space<smem>>
    %426 = vector.broadcast %425 : f32 to vector<8x16xf32>
    %427 = arith.mulf %325, %426 : vector<8x16xf32>
    %428 = arith.addf %424, %427 : vector<8x16xf32>
    %c0_171 = arith.constant 0 : index
    %c0_172 = arith.constant 0 : index
    %c0_173 = arith.constant 0 : index
    %429 = vector.load %arg8[%c0_171, %c0_172, %c0_173] : memref<4x8x16xf32, #tpu.memory_space<vmem>>, vector<1x8x16xf32>
    %430 = vector.shape_cast %429 : vector<1x8x16xf32> to vector<8x16xf32>
    %431 = arith.addf %430, %428 : vector<8x16xf32>
    %c0_174 = arith.constant 0 : index
    %c0_175 = arith.constant 0 : index
    %c0_176 = arith.constant 0 : index
    %432 = vector.load %arg8[%c0_174, %c0_175, %c0_176] : memref<4x8x16xf32, #tpu.memory_space<vmem>>, vector<1x8x16xf32>
    %433 = vector.shape_cast %432 : vector<1x8x16xf32> to vector<8x16xf32>
    %434 = vector.shape_cast %431 : vector<8x16xf32> to vector<1x8x16xf32>
    tpu.vector_store %arg8[%c0_174, %c0_175, %c0_176], %434 {strides = array<i32>} : memref<4x8x16xf32, #tpu.memory_space<vmem>>, vector<1x8x16xf32>,
    %c65 = arith.constant 65 : index
    %435 = memref.load %arg5[%c65] : memref<144xf32, #tpu.memory_space<smem>>
    %436 = vector.broadcast %435 : f32 to vector<8x16xf32>
    %437 = arith.mulf %319, %436 : vector<8x16xf32>
    %c69 = arith.constant 69 : index
    %438 = memref.load %arg5[%c69] : memref<144xf32, #tpu.memory_space<smem>>
    %439 = vector.broadcast %438 : f32 to vector<8x16xf32>
    %440 = arith.mulf %321, %439 : vector<8x16xf32>
    %441 = arith.addf %437, %440 : vector<8x16xf32>
    %c73 = arith.constant 73 : index
    %442 = memref.load %arg5[%c73] : memref<144xf32, #tpu.memory_space<smem>>
    %443 = vector.broadcast %442 : f32 to vector<8x16xf32>
    %444 = arith.mulf %323, %443 : vector<8x16xf32>
    %445 = arith.addf %441, %444 : vector<8x16xf32>
    %c77 = arith.constant 77 : index
    %446 = memref.load %arg5[%c77] : memref<144xf32, #tpu.memory_space<smem>>
    %447 = vector.broadcast %446 : f32 to vector<8x16xf32>
    %448 = arith.mulf %325, %447 : vector<8x16xf32>
    %449 = arith.addf %445, %448 : vector<8x16xf32>
    %c1_177 = arith.constant 1 : index
    %c0_178 = arith.constant 0 : index
    %c0_179 = arith.constant 0 : index
    %450 = vector.load %arg8[%c1_177, %c0_178, %c0_179] : memref<4x8x16xf32, #tpu.memory_space<vmem>>, vector<1x8x16xf32>
    %451 = vector.shape_cast %450 : vector<1x8x16xf32> to vector<8x16xf32>
    %452 = arith.addf %451, %449 : vector<8x16xf32>
    %c1_180 = arith.constant 1 : index
    %c0_181 = arith.constant 0 : index
    %c0_182 = arith.constant 0 : index
    %453 = vector.load %arg8[%c1_180, %c0_181, %c0_182] : memref<4x8x16xf32, #tpu.memory_space<vmem>>, vector<1x8x16xf32>
    %454 = vector.shape_cast %453 : vector<1x8x16xf32> to vector<8x16xf32>
    %455 = vector.shape_cast %452 : vector<8x16xf32> to vector<1x8x16xf32>
    tpu.vector_store %arg8[%c1_180, %c0_181, %c0_182], %455 {strides = array<i32>} : memref<4x8x16xf32, #tpu.memory_space<vmem>>, vector<1x8x16xf32>,
    %c66 = arith.constant 66 : index
    %456 = memref.load %arg5[%c66] : memref<144xf32, #tpu.memory_space<smem>>
    %457 = vector.broadcast %456 : f32 to vector<8x16xf32>
    %458 = arith.mulf %319, %457 : vector<8x16xf32>
    %c70 = arith.constant 70 : index
    %459 = memref.load %arg5[%c70] : memref<144xf32, #tpu.memory_space<smem>>
    %460 = vector.broadcast %459 : f32 to vector<8x16xf32>
    %461 = arith.mulf %321, %460 : vector<8x16xf32>
    %462 = arith.addf %458, %461 : vector<8x16xf32>
    %c74 = arith.constant 74 : index
    %463 = memref.load %arg5[%c74] : memref<144xf32, #tpu.memory_space<smem>>
    %464 = vector.broadcast %463 : f32 to vector<8x16xf32>
    %465 = arith.mulf %323, %464 : vector<8x16xf32>
    %466 = arith.addf %462, %465 : vector<8x16xf32>
    %c78 = arith.constant 78 : index
    %467 = memref.load %arg5[%c78] : memref<144xf32, #tpu.memory_space<smem>>
    %468 = vector.broadcast %467 : f32 to vector<8x16xf32>
    %469 = arith.mulf %325, %468 : vector<8x16xf32>
    %470 = arith.addf %466, %469 : vector<8x16xf32>
    %c2_183 = arith.constant 2 : index
    %c0_184 = arith.constant 0 : index
    %c0_185 = arith.constant 0 : index
    %471 = vector.load %arg8[%c2_183, %c0_184, %c0_185] : memref<4x8x16xf32, #tpu.memory_space<vmem>>, vector<1x8x16xf32>
    %472 = vector.shape_cast %471 : vector<1x8x16xf32> to vector<8x16xf32>
    %473 = arith.addf %472, %470 : vector<8x16xf32>
    %c2_186 = arith.constant 2 : index
    %c0_187 = arith.constant 0 : index
    %c0_188 = arith.constant 0 : index
    %474 = vector.load %arg8[%c2_186, %c0_187, %c0_188] : memref<4x8x16xf32, #tpu.memory_space<vmem>>, vector<1x8x16xf32>
    %475 = vector.shape_cast %474 : vector<1x8x16xf32> to vector<8x16xf32>
    %476 = vector.shape_cast %473 : vector<8x16xf32> to vector<1x8x16xf32>
    tpu.vector_store %arg8[%c2_186, %c0_187, %c0_188], %476 {strides = array<i32>} : memref<4x8x16xf32, #tpu.memory_space<vmem>>, vector<1x8x16xf32>,
    %c67 = arith.constant 67 : index
    %477 = memref.load %arg5[%c67] : memref<144xf32, #tpu.memory_space<smem>>
    %478 = vector.broadcast %477 : f32 to vector<8x16xf32>
    %479 = arith.mulf %319, %478 : vector<8x16xf32>
    %c71 = arith.constant 71 : index
    %480 = memref.load %arg5[%c71] : memref<144xf32, #tpu.memory_space<smem>>
    %481 = vector.broadcast %480 : f32 to vector<8x16xf32>
    %482 = arith.mulf %321, %481 : vector<8x16xf32>
    %483 = arith.addf %479, %482 : vector<8x16xf32>
    %c75 = arith.constant 75 : index
    %484 = memref.load %arg5[%c75] : memref<144xf32, #tpu.memory_space<smem>>
    %485 = vector.broadcast %484 : f32 to vector<8x16xf32>
    %486 = arith.mulf %323, %485 : vector<8x16xf32>
    %487 = arith.addf %483, %486 : vector<8x16xf32>
    %c79 = arith.constant 79 : index
    %488 = memref.load %arg5[%c79] : memref<144xf32, #tpu.memory_space<smem>>
    %489 = vector.broadcast %488 : f32 to vector<8x16xf32>
    %490 = arith.mulf %325, %489 : vector<8x16xf32>
    %491 = arith.addf %487, %490 : vector<8x16xf32>
    %c3_189 = arith.constant 3 : index
    %c0_190 = arith.constant 0 : index
    %c0_191 = arith.constant 0 : index
    %492 = vector.load %arg8[%c3_189, %c0_190, %c0_191] : memref<4x8x16xf32, #tpu.memory_space<vmem>>, vector<1x8x16xf32>
    %493 = vector.shape_cast %492 : vector<1x8x16xf32> to vector<8x16xf32>
    %494 = arith.addf %493, %491 : vector<8x16xf32>
    %c3_192 = arith.constant 3 : index
    %c0_193 = arith.constant 0 : index
    %c0_194 = arith.constant 0 : index
    %495 = vector.load %arg8[%c3_192, %c0_193, %c0_194] : memref<4x8x16xf32, #tpu.memory_space<vmem>>, vector<1x8x16xf32>
    %496 = vector.shape_cast %495 : vector<1x8x16xf32> to vector<8x16xf32>
    %497 = vector.shape_cast %494 : vector<8x16xf32> to vector<1x8x16xf32>
    tpu.vector_store %arg8[%c3_192, %c0_193, %c0_194], %497 {strides = array<i32>} : memref<4x8x16xf32, #tpu.memory_space<vmem>>, vector<1x8x16xf32>,
    %c15_i32_195 = arith.constant 15 : i32
    %498 = tpu.dynamic_rotate %319 by %c15_i32_195 dim 1 : vector<8x16xf32>, i32 -> vector<8x16xf32>
    %c15_i32_196 = arith.constant 15 : i32
    %499 = tpu.dynamic_rotate %321 by %c15_i32_196 dim 1 : vector<8x16xf32>, i32 -> vector<8x16xf32>
    %c15_i32_197 = arith.constant 15 : i32
    %500 = tpu.dynamic_rotate %323 by %c15_i32_197 dim 1 : vector<8x16xf32>, i32 -> vector<8x16xf32>
    %c15_i32_198 = arith.constant 15 : i32
    %501 = tpu.dynamic_rotate %325 by %c15_i32_198 dim 1 : vector<8x16xf32>, i32 -> vector<8x16xf32>
    %c80 = arith.constant 80 : index
    %502 = memref.load %arg5[%c80] : memref<144xf32, #tpu.memory_space<smem>>
    %503 = vector.broadcast %502 : f32 to vector<8x16xf32>
    %504 = arith.mulf %498, %503 : vector<8x16xf32>
    %c84 = arith.constant 84 : index
    %505 = memref.load %arg5[%c84] : memref<144xf32, #tpu.memory_space<smem>>
    %506 = vector.broadcast %505 : f32 to vector<8x16xf32>
    %507 = arith.mulf %499, %506 : vector<8x16xf32>
    %508 = arith.addf %504, %507 : vector<8x16xf32>
    %c88 = arith.constant 88 : index
    %509 = memref.load %arg5[%c88] : memref<144xf32, #tpu.memory_space<smem>>
    %510 = vector.broadcast %509 : f32 to vector<8x16xf32>
    %511 = arith.mulf %500, %510 : vector<8x16xf32>
    %512 = arith.addf %508, %511 : vector<8x16xf32>
    %c92 = arith.constant 92 : index
    %513 = memref.load %arg5[%c92] : memref<144xf32, #tpu.memory_space<smem>>
    %514 = vector.broadcast %513 : f32 to vector<8x16xf32>
    %515 = arith.mulf %501, %514 : vector<8x16xf32>
    %516 = arith.addf %512, %515 : vector<8x16xf32>
    %c0_199 = arith.constant 0 : index
    %c0_200 = arith.constant 0 : index
    %c0_201 = arith.constant 0 : index
    %517 = vector.load %arg8[%c0_199, %c0_200, %c0_201] : memref<4x8x16xf32, #tpu.memory_space<vmem>>, vector<1x8x16xf32>
    %518 = vector.shape_cast %517 : vector<1x8x16xf32> to vector<8x16xf32>
    %519 = arith.addf %518, %516 : vector<8x16xf32>
    %c0_202 = arith.constant 0 : index
    %c0_203 = arith.constant 0 : index
    %c0_204 = arith.constant 0 : index
    %520 = vector.load %arg8[%c0_202, %c0_203, %c0_204] : memref<4x8x16xf32, #tpu.memory_space<vmem>>, vector<1x8x16xf32>
    %521 = vector.shape_cast %520 : vector<1x8x16xf32> to vector<8x16xf32>
    %522 = vector.shape_cast %519 : vector<8x16xf32> to vector<1x8x16xf32>
    tpu.vector_store %arg8[%c0_202, %c0_203, %c0_204], %522 {strides = array<i32>} : memref<4x8x16xf32, #tpu.memory_space<vmem>>, vector<1x8x16xf32>,
    %c81 = arith.constant 81 : index
    %523 = memref.load %arg5[%c81] : memref<144xf32, #tpu.memory_space<smem>>
    %524 = vector.broadcast %523 : f32 to vector<8x16xf32>
    %525 = arith.mulf %498, %524 : vector<8x16xf32>
    %c85 = arith.constant 85 : index
    %526 = memref.load %arg5[%c85] : memref<144xf32, #tpu.memory_space<smem>>
    %527 = vector.broadcast %526 : f32 to vector<8x16xf32>
    %528 = arith.mulf %499, %527 : vector<8x16xf32>
    %529 = arith.addf %525, %528 : vector<8x16xf32>
    %c89 = arith.constant 89 : index
    %530 = memref.load %arg5[%c89] : memref<144xf32, #tpu.memory_space<smem>>
    %531 = vector.broadcast %530 : f32 to vector<8x16xf32>
    %532 = arith.mulf %500, %531 : vector<8x16xf32>
    %533 = arith.addf %529, %532 : vector<8x16xf32>
    %c93 = arith.constant 93 : index
    %534 = memref.load %arg5[%c93] : memref<144xf32, #tpu.memory_space<smem>>
    %535 = vector.broadcast %534 : f32 to vector<8x16xf32>
    %536 = arith.mulf %501, %535 : vector<8x16xf32>
    %537 = arith.addf %533, %536 : vector<8x16xf32>
    %c1_205 = arith.constant 1 : index
    %c0_206 = arith.constant 0 : index
    %c0_207 = arith.constant 0 : index
    %538 = vector.load %arg8[%c1_205, %c0_206, %c0_207] : memref<4x8x16xf32, #tpu.memory_space<vmem>>, vector<1x8x16xf32>
    %539 = vector.shape_cast %538 : vector<1x8x16xf32> to vector<8x16xf32>
    %540 = arith.addf %539, %537 : vector<8x16xf32>
    %c1_208 = arith.constant 1 : index
    %c0_209 = arith.constant 0 : index
    %c0_210 = arith.constant 0 : index
    %541 = vector.load %arg8[%c1_208, %c0_209, %c0_210] : memref<4x8x16xf32, #tpu.memory_space<vmem>>, vector<1x8x16xf32>
    %542 = vector.shape_cast %541 : vector<1x8x16xf32> to vector<8x16xf32>
    %543 = vector.shape_cast %540 : vector<8x16xf32> to vector<1x8x16xf32>
    tpu.vector_store %arg8[%c1_208, %c0_209, %c0_210], %543 {strides = array<i32>} : memref<4x8x16xf32, #tpu.memory_space<vmem>>, vector<1x8x16xf32>,
    %c82 = arith.constant 82 : index
    %544 = memref.load %arg5[%c82] : memref<144xf32, #tpu.memory_space<smem>>
    %545 = vector.broadcast %544 : f32 to vector<8x16xf32>
    %546 = arith.mulf %498, %545 : vector<8x16xf32>
    %c86 = arith.constant 86 : index
    %547 = memref.load %arg5[%c86] : memref<144xf32, #tpu.memory_space<smem>>
    %548 = vector.broadcast %547 : f32 to vector<8x16xf32>
    %549 = arith.mulf %499, %548 : vector<8x16xf32>
    %550 = arith.addf %546, %549 : vector<8x16xf32>
    %c90 = arith.constant 90 : index
    %551 = memref.load %arg5[%c90] : memref<144xf32, #tpu.memory_space<smem>>
    %552 = vector.broadcast %551 : f32 to vector<8x16xf32>
    %553 = arith.mulf %500, %552 : vector<8x16xf32>
    %554 = arith.addf %550, %553 : vector<8x16xf32>
    %c94 = arith.constant 94 : index
    %555 = memref.load %arg5[%c94] : memref<144xf32, #tpu.memory_space<smem>>
    %556 = vector.broadcast %555 : f32 to vector<8x16xf32>
    %557 = arith.mulf %501, %556 : vector<8x16xf32>
    %558 = arith.addf %554, %557 : vector<8x16xf32>
    %c2_211 = arith.constant 2 : index
    %c0_212 = arith.constant 0 : index
    %c0_213 = arith.constant 0 : index
    %559 = vector.load %arg8[%c2_211, %c0_212, %c0_213] : memref<4x8x16xf32, #tpu.memory_space<vmem>>, vector<1x8x16xf32>
    %560 = vector.shape_cast %559 : vector<1x8x16xf32> to vector<8x16xf32>
    %561 = arith.addf %560, %558 : vector<8x16xf32>
    %c2_214 = arith.constant 2 : index
    %c0_215 = arith.constant 0 : index
    %c0_216 = arith.constant 0 : index
    %562 = vector.load %arg8[%c2_214, %c0_215, %c0_216] : memref<4x8x16xf32, #tpu.memory_space<vmem>>, vector<1x8x16xf32>
    %563 = vector.shape_cast %562 : vector<1x8x16xf32> to vector<8x16xf32>
    %564 = vector.shape_cast %561 : vector<8x16xf32> to vector<1x8x16xf32>
    tpu.vector_store %arg8[%c2_214, %c0_215, %c0_216], %564 {strides = array<i32>} : memref<4x8x16xf32, #tpu.memory_space<vmem>>, vector<1x8x16xf32>,
    %c83 = arith.constant 83 : index
    %565 = memref.load %arg5[%c83] : memref<144xf32, #tpu.memory_space<smem>>
    %566 = vector.broadcast %565 : f32 to vector<8x16xf32>
    %567 = arith.mulf %498, %566 : vector<8x16xf32>
    %c87 = arith.constant 87 : index
    %568 = memref.load %arg5[%c87] : memref<144xf32, #tpu.memory_space<smem>>
    %569 = vector.broadcast %568 : f32 to vector<8x16xf32>
    %570 = arith.mulf %499, %569 : vector<8x16xf32>
    %571 = arith.addf %567, %570 : vector<8x16xf32>
    %c91 = arith.constant 91 : index
    %572 = memref.load %arg5[%c91] : memref<144xf32, #tpu.memory_space<smem>>
    %573 = vector.broadcast %572 : f32 to vector<8x16xf32>
    %574 = arith.mulf %500, %573 : vector<8x16xf32>
    %575 = arith.addf %571, %574 : vector<8x16xf32>
    %c95 = arith.constant 95 : index
    %576 = memref.load %arg5[%c95] : memref<144xf32, #tpu.memory_space<smem>>
    %577 = vector.broadcast %576 : f32 to vector<8x16xf32>
    %578 = arith.mulf %501, %577 : vector<8x16xf32>
    %579 = arith.addf %575, %578 : vector<8x16xf32>
    %c3_217 = arith.constant 3 : index
    %c0_218 = arith.constant 0 : index
    %c0_219 = arith.constant 0 : index
    %580 = vector.load %arg8[%c3_217, %c0_218, %c0_219] : memref<4x8x16xf32, #tpu.memory_space<vmem>>, vector<1x8x16xf32>
    %581 = vector.shape_cast %580 : vector<1x8x16xf32> to vector<8x16xf32>
    %582 = arith.addf %581, %579 : vector<8x16xf32>
    %c3_220 = arith.constant 3 : index
    %c0_221 = arith.constant 0 : index
    %c0_222 = arith.constant 0 : index
    %583 = vector.load %arg8[%c3_220, %c0_221, %c0_222] : memref<4x8x16xf32, #tpu.memory_space<vmem>>, vector<1x8x16xf32>
    %584 = vector.shape_cast %583 : vector<1x8x16xf32> to vector<8x16xf32>
    %585 = vector.shape_cast %582 : vector<8x16xf32> to vector<1x8x16xf32>
    tpu.vector_store %arg8[%c3_220, %c0_221, %c0_222], %585 {strides = array<i32>} : memref<4x8x16xf32, #tpu.memory_space<vmem>>, vector<1x8x16xf32>,
    %c0_223 = arith.constant 0 : index
    %c0_224 = arith.constant 0 : index
    %c0_225 = arith.constant 0 : index
    %c0_226 = arith.constant 0 : index
    %586 = vector.load %arg2[%c0_223, %c0_224, %c0_225, %c0_226] : memref<1x4x8x16xf32, #tpu.memory_space<vmem>>, vector<1x1x8x16xf32>
    %587 = vector.shape_cast %586 : vector<1x1x8x16xf32> to vector<8x16xf32>
    %c0_227 = arith.constant 0 : index
    %c0_228 = arith.constant 0 : index
    %c0_229 = arith.constant 0 : index
    %c0_230 = arith.constant 0 : index
    %588 = vector.load %arg4[%c0_227, %c0_228, %c0_229, %c0_230] : memref<1x4x8x16xf32, #tpu.memory_space<vmem>>, vector<1x1x1x16xf32>
    %589 = vector.shape_cast %588 : vector<1x1x1x16xf32> to vector<1x16xf32>
    %590 = vector.broadcast %5 : f32 to vector<1x16xf32>
    %591 = arith.mulf %589, %590 : vector<1x16xf32>
    %592 = vector.extract_strided_slice %587 {offsets = [1, 0], sizes = [7, 16], strides = [1, 1]} : vector<8x16xf32> to vector<7x16xf32>
    %593 = tpu.concatenate %592, %591 in 0 : vector<7x16xf32>, vector<1x16xf32> -> vector<8x16xf32>
    %c0_231 = arith.constant 0 : index
    %c1_232 = arith.constant 1 : index
    %c0_233 = arith.constant 0 : index
    %c0_234 = arith.constant 0 : index
    %594 = vector.load %arg2[%c0_231, %c1_232, %c0_233, %c0_234] : memref<1x4x8x16xf32, #tpu.memory_space<vmem>>, vector<1x1x8x16xf32>
    %595 = vector.shape_cast %594 : vector<1x1x8x16xf32> to vector<8x16xf32>
    %c0_235 = arith.constant 0 : index
    %c1_236 = arith.constant 1 : index
    %c0_237 = arith.constant 0 : index
    %c0_238 = arith.constant 0 : index
    %596 = vector.load %arg4[%c0_235, %c1_236, %c0_237, %c0_238] : memref<1x4x8x16xf32, #tpu.memory_space<vmem>>, vector<1x1x1x16xf32>
    %597 = vector.shape_cast %596 : vector<1x1x1x16xf32> to vector<1x16xf32>
    %598 = vector.broadcast %5 : f32 to vector<1x16xf32>
    %599 = arith.mulf %597, %598 : vector<1x16xf32>
    %600 = vector.extract_strided_slice %595 {offsets = [1, 0], sizes = [7, 16], strides = [1, 1]} : vector<8x16xf32> to vector<7x16xf32>
    %601 = tpu.concatenate %600, %599 in 0 : vector<7x16xf32>, vector<1x16xf32> -> vector<8x16xf32>
    %c0_239 = arith.constant 0 : index
    %c2_240 = arith.constant 2 : index
    %c0_241 = arith.constant 0 : index
    %c0_242 = arith.constant 0 : index
    %602 = vector.load %arg2[%c0_239, %c2_240, %c0_241, %c0_242] : memref<1x4x8x16xf32, #tpu.memory_space<vmem>>, vector<1x1x8x16xf32>
    %603 = vector.shape_cast %602 : vector<1x1x8x16xf32> to vector<8x16xf32>
    %c0_243 = arith.constant 0 : index
    %c2_244 = arith.constant 2 : index
    %c0_245 = arith.constant 0 : index
    %c0_246 = arith.constant 0 : index
    %604 = vector.load %arg4[%c0_243, %c2_244, %c0_245, %c0_246] : memref<1x4x8x16xf32, #tpu.memory_space<vmem>>, vector<1x1x1x16xf32>
    %605 = vector.shape_cast %604 : vector<1x1x1x16xf32> to vector<1x16xf32>
    %606 = vector.broadcast %5 : f32 to vector<1x16xf32>
    %607 = arith.mulf %605, %606 : vector<1x16xf32>
    %608 = vector.extract_strided_slice %603 {offsets = [1, 0], sizes = [7, 16], strides = [1, 1]} : vector<8x16xf32> to vector<7x16xf32>
    %609 = tpu.concatenate %608, %607 in 0 : vector<7x16xf32>, vector<1x16xf32> -> vector<8x16xf32>
    %c0_247 = arith.constant 0 : index
    %c3_248 = arith.constant 3 : index
    %c0_249 = arith.constant 0 : index
    %c0_250 = arith.constant 0 : index
    %610 = vector.load %arg2[%c0_247, %c3_248, %c0_249, %c0_250] : memref<1x4x8x16xf32, #tpu.memory_space<vmem>>, vector<1x1x8x16xf32>
    %611 = vector.shape_cast %610 : vector<1x1x8x16xf32> to vector<8x16xf32>
    %c0_251 = arith.constant 0 : index
    %c3_252 = arith.constant 3 : index
    %c0_253 = arith.constant 0 : index
    %c0_254 = arith.constant 0 : index
    %612 = vector.load %arg4[%c0_251, %c3_252, %c0_253, %c0_254] : memref<1x4x8x16xf32, #tpu.memory_space<vmem>>, vector<1x1x1x16xf32>
    %613 = vector.shape_cast %612 : vector<1x1x1x16xf32> to vector<1x16xf32>
    %614 = vector.broadcast %5 : f32 to vector<1x16xf32>
    %615 = arith.mulf %613, %614 : vector<1x16xf32>
    %616 = vector.extract_strided_slice %611 {offsets = [1, 0], sizes = [7, 16], strides = [1, 1]} : vector<8x16xf32> to vector<7x16xf32>
    %617 = tpu.concatenate %616, %615 in 0 : vector<7x16xf32>, vector<1x16xf32> -> vector<8x16xf32>
    %c1_i32_255 = arith.constant 1 : i32
    %618 = tpu.dynamic_rotate %593 by %c1_i32_255 dim 1 : vector<8x16xf32>, i32 -> vector<8x16xf32>
    %c1_i32_256 = arith.constant 1 : i32
    %619 = tpu.dynamic_rotate %601 by %c1_i32_256 dim 1 : vector<8x16xf32>, i32 -> vector<8x16xf32>
    %c1_i32_257 = arith.constant 1 : i32
    %620 = tpu.dynamic_rotate %609 by %c1_i32_257 dim 1 : vector<8x16xf32>, i32 -> vector<8x16xf32>
    %c1_i32_258 = arith.constant 1 : i32
    %621 = tpu.dynamic_rotate %617 by %c1_i32_258 dim 1 : vector<8x16xf32>, i32 -> vector<8x16xf32>
    %c96 = arith.constant 96 : index
    %622 = memref.load %arg5[%c96] : memref<144xf32, #tpu.memory_space<smem>>
    %623 = vector.broadcast %622 : f32 to vector<8x16xf32>
    %624 = arith.mulf %618, %623 : vector<8x16xf32>
    %c100 = arith.constant 100 : index
    %625 = memref.load %arg5[%c100] : memref<144xf32, #tpu.memory_space<smem>>
    %626 = vector.broadcast %625 : f32 to vector<8x16xf32>
    %627 = arith.mulf %619, %626 : vector<8x16xf32>
    %628 = arith.addf %624, %627 : vector<8x16xf32>
    %c104 = arith.constant 104 : index
    %629 = memref.load %arg5[%c104] : memref<144xf32, #tpu.memory_space<smem>>
    %630 = vector.broadcast %629 : f32 to vector<8x16xf32>
    %631 = arith.mulf %620, %630 : vector<8x16xf32>
    %632 = arith.addf %628, %631 : vector<8x16xf32>
    %c108 = arith.constant 108 : index
    %633 = memref.load %arg5[%c108] : memref<144xf32, #tpu.memory_space<smem>>
    %634 = vector.broadcast %633 : f32 to vector<8x16xf32>
    %635 = arith.mulf %621, %634 : vector<8x16xf32>
    %636 = arith.addf %632, %635 : vector<8x16xf32>
    %c0_259 = arith.constant 0 : index
    %c0_260 = arith.constant 0 : index
    %c0_261 = arith.constant 0 : index
    %637 = vector.load %arg8[%c0_259, %c0_260, %c0_261] : memref<4x8x16xf32, #tpu.memory_space<vmem>>, vector<1x8x16xf32>
    %638 = vector.shape_cast %637 : vector<1x8x16xf32> to vector<8x16xf32>
    %639 = arith.addf %638, %636 : vector<8x16xf32>
    %c0_262 = arith.constant 0 : index
    %c0_263 = arith.constant 0 : index
    %c0_264 = arith.constant 0 : index
    %640 = vector.load %arg8[%c0_262, %c0_263, %c0_264] : memref<4x8x16xf32, #tpu.memory_space<vmem>>, vector<1x8x16xf32>
    %641 = vector.shape_cast %640 : vector<1x8x16xf32> to vector<8x16xf32>
    %642 = vector.shape_cast %639 : vector<8x16xf32> to vector<1x8x16xf32>
    tpu.vector_store %arg8[%c0_262, %c0_263, %c0_264], %642 {strides = array<i32>} : memref<4x8x16xf32, #tpu.memory_space<vmem>>, vector<1x8x16xf32>,
    %c97 = arith.constant 97 : index
    %643 = memref.load %arg5[%c97] : memref<144xf32, #tpu.memory_space<smem>>
    %644 = vector.broadcast %643 : f32 to vector<8x16xf32>
    %645 = arith.mulf %618, %644 : vector<8x16xf32>
    %c101 = arith.constant 101 : index
    %646 = memref.load %arg5[%c101] : memref<144xf32, #tpu.memory_space<smem>>
    %647 = vector.broadcast %646 : f32 to vector<8x16xf32>
    %648 = arith.mulf %619, %647 : vector<8x16xf32>
    %649 = arith.addf %645, %648 : vector<8x16xf32>
    %c105 = arith.constant 105 : index
    %650 = memref.load %arg5[%c105] : memref<144xf32, #tpu.memory_space<smem>>
    %651 = vector.broadcast %650 : f32 to vector<8x16xf32>
    %652 = arith.mulf %620, %651 : vector<8x16xf32>
    %653 = arith.addf %649, %652 : vector<8x16xf32>
    %c109 = arith.constant 109 : index
    %654 = memref.load %arg5[%c109] : memref<144xf32, #tpu.memory_space<smem>>
    %655 = vector.broadcast %654 : f32 to vector<8x16xf32>
    %656 = arith.mulf %621, %655 : vector<8x16xf32>
    %657 = arith.addf %653, %656 : vector<8x16xf32>
    %c1_265 = arith.constant 1 : index
    %c0_266 = arith.constant 0 : index
    %c0_267 = arith.constant 0 : index
    %658 = vector.load %arg8[%c1_265, %c0_266, %c0_267] : memref<4x8x16xf32, #tpu.memory_space<vmem>>, vector<1x8x16xf32>
    %659 = vector.shape_cast %658 : vector<1x8x16xf32> to vector<8x16xf32>
    %660 = arith.addf %659, %657 : vector<8x16xf32>
    %c1_268 = arith.constant 1 : index
    %c0_269 = arith.constant 0 : index
    %c0_270 = arith.constant 0 : index
    %661 = vector.load %arg8[%c1_268, %c0_269, %c0_270] : memref<4x8x16xf32, #tpu.memory_space<vmem>>, vector<1x8x16xf32>
    %662 = vector.shape_cast %661 : vector<1x8x16xf32> to vector<8x16xf32>
    %663 = vector.shape_cast %660 : vector<8x16xf32> to vector<1x8x16xf32>
    tpu.vector_store %arg8[%c1_268, %c0_269, %c0_270], %663 {strides = array<i32>} : memref<4x8x16xf32, #tpu.memory_space<vmem>>, vector<1x8x16xf32>,
    %c98 = arith.constant 98 : index
    %664 = memref.load %arg5[%c98] : memref<144xf32, #tpu.memory_space<smem>>
    %665 = vector.broadcast %664 : f32 to vector<8x16xf32>
    %666 = arith.mulf %618, %665 : vector<8x16xf32>
    %c102 = arith.constant 102 : index
    %667 = memref.load %arg5[%c102] : memref<144xf32, #tpu.memory_space<smem>>
    %668 = vector.broadcast %667 : f32 to vector<8x16xf32>
    %669 = arith.mulf %619, %668 : vector<8x16xf32>
    %670 = arith.addf %666, %669 : vector<8x16xf32>
    %c106 = arith.constant 106 : index
    %671 = memref.load %arg5[%c106] : memref<144xf32, #tpu.memory_space<smem>>
    %672 = vector.broadcast %671 : f32 to vector<8x16xf32>
    %673 = arith.mulf %620, %672 : vector<8x16xf32>
    %674 = arith.addf %670, %673 : vector<8x16xf32>
    %c110 = arith.constant 110 : index
    %675 = memref.load %arg5[%c110] : memref<144xf32, #tpu.memory_space<smem>>
    %676 = vector.broadcast %675 : f32 to vector<8x16xf32>
    %677 = arith.mulf %621, %676 : vector<8x16xf32>
    %678 = arith.addf %674, %677 : vector<8x16xf32>
    %c2_271 = arith.constant 2 : index
    %c0_272 = arith.constant 0 : index
    %c0_273 = arith.constant 0 : index
    %679 = vector.load %arg8[%c2_271, %c0_272, %c0_273] : memref<4x8x16xf32, #tpu.memory_space<vmem>>, vector<1x8x16xf32>
    %680 = vector.shape_cast %679 : vector<1x8x16xf32> to vector<8x16xf32>
    %681 = arith.addf %680, %678 : vector<8x16xf32>
    %c2_274 = arith.constant 2 : index
    %c0_275 = arith.constant 0 : index
    %c0_276 = arith.constant 0 : index
    %682 = vector.load %arg8[%c2_274, %c0_275, %c0_276] : memref<4x8x16xf32, #tpu.memory_space<vmem>>, vector<1x8x16xf32>
    %683 = vector.shape_cast %682 : vector<1x8x16xf32> to vector<8x16xf32>
    %684 = vector.shape_cast %681 : vector<8x16xf32> to vector<1x8x16xf32>
    tpu.vector_store %arg8[%c2_274, %c0_275, %c0_276], %684 {strides = array<i32>} : memref<4x8x16xf32, #tpu.memory_space<vmem>>, vector<1x8x16xf32>,
    %c99 = arith.constant 99 : index
    %685 = memref.load %arg5[%c99] : memref<144xf32, #tpu.memory_space<smem>>
    %686 = vector.broadcast %685 : f32 to vector<8x16xf32>
    %687 = arith.mulf %618, %686 : vector<8x16xf32>
    %c103 = arith.constant 103 : index
    %688 = memref.load %arg5[%c103] : memref<144xf32, #tpu.memory_space<smem>>
    %689 = vector.broadcast %688 : f32 to vector<8x16xf32>
    %690 = arith.mulf %619, %689 : vector<8x16xf32>
    %691 = arith.addf %687, %690 : vector<8x16xf32>
    %c107 = arith.constant 107 : index
    %692 = memref.load %arg5[%c107] : memref<144xf32, #tpu.memory_space<smem>>
    %693 = vector.broadcast %692 : f32 to vector<8x16xf32>
    %694 = arith.mulf %620, %693 : vector<8x16xf32>
    %695 = arith.addf %691, %694 : vector<8x16xf32>
    %c111 = arith.constant 111 : index
    %696 = memref.load %arg5[%c111] : memref<144xf32, #tpu.memory_space<smem>>
    %697 = vector.broadcast %696 : f32 to vector<8x16xf32>
    %698 = arith.mulf %621, %697 : vector<8x16xf32>
    %699 = arith.addf %695, %698 : vector<8x16xf32>
    %c3_277 = arith.constant 3 : index
    %c0_278 = arith.constant 0 : index
    %c0_279 = arith.constant 0 : index
    %700 = vector.load %arg8[%c3_277, %c0_278, %c0_279] : memref<4x8x16xf32, #tpu.memory_space<vmem>>, vector<1x8x16xf32>
    %701 = vector.shape_cast %700 : vector<1x8x16xf32> to vector<8x16xf32>
    %702 = arith.addf %701, %699 : vector<8x16xf32>
    %c3_280 = arith.constant 3 : index
    %c0_281 = arith.constant 0 : index
    %c0_282 = arith.constant 0 : index
    %703 = vector.load %arg8[%c3_280, %c0_281, %c0_282] : memref<4x8x16xf32, #tpu.memory_space<vmem>>, vector<1x8x16xf32>
    %704 = vector.shape_cast %703 : vector<1x8x16xf32> to vector<8x16xf32>
    %705 = vector.shape_cast %702 : vector<8x16xf32> to vector<1x8x16xf32>
    tpu.vector_store %arg8[%c3_280, %c0_281, %c0_282], %705 {strides = array<i32>} : memref<4x8x16xf32, #tpu.memory_space<vmem>>, vector<1x8x16xf32>,
    %c112 = arith.constant 112 : index
    %706 = memref.load %arg5[%c112] : memref<144xf32, #tpu.memory_space<smem>>
    %707 = vector.broadcast %706 : f32 to vector<8x16xf32>
    %708 = arith.mulf %593, %707 : vector<8x16xf32>
    %c116 = arith.constant 116 : index
    %709 = memref.load %arg5[%c116] : memref<144xf32, #tpu.memory_space<smem>>
    %710 = vector.broadcast %709 : f32 to vector<8x16xf32>
    %711 = arith.mulf %601, %710 : vector<8x16xf32>
    %712 = arith.addf %708, %711 : vector<8x16xf32>
    %c120 = arith.constant 120 : index
    %713 = memref.load %arg5[%c120] : memref<144xf32, #tpu.memory_space<smem>>
    %714 = vector.broadcast %713 : f32 to vector<8x16xf32>
    %715 = arith.mulf %609, %714 : vector<8x16xf32>
    %716 = arith.addf %712, %715 : vector<8x16xf32>
    %c124 = arith.constant 124 : index
    %717 = memref.load %arg5[%c124] : memref<144xf32, #tpu.memory_space<smem>>
    %718 = vector.broadcast %717 : f32 to vector<8x16xf32>
    %719 = arith.mulf %617, %718 : vector<8x16xf32>
    %720 = arith.addf %716, %719 : vector<8x16xf32>
    %c0_283 = arith.constant 0 : index
    %c0_284 = arith.constant 0 : index
    %c0_285 = arith.constant 0 : index
    %721 = vector.load %arg8[%c0_283, %c0_284, %c0_285] : memref<4x8x16xf32, #tpu.memory_space<vmem>>, vector<1x8x16xf32>
    %722 = vector.shape_cast %721 : vector<1x8x16xf32> to vector<8x16xf32>
    %723 = arith.addf %722, %720 : vector<8x16xf32>
    %c0_286 = arith.constant 0 : index
    %c0_287 = arith.constant 0 : index
    %c0_288 = arith.constant 0 : index
    %724 = vector.load %arg8[%c0_286, %c0_287, %c0_288] : memref<4x8x16xf32, #tpu.memory_space<vmem>>, vector<1x8x16xf32>
    %725 = vector.shape_cast %724 : vector<1x8x16xf32> to vector<8x16xf32>
    %726 = vector.shape_cast %723 : vector<8x16xf32> to vector<1x8x16xf32>
    tpu.vector_store %arg8[%c0_286, %c0_287, %c0_288], %726 {strides = array<i32>} : memref<4x8x16xf32, #tpu.memory_space<vmem>>, vector<1x8x16xf32>,
    %c113 = arith.constant 113 : index
    %727 = memref.load %arg5[%c113] : memref<144xf32, #tpu.memory_space<smem>>
    %728 = vector.broadcast %727 : f32 to vector<8x16xf32>
    %729 = arith.mulf %593, %728 : vector<8x16xf32>
    %c117 = arith.constant 117 : index
    %730 = memref.load %arg5[%c117] : memref<144xf32, #tpu.memory_space<smem>>
    %731 = vector.broadcast %730 : f32 to vector<8x16xf32>
    %732 = arith.mulf %601, %731 : vector<8x16xf32>
    %733 = arith.addf %729, %732 : vector<8x16xf32>
    %c121 = arith.constant 121 : index
    %734 = memref.load %arg5[%c121] : memref<144xf32, #tpu.memory_space<smem>>
    %735 = vector.broadcast %734 : f32 to vector<8x16xf32>
    %736 = arith.mulf %609, %735 : vector<8x16xf32>
    %737 = arith.addf %733, %736 : vector<8x16xf32>
    %c125 = arith.constant 125 : index
    %738 = memref.load %arg5[%c125] : memref<144xf32, #tpu.memory_space<smem>>
    %739 = vector.broadcast %738 : f32 to vector<8x16xf32>
    %740 = arith.mulf %617, %739 : vector<8x16xf32>
    %741 = arith.addf %737, %740 : vector<8x16xf32>
    %c1_289 = arith.constant 1 : index
    %c0_290 = arith.constant 0 : index
    %c0_291 = arith.constant 0 : index
    %742 = vector.load %arg8[%c1_289, %c0_290, %c0_291] : memref<4x8x16xf32, #tpu.memory_space<vmem>>, vector<1x8x16xf32>
    %743 = vector.shape_cast %742 : vector<1x8x16xf32> to vector<8x16xf32>
    %744 = arith.addf %743, %741 : vector<8x16xf32>
    %c1_292 = arith.constant 1 : index
    %c0_293 = arith.constant 0 : index
    %c0_294 = arith.constant 0 : index
    %745 = vector.load %arg8[%c1_292, %c0_293, %c0_294] : memref<4x8x16xf32, #tpu.memory_space<vmem>>, vector<1x8x16xf32>
    %746 = vector.shape_cast %745 : vector<1x8x16xf32> to vector<8x16xf32>
    %747 = vector.shape_cast %744 : vector<8x16xf32> to vector<1x8x16xf32>
    tpu.vector_store %arg8[%c1_292, %c0_293, %c0_294], %747 {strides = array<i32>} : memref<4x8x16xf32, #tpu.memory_space<vmem>>, vector<1x8x16xf32>,
    %c114 = arith.constant 114 : index
    %748 = memref.load %arg5[%c114] : memref<144xf32, #tpu.memory_space<smem>>
    %749 = vector.broadcast %748 : f32 to vector<8x16xf32>
    %750 = arith.mulf %593, %749 : vector<8x16xf32>
    %c118 = arith.constant 118 : index
    %751 = memref.load %arg5[%c118] : memref<144xf32, #tpu.memory_space<smem>>
    %752 = vector.broadcast %751 : f32 to vector<8x16xf32>
    %753 = arith.mulf %601, %752 : vector<8x16xf32>
    %754 = arith.addf %750, %753 : vector<8x16xf32>
    %c122 = arith.constant 122 : index
    %755 = memref.load %arg5[%c122] : memref<144xf32, #tpu.memory_space<smem>>
    %756 = vector.broadcast %755 : f32 to vector<8x16xf32>
    %757 = arith.mulf %609, %756 : vector<8x16xf32>
    %758 = arith.addf %754, %757 : vector<8x16xf32>
    %c126 = arith.constant 126 : index
    %759 = memref.load %arg5[%c126] : memref<144xf32, #tpu.memory_space<smem>>
    %760 = vector.broadcast %759 : f32 to vector<8x16xf32>
    %761 = arith.mulf %617, %760 : vector<8x16xf32>
    %762 = arith.addf %758, %761 : vector<8x16xf32>
    %c2_295 = arith.constant 2 : index
    %c0_296 = arith.constant 0 : index
    %c0_297 = arith.constant 0 : index
    %763 = vector.load %arg8[%c2_295, %c0_296, %c0_297] : memref<4x8x16xf32, #tpu.memory_space<vmem>>, vector<1x8x16xf32>
    %764 = vector.shape_cast %763 : vector<1x8x16xf32> to vector<8x16xf32>
    %765 = arith.addf %764, %762 : vector<8x16xf32>
    %c2_298 = arith.constant 2 : index
    %c0_299 = arith.constant 0 : index
    %c0_300 = arith.constant 0 : index
    %766 = vector.load %arg8[%c2_298, %c0_299, %c0_300] : memref<4x8x16xf32, #tpu.memory_space<vmem>>, vector<1x8x16xf32>
    %767 = vector.shape_cast %766 : vector<1x8x16xf32> to vector<8x16xf32>
    %768 = vector.shape_cast %765 : vector<8x16xf32> to vector<1x8x16xf32>
    tpu.vector_store %arg8[%c2_298, %c0_299, %c0_300], %768 {strides = array<i32>} : memref<4x8x16xf32, #tpu.memory_space<vmem>>, vector<1x8x16xf32>,
    %c115 = arith.constant 115 : index
    %769 = memref.load %arg5[%c115] : memref<144xf32, #tpu.memory_space<smem>>
    %770 = vector.broadcast %769 : f32 to vector<8x16xf32>
    %771 = arith.mulf %593, %770 : vector<8x16xf32>
    %c119 = arith.constant 119 : index
    %772 = memref.load %arg5[%c119] : memref<144xf32, #tpu.memory_space<smem>>
    %773 = vector.broadcast %772 : f32 to vector<8x16xf32>
    %774 = arith.mulf %601, %773 : vector<8x16xf32>
    %775 = arith.addf %771, %774 : vector<8x16xf32>
    %c123 = arith.constant 123 : index
    %776 = memref.load %arg5[%c123] : memref<144xf32, #tpu.memory_space<smem>>
    %777 = vector.broadcast %776 : f32 to vector<8x16xf32>
    %778 = arith.mulf %609, %777 : vector<8x16xf32>
    %779 = arith.addf %775, %778 : vector<8x16xf32>
    %c127 = arith.constant 127 : index
    %780 = memref.load %arg5[%c127] : memref<144xf32, #tpu.memory_space<smem>>
    %781 = vector.broadcast %780 : f32 to vector<8x16xf32>
    %782 = arith.mulf %617, %781 : vector<8x16xf32>
    %783 = arith.addf %779, %782 : vector<8x16xf32>
    %c3_301 = arith.constant 3 : index
    %c0_302 = arith.constant 0 : index
    %c0_303 = arith.constant 0 : index
    %784 = vector.load %arg8[%c3_301, %c0_302, %c0_303] : memref<4x8x16xf32, #tpu.memory_space<vmem>>, vector<1x8x16xf32>
    %785 = vector.shape_cast %784 : vector<1x8x16xf32> to vector<8x16xf32>
    %786 = arith.addf %785, %783 : vector<8x16xf32>
    %c3_304 = arith.constant 3 : index
    %c0_305 = arith.constant 0 : index
    %c0_306 = arith.constant 0 : index
    %787 = vector.load %arg8[%c3_304, %c0_305, %c0_306] : memref<4x8x16xf32, #tpu.memory_space<vmem>>, vector<1x8x16xf32>
    %788 = vector.shape_cast %787 : vector<1x8x16xf32> to vector<8x16xf32>
    %789 = vector.shape_cast %786 : vector<8x16xf32> to vector<1x8x16xf32>
    tpu.vector_store %arg8[%c3_304, %c0_305, %c0_306], %789 {strides = array<i32>} : memref<4x8x16xf32, #tpu.memory_space<vmem>>, vector<1x8x16xf32>,
    %c15_i32_307 = arith.constant 15 : i32
    %790 = tpu.dynamic_rotate %593 by %c15_i32_307 dim 1 : vector<8x16xf32>, i32 -> vector<8x16xf32>
    %c15_i32_308 = arith.constant 15 : i32
    %791 = tpu.dynamic_rotate %601 by %c15_i32_308 dim 1 : vector<8x16xf32>, i32 -> vector<8x16xf32>
    %c15_i32_309 = arith.constant 15 : i32
    %792 = tpu.dynamic_rotate %609 by %c15_i32_309 dim 1 : vector<8x16xf32>, i32 -> vector<8x16xf32>
    %c15_i32_310 = arith.constant 15 : i32
    %793 = tpu.dynamic_rotate %617 by %c15_i32_310 dim 1 : vector<8x16xf32>, i32 -> vector<8x16xf32>
    %c128 = arith.constant 128 : index
    %794 = memref.load %arg5[%c128] : memref<144xf32, #tpu.memory_space<smem>>
    %795 = vector.broadcast %794 : f32 to vector<8x16xf32>
    %796 = arith.mulf %790, %795 : vector<8x16xf32>
    %c132 = arith.constant 132 : index
    %797 = memref.load %arg5[%c132] : memref<144xf32, #tpu.memory_space<smem>>
    %798 = vector.broadcast %797 : f32 to vector<8x16xf32>
    %799 = arith.mulf %791, %798 : vector<8x16xf32>
    %800 = arith.addf %796, %799 : vector<8x16xf32>
    %c136 = arith.constant 136 : index
    %801 = memref.load %arg5[%c136] : memref<144xf32, #tpu.memory_space<smem>>
    %802 = vector.broadcast %801 : f32 to vector<8x16xf32>
    %803 = arith.mulf %792, %802 : vector<8x16xf32>
    %804 = arith.addf %800, %803 : vector<8x16xf32>
    %c140 = arith.constant 140 : index
    %805 = memref.load %arg5[%c140] : memref<144xf32, #tpu.memory_space<smem>>
    %806 = vector.broadcast %805 : f32 to vector<8x16xf32>
    %807 = arith.mulf %793, %806 : vector<8x16xf32>
    %808 = arith.addf %804, %807 : vector<8x16xf32>
    %c0_311 = arith.constant 0 : index
    %c0_312 = arith.constant 0 : index
    %c0_313 = arith.constant 0 : index
    %809 = vector.load %arg8[%c0_311, %c0_312, %c0_313] : memref<4x8x16xf32, #tpu.memory_space<vmem>>, vector<1x8x16xf32>
    %810 = vector.shape_cast %809 : vector<1x8x16xf32> to vector<8x16xf32>
    %811 = arith.addf %810, %808 : vector<8x16xf32>
    %c0_314 = arith.constant 0 : index
    %c0_315 = arith.constant 0 : index
    %c0_316 = arith.constant 0 : index
    %812 = vector.load %arg8[%c0_314, %c0_315, %c0_316] : memref<4x8x16xf32, #tpu.memory_space<vmem>>, vector<1x8x16xf32>
    %813 = vector.shape_cast %812 : vector<1x8x16xf32> to vector<8x16xf32>
    %814 = vector.shape_cast %811 : vector<8x16xf32> to vector<1x8x16xf32>
    tpu.vector_store %arg8[%c0_314, %c0_315, %c0_316], %814 {strides = array<i32>} : memref<4x8x16xf32, #tpu.memory_space<vmem>>, vector<1x8x16xf32>,
    %c129 = arith.constant 129 : index
    %815 = memref.load %arg5[%c129] : memref<144xf32, #tpu.memory_space<smem>>
    %816 = vector.broadcast %815 : f32 to vector<8x16xf32>
    %817 = arith.mulf %790, %816 : vector<8x16xf32>
    %c133 = arith.constant 133 : index
    %818 = memref.load %arg5[%c133] : memref<144xf32, #tpu.memory_space<smem>>
    %819 = vector.broadcast %818 : f32 to vector<8x16xf32>
    %820 = arith.mulf %791, %819 : vector<8x16xf32>
    %821 = arith.addf %817, %820 : vector<8x16xf32>
    %c137 = arith.constant 137 : index
    %822 = memref.load %arg5[%c137] : memref<144xf32, #tpu.memory_space<smem>>
    %823 = vector.broadcast %822 : f32 to vector<8x16xf32>
    %824 = arith.mulf %792, %823 : vector<8x16xf32>
    %825 = arith.addf %821, %824 : vector<8x16xf32>
    %c141 = arith.constant 141 : index
    %826 = memref.load %arg5[%c141] : memref<144xf32, #tpu.memory_space<smem>>
    %827 = vector.broadcast %826 : f32 to vector<8x16xf32>
    %828 = arith.mulf %793, %827 : vector<8x16xf32>
    %829 = arith.addf %825, %828 : vector<8x16xf32>
    %c1_317 = arith.constant 1 : index
    %c0_318 = arith.constant 0 : index
    %c0_319 = arith.constant 0 : index
    %830 = vector.load %arg8[%c1_317, %c0_318, %c0_319] : memref<4x8x16xf32, #tpu.memory_space<vmem>>, vector<1x8x16xf32>
    %831 = vector.shape_cast %830 : vector<1x8x16xf32> to vector<8x16xf32>
    %832 = arith.addf %831, %829 : vector<8x16xf32>
    %c1_320 = arith.constant 1 : index
    %c0_321 = arith.constant 0 : index
    %c0_322 = arith.constant 0 : index
    %833 = vector.load %arg8[%c1_320, %c0_321, %c0_322] : memref<4x8x16xf32, #tpu.memory_space<vmem>>, vector<1x8x16xf32>
    %834 = vector.shape_cast %833 : vector<1x8x16xf32> to vector<8x16xf32>
    %835 = vector.shape_cast %832 : vector<8x16xf32> to vector<1x8x16xf32>
    tpu.vector_store %arg8[%c1_320, %c0_321, %c0_322], %835 {strides = array<i32>} : memref<4x8x16xf32, #tpu.memory_space<vmem>>, vector<1x8x16xf32>,
    %c130 = arith.constant 130 : index
    %836 = memref.load %arg5[%c130] : memref<144xf32, #tpu.memory_space<smem>>
    %837 = vector.broadcast %836 : f32 to vector<8x16xf32>
    %838 = arith.mulf %790, %837 : vector<8x16xf32>
    %c134 = arith.constant 134 : index
    %839 = memref.load %arg5[%c134] : memref<144xf32, #tpu.memory_space<smem>>
    %840 = vector.broadcast %839 : f32 to vector<8x16xf32>
    %841 = arith.mulf %791, %840 : vector<8x16xf32>
    %842 = arith.addf %838, %841 : vector<8x16xf32>
    %c138 = arith.constant 138 : index
    %843 = memref.load %arg5[%c138] : memref<144xf32, #tpu.memory_space<smem>>
    %844 = vector.broadcast %843 : f32 to vector<8x16xf32>
    %845 = arith.mulf %792, %844 : vector<8x16xf32>
    %846 = arith.addf %842, %845 : vector<8x16xf32>
    %c142 = arith.constant 142 : index
    %847 = memref.load %arg5[%c142] : memref<144xf32, #tpu.memory_space<smem>>
    %848 = vector.broadcast %847 : f32 to vector<8x16xf32>
    %849 = arith.mulf %793, %848 : vector<8x16xf32>
    %850 = arith.addf %846, %849 : vector<8x16xf32>
    %c2_323 = arith.constant 2 : index
    %c0_324 = arith.constant 0 : index
    %c0_325 = arith.constant 0 : index
    %851 = vector.load %arg8[%c2_323, %c0_324, %c0_325] : memref<4x8x16xf32, #tpu.memory_space<vmem>>, vector<1x8x16xf32>
    %852 = vector.shape_cast %851 : vector<1x8x16xf32> to vector<8x16xf32>
    %853 = arith.addf %852, %850 : vector<8x16xf32>
    %c2_326 = arith.constant 2 : index
    %c0_327 = arith.constant 0 : index
    %c0_328 = arith.constant 0 : index
    %854 = vector.load %arg8[%c2_326, %c0_327, %c0_328] : memref<4x8x16xf32, #tpu.memory_space<vmem>>, vector<1x8x16xf32>
    %855 = vector.shape_cast %854 : vector<1x8x16xf32> to vector<8x16xf32>
    %856 = vector.shape_cast %853 : vector<8x16xf32> to vector<1x8x16xf32>
    tpu.vector_store %arg8[%c2_326, %c0_327, %c0_328], %856 {strides = array<i32>} : memref<4x8x16xf32, #tpu.memory_space<vmem>>, vector<1x8x16xf32>,
    %c131 = arith.constant 131 : index
    %857 = memref.load %arg5[%c131] : memref<144xf32, #tpu.memory_space<smem>>
    %858 = vector.broadcast %857 : f32 to vector<8x16xf32>
    %859 = arith.mulf %790, %858 : vector<8x16xf32>
    %c135 = arith.constant 135 : index
    %860 = memref.load %arg5[%c135] : memref<144xf32, #tpu.memory_space<smem>>
    %861 = vector.broadcast %860 : f32 to vector<8x16xf32>
    %862 = arith.mulf %791, %861 : vector<8x16xf32>
    %863 = arith.addf %859, %862 : vector<8x16xf32>
    %c139 = arith.constant 139 : index
    %864 = memref.load %arg5[%c139] : memref<144xf32, #tpu.memory_space<smem>>
    %865 = vector.broadcast %864 : f32 to vector<8x16xf32>
    %866 = arith.mulf %792, %865 : vector<8x16xf32>
    %867 = arith.addf %863, %866 : vector<8x16xf32>
    %c143 = arith.constant 143 : index
    %868 = memref.load %arg5[%c143] : memref<144xf32, #tpu.memory_space<smem>>
    %869 = vector.broadcast %868 : f32 to vector<8x16xf32>
    %870 = arith.mulf %793, %869 : vector<8x16xf32>
    %871 = arith.addf %867, %870 : vector<8x16xf32>
    %c3_329 = arith.constant 3 : index
    %c0_330 = arith.constant 0 : index
    %c0_331 = arith.constant 0 : index
    %872 = vector.load %arg8[%c3_329, %c0_330, %c0_331] : memref<4x8x16xf32, #tpu.memory_space<vmem>>, vector<1x8x16xf32>
    %873 = vector.shape_cast %872 : vector<1x8x16xf32> to vector<8x16xf32>
    %874 = arith.addf %873, %871 : vector<8x16xf32>
    %c3_332 = arith.constant 3 : index
    %c0_333 = arith.constant 0 : index
    %c0_334 = arith.constant 0 : index
    %875 = vector.load %arg8[%c3_332, %c0_333, %c0_334] : memref<4x8x16xf32, #tpu.memory_space<vmem>>, vector<1x8x16xf32>
    %876 = vector.shape_cast %875 : vector<1x8x16xf32> to vector<8x16xf32>
    %877 = vector.shape_cast %874 : vector<8x16xf32> to vector<1x8x16xf32>
    tpu.vector_store %arg8[%c3_332, %c0_333, %c0_334], %877 {strides = array<i32>} : memref<4x8x16xf32, #tpu.memory_space<vmem>>, vector<1x8x16xf32>,
    %c0_335 = arith.constant 0 : index
    %c0_336 = arith.constant 0 : index
    %c0_337 = arith.constant 0 : index
    %878 = vector.load %arg8[%c0_335, %c0_336, %c0_337] : memref<4x8x16xf32, #tpu.memory_space<vmem>>, vector<1x8x16xf32>
    %879 = vector.shape_cast %878 : vector<1x8x16xf32> to vector<8x16xf32>
    %cst = arith.constant 0.000000e+00 : f32
    %880 = vector.broadcast %cst : f32 to vector<8x16xf32>
    %881 = arith.maximumf %879, %880 : vector<8x16xf32>
    %c0_338 = arith.constant 0 : index
    %c0_339 = arith.constant 0 : index
    %c0_340 = arith.constant 0 : index
    %c0_341 = arith.constant 0 : index
    %882 = vector.load %arg7[%c0_338, %c0_339, %c0_340, %c0_341] : memref<1x4x8x16xf32, #tpu.memory_space<vmem>>, vector<1x1x8x16xf32>
    %883 = vector.shape_cast %882 : vector<1x1x8x16xf32> to vector<8x16xf32>
    %884 = vector.shape_cast %881 : vector<8x16xf32> to vector<1x1x8x16xf32>
    tpu.vector_store %arg7[%c0_338, %c0_339, %c0_340, %c0_341], %884 {strides = array<i32>} : memref<1x4x8x16xf32, #tpu.memory_space<vmem>>, vector<1x1x8x16xf32>,
    %c1_342 = arith.constant 1 : index
    %c0_343 = arith.constant 0 : index
    %c0_344 = arith.constant 0 : index
    %885 = vector.load %arg8[%c1_342, %c0_343, %c0_344] : memref<4x8x16xf32, #tpu.memory_space<vmem>>, vector<1x8x16xf32>
    %886 = vector.shape_cast %885 : vector<1x8x16xf32> to vector<8x16xf32>
    %cst_345 = arith.constant 0.000000e+00 : f32
    %887 = vector.broadcast %cst_345 : f32 to vector<8x16xf32>
    %888 = arith.maximumf %886, %887 : vector<8x16xf32>
    %c0_346 = arith.constant 0 : index
    %c1_347 = arith.constant 1 : index
    %c0_348 = arith.constant 0 : index
    %c0_349 = arith.constant 0 : index
    %889 = vector.load %arg7[%c0_346, %c1_347, %c0_348, %c0_349] : memref<1x4x8x16xf32, #tpu.memory_space<vmem>>, vector<1x1x8x16xf32>
    %890 = vector.shape_cast %889 : vector<1x1x8x16xf32> to vector<8x16xf32>
    %891 = vector.shape_cast %888 : vector<8x16xf32> to vector<1x1x8x16xf32>
    tpu.vector_store %arg7[%c0_346, %c1_347, %c0_348, %c0_349], %891 {strides = array<i32>} : memref<1x4x8x16xf32, #tpu.memory_space<vmem>>, vector<1x1x8x16xf32>,
    %c2_350 = arith.constant 2 : index
    %c0_351 = arith.constant 0 : index
    %c0_352 = arith.constant 0 : index
    %892 = vector.load %arg8[%c2_350, %c0_351, %c0_352] : memref<4x8x16xf32, #tpu.memory_space<vmem>>, vector<1x8x16xf32>
    %893 = vector.shape_cast %892 : vector<1x8x16xf32> to vector<8x16xf32>
    %cst_353 = arith.constant 0.000000e+00 : f32
    %894 = vector.broadcast %cst_353 : f32 to vector<8x16xf32>
    %895 = arith.maximumf %893, %894 : vector<8x16xf32>
    %c0_354 = arith.constant 0 : index
    %c2_355 = arith.constant 2 : index
    %c0_356 = arith.constant 0 : index
    %c0_357 = arith.constant 0 : index
    %896 = vector.load %arg7[%c0_354, %c2_355, %c0_356, %c0_357] : memref<1x4x8x16xf32, #tpu.memory_space<vmem>>, vector<1x1x8x16xf32>
    %897 = vector.shape_cast %896 : vector<1x1x8x16xf32> to vector<8x16xf32>
    %898 = vector.shape_cast %895 : vector<8x16xf32> to vector<1x1x8x16xf32>
    tpu.vector_store %arg7[%c0_354, %c2_355, %c0_356, %c0_357], %898 {strides = array<i32>} : memref<1x4x8x16xf32, #tpu.memory_space<vmem>>, vector<1x1x8x16xf32>,
    %c3_358 = arith.constant 3 : index
    %c0_359 = arith.constant 0 : index
    %c0_360 = arith.constant 0 : index
    %899 = vector.load %arg8[%c3_358, %c0_359, %c0_360] : memref<4x8x16xf32, #tpu.memory_space<vmem>>, vector<1x8x16xf32>
    %900 = vector.shape_cast %899 : vector<1x8x16xf32> to vector<8x16xf32>
    %cst_361 = arith.constant 0.000000e+00 : f32
    %901 = vector.broadcast %cst_361 : f32 to vector<8x16xf32>
    %902 = arith.maximumf %900, %901 : vector<8x16xf32>
    %c0_362 = arith.constant 0 : index
    %c3_363 = arith.constant 3 : index
    %c0_364 = arith.constant 0 : index
    %c0_365 = arith.constant 0 : index
    %903 = vector.load %arg7[%c0_362, %c3_363, %c0_364, %c0_365] : memref<1x4x8x16xf32, #tpu.memory_space<vmem>>, vector<1x1x8x16xf32>
    %904 = vector.shape_cast %903 : vector<1x1x8x16xf32> to vector<8x16xf32>
    %905 = vector.shape_cast %902 : vector<8x16xf32> to vector<1x1x8x16xf32>
    tpu.vector_store %arg7[%c0_362, %c3_363, %c0_364, %c0_365], %905 {strides = array<i32>} : memref<1x4x8x16xf32, #tpu.memory_space<vmem>>, vector<1x1x8x16xf32>,
    return
  }
  func.func @transform_0(%arg0: i32, %arg1: i32) -> (i32, i32, i32, i32) {
    %c0_i32 = arith.constant 0 : i32
    %c0_i32_0 = arith.constant 0 : i32
    %c0_i32_1 = arith.constant 0 : i32
    return %arg0, %c0_i32, %arg1, %c0_i32_0 : i32, i32, i32, i32
  }
  func.func @transform_1(%arg0: i32, %arg1: i32) -> (i32, i32, i32, i32) {
    %c1_i32 = arith.constant 1 : i32
    %0 = arith.muli %arg1, %c1_i32 : i32
    %c1_i32_0 = arith.constant 1 : i32
    %1 = arith.subi %0, %c1_i32_0 : i32
    %c0_i32 = arith.constant 0 : i32
    %2 = arith.maxsi %1, %c0_i32 : i32
    %c0_i32_1 = arith.constant 0 : i32
    %c0_i32_2 = arith.constant 0 : i32
    %c0_i32_3 = arith.constant 0 : i32
    return %arg0, %c0_i32_1, %2, %c0_i32_2 : i32, i32, i32, i32
  }
  func.func @transform_2(%arg0: i32, %arg1: i32) -> (i32, i32, i32, i32) {
    %c1_i32 = arith.constant 1 : i32
    %0 = arith.addi %arg1, %c1_i32 : i32
    %c1_i32_0 = arith.constant 1 : i32
    %1 = arith.muli %0, %c1_i32_0 : i32
    %c1_i32_1 = arith.constant 1 : i32
    %2 = arith.minsi %1, %c1_i32_1 : i32
    %c0_i32 = arith.constant 0 : i32
    %c0_i32_2 = arith.constant 0 : i32
    %c0_i32_3 = arith.constant 0 : i32
    return %arg0, %c0_i32, %2, %c0_i32_2 : i32, i32, i32, i32
  }
  func.func @transform_3(%arg0: i32, %arg1: i32) -> i32 {
    %c0_i32 = arith.constant 0 : i32
    %c0_i32_0 = arith.constant 0 : i32
    return %c0_i32 : i32
  }
  func.func @transform_4(%arg0: i32, %arg1: i32) -> i32 {
    %c0_i32 = arith.constant 0 : i32
    %c0_i32_0 = arith.constant 0 : i32
    return %c0_i32 : i32
  }
  func.func @transform_5(%arg0: i32, %arg1: i32) -> (i32, i32, i32, i32) {
    %c0_i32 = arith.constant 0 : i32
    %c0_i32_0 = arith.constant 0 : i32
    %c0_i32_1 = arith.constant 0 : i32
    return %arg0, %c0_i32, %arg1, %c0_i32_0 : i32, i32, i32, i32
  }
}

</mosaic_0001>

<bundles_post_ra>
// kernel: tpu_custom_call.1
= control target key start
LH: loop header
LB: loop body
LE: loop exit
PB: predicated region body
PF: predicated region fallthrough
CT: control target
= control target key end

     0   :  { %s3555_s0 = inlined_call_operand.hbm [shape: f32[2,4,16,16], index: 0, kind: input, shape index: {}]   ;;  %s3556_s1 = inlined_call_operand.hbm [shape: f32[2,4,16,16], index: 1, kind: input, shape index: {}]   ;;  %s3557_s2 = inlined_call_operand.hbm [shape: f32[2,4,16,16], index: 2, kind: input, shape index: {}]   ;;  %s3558_s3 = inlined_call_operand.vmem [shape: f32[144], index: 3, kind: input, shape index: {}]   ;;  %s3559_s4 = inlined_call_operand.vmem [shape: f32[4], index: 4, kind: input, shape index: {}]   ;;  %s3560_s5 = inlined_call_operand.hbm [shape: f32[2,4,16,16], index: 5, kind: output, shape index: {}]  }
   0x1   :  { %3652 = sst [smem:[#allocation88_spill]] %s3555_s0 }
   0x2   :  { %3653 = sst [smem:[#allocation89_spill]] %s3556_s1 }
   0x3   :  { %3654 = sst [smem:[#allocation90_spill]] %s3557_s2 }
   0x4   :  { %3655 = sst [smem:[#allocation91_spill]] %s3558_s3 }
   0x5   :  { %3656 = sst [smem:[#allocation92_spill]] %s3559_s4 }
   0x6   :  { %3657 = sst [smem:[#allocation93_spill]] %s3560_s5 }
   0x7   :  { %10 = vsyncpa [#allocation4], 0 }
   0x8   :  { %12 = vsyncpa [#allocation4 + $0x1], 0 }
   0x9   :  { %13 = vsyncpa [#allocation8], 0 }
   0xa   :  { %15 = vsyncpa [#allocation8 + $0x1], 0 }
   0xb   :  { %16 = vsyncpa [#allocation6], 0 }
   0xc   :  { %17 = vsyncpa [#allocation12], 0 }
   0xd   :  { %18 = vsyncpa [#allocation5], 0 }
   0xe   :  { %20 = vsyncpa [#allocation5 + $0x1], 0  ;;  %s2202_s18 = smov 0   ;;  %s2204_s19 = smov 0  }
   0xf   :  { %s2206_s20 = smov 0   ;;  %s2208_s21 = smov 0  }
  0x10   :  { %s2210_s22 = smov 0   ;;  %s2212_s23 = smov 0  }
  0x11   :  { %s2214_s24 = smov 0   ;;  %s2216_s25 = smov 0  }
  0x12   :  { %s2218_s26 = smov 0   ;;  %s2220_s27 = smov 0  }
  0x13   :  { %s2222_s28 = smov 0   ;;  %s2224_s29 = smov 0  }
  0x14   :  { %s2226_s30 = smov 0   ;;  %s2228_s6 = smov 0  }
  0x15 LB: > { %3658 = sst [smem:[#allocation20_spill]] %s2107_s19  ;;  %s35_s7 = sadd.s32 1, %s2147_s29  ;;  %s2155_s6 = sphi %s2228_s6, %s26_s6   ;;  %s2151_s30 = sphi %s2226_s30, %s3876_s30   ;;  %s2147_s29 = sphi %s2224_s29, %s3875_s29   ;;  %s2143_s28 = sphi %s2222_s28, %s3874_s28   ;;  %s2139_s27 = sphi %s2220_s27, %s3873_s27   ;;  %s2135_s26 = sphi %s2218_s26, %s3872_s26   ;;  %s2131_s25 = sphi %s2216_s25, %s3871_s25   ;;  %s2127_s24 = sphi %s2214_s24, %s3870_s24   ;;  %s2123_s23 = sphi %s2212_s23, %s3869_s23   ;;  %s2119_s22 = sphi %s2210_s22, %s3868_s22   ;;  %s2115_s21 = sphi %s2208_s21, %s3867_s21   ;;  %s2111_s20 = sphi %s2206_s20, %s3866_s20   ;;  %s2107_s19 = sphi %s2204_s19, %s3865_s19   ;;  %s2103_s18 = sphi %s2202_s18, %s3864_s18  }
  0x16   : > { %3659 = sst [smem:[#allocation21_spill]] %s2111_s20  ;;  %s38_s8 = sadd.s32 1, %s2151_s30 }
  0x17   : > { %3660 = sst [smem:[#allocation22_spill]] %s2119_s22  ;;  %p36_p0 = scmp.ge.s32.totalorder %s35_s7, 2 }
  0x18   : > { %3661 = sst [smem:[#allocation23_spill]] %s2123_s23  ;;  %p3568_p1 = scmp.eq.s32.totalorder %s2155_s6, 0 }
  0x19   : > { %3662 = sst [smem:[#allocation24_spill]] %s2127_s24  ;;  %s81_s9 = sadd.s32 1, %s2123_s23 }
  0x1a   : > { %3663 = sst [smem:[#allocation25_spill]] %s2131_s25  ;;  %s3878_s7 = smov (%p36_p0, %s35_s7), 0 }
  0x1b   : > { %3664 = sst [smem:[#allocation26_spill]] %s2135_s26  ;;  %s3880_s8 = smov (!%p36_p0, %s38_s8), %s2151_s30 }
  0x1c   : > { %3665 = sst [smem:[#allocation27_spill]] %s2139_s27  ;;  %s43_s10 = ssub.s32 %s2147_s29, %s3878_s7 }
  0x1d   : > { %3666 = sst [smem:[#allocation28_spill]] %s2143_s28  ;;  %p40_p2 = scmp.ge.s32.totalorder %s3880_s8, 2 }
  0x1e   : > { %3667 = sst [smem:[#allocation29_spill]] %s2147_s29  ;;  %p88_p3 = scmp.ne.s32.totalorder %s2123_s23, %s2119_s22 }
  0x1f   : > { %3668 = sst [smem:[#allocation30_spill]] %s2151_s30  ;;  %s3882_s8 = smov (%p40_p2, %s3880_s8), 0 }
  0x20   : > { %3669 = sst [smem:[#allocation31_spill]] %s2155_s6  ;;  %s2287_s11 = ssub.s32 %s2151_s30, %s3882_s8 }
  0x21   : > { %3670 = sst [smem:[#allocation32_spill]] %s3878_s7  ;;  %s2290_s12 = sor.u32 %s43_s10, %s2287_s11 }
  0x22   : > { %3671 = sst [smem:[#allocation33_spill]] %s3882_s8  ;;  %p2294_p4 = por %p88_p3, %p3568_p1 }
  0x23   : > { %p3567_p6 = scmp.lt.s32.totalorder %s2155_s6, 4  ;;  %p3566_p7 = scmp.eq.s32.totalorder %s2287_s11, 0 }
  0x24   : > { %s266_s15 = sand.u32 1, %s2155_s6   ;;  %s268_s16 = sand.u32 1, %s2123_s23  }
  0x25   : > { %s2307_s17 = scalar_select %p3566_p7, %s2123_s23, %s81_s9  }
  0x26   : > { %s1516_s8 = sshll.u32 %s268_s16, 5  ;;  %s3565_s7 = sshll.u32 %s2151_s30, 10 }
  0x27   : > { %3673 = sst [smem:[#allocation34_spill]] %s2307_s17  ;;  %s3674_s1 = sld [smem:[#allocation89_spill]] }
  0x28   : > { %s270_s27 = scalar_lea.vmem [#allocation7], %s1516_s8  ;;  %p2323_p8 = pnand %p3567_p6, %p2294_p4 }
  0x29   : > { %s281_s14 = sshll.u32 %s270_s27, 4  ;;  %s2327_s16 = scalar_lea.sflag [#allocation8], %s266_s15  ;;  %s2317_s14 = int_to_ptr.vmem [resolvable:$true] %s281_s14 }
  0x2a   : > { %p1871_p10 = pneg %p2323_p8 }
  0x2d   : > { %s2315_s28 = scalar_lea.hbm %s3674_s1, %s3565_s7  ;;  %s1874_s13 = scalar_lea.hbm %s3674_s1, 2048 }
  0x2e   : > { %s1869_s5 = scalar_lea.hbm %s2315_s28, 512  ;;  %p1875_p13 = scmp.lt.u32.totalorder %s2315_s28, %s3674_s1 }
  0x2f   : > { %p1870_p9 = scmp.ne.s32.totalorder %s2315_s28, %s1869_s5  ;;  %p1876_p0 = scmp.lt.u32.totalorder %s1874_s13, %s1869_s5 }
  0x30   : > { %p1878_p3 = scmp.lt.u32.totalorder %s1869_s5, %s2315_s28 }
  0x31   : > { %p1872_p11 = pnand %p1871_p10, %p1870_p9  ;;  %p1877_p2 = por %p1876_p0, %p1875_p13 }
  0x33   : > { %p1873_p12 = pneg %p1872_p11  ;;  %p1879_p4 = por %p1878_p3, %p1877_p2 }
  0x35   : > { %p1880_p7 = pnand %p1879_p4, %p1873_p12 }
  0x37   : > { %1883 = shalt.err (!%p1880_p7)
}
  0x38   : > { %s1884_s15 = scalar_lea.vmem %s2317_s14, 512  ;;  %s2157_s27 = smov [#allocation7]  }
  0x39   : > { %p1885_p9 = scmp.ne.s32.totalorder %s2317_s14, %s1884_s15  ;;  %s1889_s8 = sshll.u32 %s2157_s27, 4  ;;  %s1890_s8 = int_to_ptr.vmem [resolvable:$false] %s1889_s8 }
  0x3a   : > { %s1891_s7 = scalar_lea.vmem %s1890_s8, 1024  ;;  %p1892_p1 = scmp.lt.s32.totalorder %s2317_s14, %s1890_s8 }
  0x3b   : > { %p1887_p11 = pnand %p1885_p9, %p1871_p10  ;;  %p1893_p13 = scmp.lt.s32.totalorder %s1891_s7, %s1884_s15 }
  0x3d   : > { %p1888_p6 = pneg %p1887_p11  ;;  %p1894_p0 = por %p1893_p13, %p1892_p1 }
  0x3f   : > { %p1895_p2 = pnand %p1894_p0, %p1888_p6 }
  0x41   : > { %1898 = shalt.err (!%p1895_p2)
}
  0x42   : > { %s3569_s5 = smov 256   ;;  %s3571_s13 = smov 128  }
  0x43   : > { %s3573_s10 = smov 8   ;;  %s2359_s15 = sadd.s32 4294967295, %s2155_s6  }
  0x44   : > { %1728 = dma.hbm_to_vmem [thread:$0]  (!%p2323_p8), %s2315_s28, 512, %s2317_s14, %s2327_s16, %s3569_s5, %s3571_s13, %s3573_s10  }
  0x45   : > { %s1506_s27 = sadd.s32 4294967294, %s2155_s6   ;;  %p60_p1 = scmp.ne.s32.totalorder %s2131_s25, %s2127_s24 }
  0x46   : > { %p3577_p6 = scmp.eq.s32.totalorder %s2359_s15, 0  ;;  %p94_p7 = scmp.ne.s32.totalorder %s2119_s22, %s2115_s21 }
  0x47   : > { %p128_p10 = scmp.ne.s32.totalorder %s2107_s19, %s2103_s18  ;;  %p202_p9 = scmp.eq.s32.totalorder %s1506_s27, 3 }
  0x48   : > { %p2372_p3 = por %p3577_p6, %p60_p1  ;;  %p2378_p8 = por %p94_p7, %p3577_p6 }
  0x49   : > { %p2384_p4 = por %p128_p10, %p3577_p6  ;;  %p1509_p11 = scmp.ge.s32.totalorder %s2155_s6, 1 }
  0x4a   : > { %s3676_s28 = scalar_select %p2372_p3, 1, 0 }
  0x4b   : > { %s3677_s14 = scalar_select %p2378_p8, 1, 0 }
  0x4c   : > { %s3678_s9 = scalar_select %p2384_p4, 1, 0 }
  0x4d   : > { %p209_p13 = scmp.lt.s32.totalorder %s2155_s6, 5  ;;  %p2390_p0 = por %p202_p9, %p60_p1 }
  0x4e   : > { %s3682_s3 = sld [smem:[#allocation91_spill]]  ;;  %s3683_s4 = sld [smem:[#allocation92_spill]] }
  0x4f   : > { %s3679_s18 = scalar_select %p2390_p0, 1, 0 }
  0x50   : > { %p2394_p2 = pnand %p1509_p11, %p209_p13  ;;  %s3685_s17 = sshll.u32 %s2151_s30, 3 }
  0x51   : > { %3680 = sst [smem:[#allocation35_spill]] %s3679_s18  ;;  %s2415_s23 = sadd.s32 %s2147_s29, %s3685_s17 }
  0x52   : > { %s3681_s21 = scalar_select %p2394_p2, 1, 0 }
  0x53   : > { %p1715_p7 = pneg %p2394_p2  ;;  %s47_s8 = sadd.s32 1, %s2135_s26 }
  0x54   : > { %s222_s5 = sshll.u32 %s3682_s3, 4  ;;  %s233_s10 = sshll.u32 %s3683_s4, 4  ;;  %s223_s5 = int_to_ptr.vmem [resolvable:$true] %s222_s5  ;;  %s234_s10 = int_to_ptr.vmem [resolvable:$true] %s233_s10 }
  0x55   : > { %p2408_p1 = pnand %p1715_p7, %p3577_p6  ;;  %s1899_s7 = scalar_lea.vmem %s223_s5, 32 }
  0x56   : > { %p1900_p10 = scmp.ne.s32.totalorder %s223_s5, %s1899_s7  ;;  %p1907_p12 = scmp.lt.s32.totalorder %s223_s5, %s223_s5 }
  0x57   : > { %p1901_p9 = pneg %p2408_p1  ;;  %p1908_p5 = scmp.lt.s32.totalorder %s1899_s7, %s1899_s7 }
  0x59   : > { %p1902_p11 = pnand %p1901_p9, %p1900_p10  ;;  %p1909_p0 = por %p1908_p5, %p1907_p12 }
  0x5b   : > { %p1903_p13 = pneg %p1902_p11 }
  0x5d   : > { %p1910_p4 = pnand %p1909_p0, %p1903_p13 }
  0x5f   : > { %1913 = shalt.err (!%p1910_p4)
}
  0x60   : > { %s2161_s13 = smov [#allocation10]   ;;  %s1914_s27 = scalar_lea.vmem %s234_s10, 16 }
  0x61   : > { %1718 = dma.vmem_to_smem (!%p2408_p1), %s223_s5, 32, %s2161_s13, [#allocation6]  }
  0x62   : > { %p1915_p7 = scmp.ne.s32.totalorder %s234_s10, %s1914_s27  ;;  %p1922_p3 = scmp.lt.s32.totalorder %s234_s10, %s234_s10 }
  0x63   : > { %p1923_p2 = scmp.lt.s32.totalorder %s1914_s27, %s1914_s27 }
  0x64   : > { %p1917_p6 = pnand %p1915_p7, %p1901_p9 }
  0x65   : > { %p1924_p10 = por %p1923_p2, %p1922_p3 }
  0x66   : > { %p1918_p8 = pneg %p1917_p6 }
  0x68   : > { %p1925_p11 = pnand %p1924_p10, %p1918_p8 }
  0x6a   : > { %1928 = shalt.err (!%p1925_p11)
}
  0x6b   : > { %s2162_s17 = smov [#allocation11]   ;;  %p3686_p5 = scmp.eq.s32.totalorder %s2290_s12, 0 }
  0x6c   : > { %1721 = dma.vmem_to_smem (!%p2408_p1), %s234_s10, 16, %s2162_s17, [#allocation12]  }
  0x6d   : > { %s2427_s5 = scalar_select %p3686_p5, %s2135_s26, %s47_s8  }
  0x6e   : > { %p54_p6 = scmp.ne.s32.totalorder %s2135_s26, %s2131_s25  ;;  %s244_s7 = sand.u32 1, %s2135_s26  }
  0x6f   : > { %3687 = sst [smem:[#allocation36_spill]] %s2427_s5  ;;  %s1513_s13 = sshll.u32 %s244_s7, 5 }
  0x70   : > { %p3688_p12 = scmp.eq.s32.totalorder %s2155_s6, 0  ;;  %p3689_p8 = scmp.eq.s32.totalorder %s2359_s15, 3 }
  0x71   : > { %s1515_s27 = sshll.u32 %s2415_s23, 7  ;;  %s3692_s0 = sld [smem:[#allocation88_spill]] }
  0x72   : > { %p56_p3 = por %p3688_p12, %p54_p6  ;;  %p2436_p4 = por %p3689_p8, %p54_p6 }
  0x73   : > { %s248_s12 = scalar_lea.vmem [#allocation3], %s1513_s13  ;;  %p3693_p0 = scmp.lt.s32.totalorder %s2155_s6, 4 }
  0x74   : > { %s3690_s1 = scalar_select %p2436_p4, 1, 0 }
  0x75   : > { %s256_s10 = sshll.u32 %s248_s12, 4  ;;  %p2450_p2 = pnand %p3693_p0, %p56_p3  ;;  %s2446_s10 = int_to_ptr.vmem [resolvable:$true] %s256_s10 }
  0x76   : > { %3691 = sst [smem:[#allocation37_spill]] %s3690_s1  ;;  %s2454_s23 = scalar_lea.sflag [#allocation4], %s244_s7 }
  0x77   : > { %s2444_s29 = scalar_lea.hbm %s3692_s0, %s1515_s27  ;;  %p1931_p9 = pneg %p2450_p2 }
  0x78   : > { %s1929_s3 = scalar_lea.hbm %s2444_s29, 512  ;;  %s1934_s13 = scalar_lea.hbm %s3692_s0, 2048 }
  0x79   : > { %p1930_p1 = scmp.ne.s32.totalorder %s2444_s29, %s1929_s3  ;;  %p1935_p10 = scmp.lt.u32.totalorder %s2444_s29, %s3692_s0 }
  0x7a   : > { %p1936_p11 = scmp.lt.u32.totalorder %s1934_s13, %s1929_s3  ;;  %p1938_p6 = scmp.lt.u32.totalorder %s1929_s3, %s2444_s29 }
  0x7b   : > { %p1932_p13 = pnand %p1931_p9, %p1930_p1 }
  0x7c   : > { %p1937_p5 = por %p1936_p11, %p1935_p10 }
  0x7d   : > { %p1933_p7 = pneg %p1932_p13 }
  0x7e   : > { %p1939_p12 = por %p1938_p6, %p1937_p5 }
  0x80   : > { %p1940_p3 = pnand %p1939_p12, %p1933_p7 }
  0x82   : > { %1943 = shalt.err (!%p1940_p3)
}
  0x83   : > { %s1944_s7 = scalar_lea.vmem %s2446_s10, 512  ;;  %s2163_s4 = smov [#allocation3]  }
  0x84   : > { %p1945_p8 = scmp.ne.s32.totalorder %s2446_s10, %s1944_s7  ;;  %s1949_s17 = sshll.u32 %s2163_s4, 4  ;;  %s1950_s17 = int_to_ptr.vmem [resolvable:$false] %s1949_s17 }
  0x85   : > { %s1951_s27 = scalar_lea.vmem %s1950_s17, 1024  ;;  %p1952_p13 = scmp.lt.s32.totalorder %s2446_s10, %s1950_s17 }
  0x86   : > { %p1947_p0 = pnand %p1945_p8, %p1931_p9  ;;  %p1953_p10 = scmp.lt.s32.totalorder %s1951_s27, %s1944_s7 }
  0x88   : > { %p1948_p1 = pneg %p1947_p0  ;;  %p1954_p11 = por %p1953_p10, %p1952_p13 }
  0x8a   : > { %p1955_p5 = pnand %p1954_p11, %p1948_p1 }
  0x8c   : > { %1958 = shalt.err (!%p1955_p5)
}
  0x8d   : > { %s3695_s3 = smov 8   ;;  %s3696_s13 = smov 128  }
  0x8e   : > { %s3697_s12 = smov 256   ;;  %s115_s7 = sadd.s32 1, %s2111_s20 }
  0x8f   : > { %1725 = dma.hbm_to_vmem [thread:$0]  (!%p2450_p2), %s2444_s29, 512, %s2446_s10, %s2454_s23, %s3697_s12, %s3696_s13, %s3695_s3  }
  0x90   : > { %p122_p9 = scmp.ne.s32.totalorder %s2111_s20, %s2107_s19  ;;  %s293_s4 = sand.u32 1, %s2111_s20  }
  0x91   : > { %p3698_p7 = scmp.eq.s32.totalorder %s2155_s6, 0  ;;  %s1520_s8 = sshll.u32 %s293_s4, 5 }
  0x92   : > { %s3699_s17 = sshll.u32 %s2151_s30, 10  ;;  %s3700_s2 = sld [smem:[#allocation90_spill]] }
  0x93   : > { %p124_p6 = por %p122_p9, %p3698_p7  ;;  %s2099_s27 = sadd.s32 128, %s3699_s17 }
  0x94   : > { %s295_s18 = scalar_lea.vmem [#allocation9], %s1520_s8  ;;  %p3701_p2 = scmp.lt.s32.totalorder %s2155_s6, 4 }
  0x95   : > { %s306_s24 = sshll.u32 %s295_s18, 4  ;;  %p3703_p3 = scmp.eq.s32.totalorder %s2287_s11, 0  ;;  %s2509_s24 = int_to_ptr.vmem [resolvable:$true] %s306_s24 }
  0x96   : > { %p2500_p12 = pnand %p3701_p2, %p124_p6 }
  0x97   : > { %s2507_s10 = scalar_select %p3703_p3, %s2111_s20, %s115_s7  }
  0x98   : > { %s2496_s26 = scalar_lea.hbm %s3700_s2, %s2099_s27  ;;  %p1961_p0 = pneg %p2500_p12 }
  0x99   : > { %3704 = sst [smem:[#allocation38_spill]] %s2507_s10  ;;  %s1959_s0 = scalar_lea.hbm %s2496_s26, 512 }
  0x9a   : > { %p1960_p8 = scmp.ne.s32.totalorder %s2496_s26, %s1959_s0  ;;  %s1964_s23 = scalar_lea.hbm %s3700_s2, 2048 }
  0x9b   : > { %p1965_p10 = scmp.lt.u32.totalorder %s2496_s26, %s3700_s2  ;;  %p1966_p11 = scmp.lt.u32.totalorder %s1964_s23, %s1959_s0 }
  0x9c   : > { %p1962_p1 = pnand %p1961_p0, %p1960_p8  ;;  %p1968_p9 = scmp.lt.u32.totalorder %s1959_s0, %s2496_s26 }
  0x9d   : > { %p1967_p5 = por %p1966_p11, %p1965_p10 }
  0x9e   : > { %p1963_p13 = pneg %p1962_p1 }
  0x9f   : > { %p1969_p7 = por %p1968_p9, %p1967_p5 }
  0xa1   : > { %p1970_p6 = pnand %p1969_p7, %p1963_p13 }
  0xa3   : > { %1973 = shalt.err (!%p1970_p6)
}
  0xa4   : > { %s1974_s7 = scalar_lea.vmem %s2509_s24, 512  ;;  %s2164_s8 = smov [#allocation9]  }
  0xa5   : > { %p1975_p2 = scmp.ne.s32.totalorder %s2509_s24, %s1974_s7  ;;  %s1979_s17 = sshll.u32 %s2164_s8, 4  ;;  %s1980_s17 = int_to_ptr.vmem [resolvable:$false] %s1979_s17 }
  0xa6   : > { %s1981_s27 = scalar_lea.vmem %s1980_s17, 1024  ;;  %p1982_p1 = scmp.lt.s32.totalorder %s2509_s24, %s1980_s17 }
  0xa7   : > { %p1977_p3 = pnand %p1975_p2, %p1961_p0  ;;  %p1983_p10 = scmp.lt.s32.totalorder %s1981_s27, %s1974_s7 }
  0xa9   : > { %p1978_p8 = pneg %p1977_p3  ;;  %p1984_p11 = por %p1983_p10, %p1982_p1 }
  0xab   : > { %p1985_p5 = pnand %p1984_p11, %p1978_p8 }
  0xad   : > { %1988 = shalt.err (!%p1985_p5)
}
  0xae   : > { %1731 = dma.hbm_to_vmem [thread:$0]  (!%p2500_p12), %s2496_s26, 512, %s2509_s24, %s2327_s16, %s3697_s12, %s3696_s13, %s3695_s3  }
  0xaf   : > { %p3705_p0 = scmp.ne.s32.totalorder %s3681_s21, 0 }
  0xb1   : > { %318 = sbr.rel (%p3705_p0) target bundleno = 755 (0x2f3), region = 40 }
  0xb8   : > { %s2543_s0 = sand.u32 1, %s2131_s25   ;;  %p3708_p13 = scmp.ne.s32.totalorder %s3676_s28, 0 }
  0xb9   : > { %3706 = sst [smem:[#allocation39_spill]] %s2543_s0  ;;  %s3585_s18 = sshll.u32 %s2543_s0, 5 }
  0xba   : > { %s321_s5 = scalar_lea.sflag [#allocation4], %s2543_s0  ;;  %s2549_s29 = scalar_lea.vmem [#allocation3], %s3585_s18 }
  0xbb   : > { %3707 = sst [smem:[#allocation40_spill]] %s2549_s29 }
  0xbc   : > { %2074 = dma.done.wait (%p3708_p13), %s321_s5, 512  }
  0xbd   : > { %2076 = vsyncadd (%p3708_p13), %s321_s5, 4294966784  ;;  %s329_s24 = sand.u32 1, %s2359_s15   ;;  %s331_s26 = sand.u32 1, %s2119_s22  }
  0xbe   : > { %s1525_s16 = sshll.u32 %s331_s26, 5  ;;  %s330_s21 = scalar_lea.sflag [#allocation8], %s329_s24 }
  0xbf   : > { %s333_s3 = scalar_lea.vmem [#allocation7], %s1525_s16  ;;  %p3709_p12 = scmp.ne.s32.totalorder %s3677_s14, 0 }
  0xc1   : > { %2078 = dma.done.wait (%p3709_p12), %s330_s21, 512  }
  0xc2   : > { %2080 = vsyncadd (%p3709_p12), %s330_s21, 4294966784  ;;  %s340_s13 = sand.u32 1, %s2107_s19   ;;  %p3710_p9 = scmp.ne.s32.totalorder %s3678_s9, 0 }
  0xc3   : > { %s1526_s12 = sshll.u32 %s340_s13, 5 }
  0xc4   : > { %s2562_s23 = scalar_lea.vmem [#allocation9], %s1526_s12 }
  0xc5   : > { %2082 = dma.done.wait (%p3710_p9), %s330_s21, 512  }
  0xc6   : > { %2084 = vsyncadd (%p3710_p9), %s330_s21, 4294966784  ;;  %p3711_p7 = scmp.eq.s32.totalorder %s2359_s15, 0 }
  0xc8   : > { %2086 = dma.done.wait (%p3711_p7), [#allocation6], 32   ;;  %p3712_p6 = pmov %p3711_p7 }
  0xca   : > { %2088 = vsyncadd (%p3712_p6), [#allocation6], 4294967264  ;;  %p3713_p2 = pmov %p3712_p6 }
  0xcc   : > { %2090 = dma.done.wait (%p3713_p2), [#allocation12], 16   ;;  %p3714_p3 = pmov %p3713_p2 }
  0xce   : > { %2092 = vsyncadd (%p3714_p3), [#allocation12], 4294967280 }
  0xcf   : > { %355 = sfence }
  0xd0   : > { %s3715_s28 = sld [smem:[#allocation27_spill]]  ;;  %v2579_v0 = vld [vmem:[%s2549_s29] sm:$0xff]  ;;  %v2582_v1 = vld [vmem:[%s2549_s29 + $0x10] sm:$0xff]  ;;  %v2585_v3 = vld [vmem:[%s2549_s29 + $0x8] sm:$0xff]  ;;  %vm423_vm0 = vcmask 1040384   ;;  %s3586_s11 = smov 16  }
  0xd1   : > { %v417_v2 = vld [vmem:[%s333_s3 + $0x7] sm:$0x1]  ;;  %v2588_v4 = vld [vmem:[%s2549_s29 + $0x18] sm:$0xff]  ;;  %v1536_v5 = vld [vmem:[%s333_s3 + $0x17] sm:$0x1]  ;;  %v421_v8 = vrot.slane %v2579_v0, 7 }
  0xd2   : > { %v1534_v6 = vld [vmem:[%s333_s3 + $0xf] sm:$0x1]  ;;  %v1538_v7 = vld [vmem:[%s333_s3 + $0x1f] sm:$0x1]  ;;  %v440_v9 = vrot.slane %v2582_v1, 7  ;;  %v431_v11 = vrot.slane %v2585_v3, 7 }
  0xd3   : > { %v449_v12 = vrot.slane %v2588_v4, 7  ;;  %v1640_v17 = vld [vmem:[%s2562_s23 + $0x10] sm:$0x1]  ;;  %v1642_v18 = vld [vmem:[%s2562_s23 + $0x18] sm:$0x1]  ;;  %v1029_v23 = vrot.slane %v2582_v1, 1 }
  0xd4   : > { %v1040_v27 = vrot.slane %v2588_v4, 1  ;;  %v1002_v28 = vld [vmem:[%s2562_s23] sm:$0x1]  ;;  %v1638_v29 = vld [vmem:[%s2562_s23 + $0x8] sm:$0x1]  ;;  %vm1011_vm1 = vcmask 1046528  }
  0xd5   : > { %v1006_v36 = vrot.slane %v2579_v0, 1  ;;  %v1018_v38 = vrot.slane %v2585_v3, 1  ;;  %vm452_vm2 = vcmask 1047680   ;;  %s2680_s7 = sld [smem:[#allocation10]]  ;;  %s2682_s8 = sld [smem:[#allocation10 + $0x1]]  ;;  %vm402_vm3 = vcmask 130048  }
  0xd6   : > { %p394_p8 = scmp.gt.s32.totalorder %s3715_s28, 0  ;;  %p397_p1 = scmp.lt.s32.totalorder %s3715_s28, 1 }
  0xd7   : > { %s2684_s17 = sld [smem:[#allocation10 + $0x2]]  ;;  %s2686_s27 = sld [smem:[#allocation10 + $0x3]] }
  0xd8   : > { %s395_s14 = scalar_select %p394_p8, 1, 0 }
  0xd9   : > { %s398_s15 = scalar_select %p397_p1, 1, 0 }
  0xda   : > { %s396_s9 = scvt.s32.f32 %s395_s14  ;;  %s2688_s5 = sld [smem:[#allocation10 + $0x4]] }
  0xdb   : > { %s399_s4 = scvt.s32.f32 %s398_s15  ;;  %3716 = sst [smem:[#allocation41_spill]] %s2680_s7  ;;  %v478_v62 = vstv %s2680_s7  ;;  %v500_v63 = vstv %s2682_s8 }
  0xdc   : > { %v418_v10 = vstv %s396_s9  ;;  %3717 = sst [smem:[#allocation42_spill]] %s2682_s8  ;;  %s2690_s24 = sld [smem:[#allocation10 + $0x20]] }
  0xdd   : > { %v419_v13 = vmul.f32 %v418_v10, %v417_v2  ;;  %v438_v14 = vmul.f32 %v1536_v5, %v418_v10  ;;  %v429_v15 = vmul.f32 %v1534_v6, %v418_v10  ;;  %v447_v16 = vmul.f32 %v1538_v7, %v418_v10  ;;  %3718 = sst [smem:[#allocation43_spill]] %s2684_s17  ;;  %s2692_s26 = sld [smem:[#allocation10 + $0x5]] }
  0xde   : > { %v1003_v21 = vstv %s399_s4  ;;  %3719 = sst [smem:[#allocation44_spill]] %s2686_s27  ;;  %s2694_s16 = sld [smem:[#allocation10 + $0x6]]  ;;  %v522_v2 = vstv %s2684_s17  ;;  %v544_v7 = vstv %s2686_s27 }
  0xdf   : > { %v2597_v19 = vsel %vm423_vm0, %v419_v13, %v421_v8  ;;  %v2600_v20 = vsel %vm423_vm0, %v438_v14, %v440_v9  ;;  %v1027_v22 = vmul.f32 %v1640_v17, %v1003_v21  ;;  %v2608_v24 = vsel %vm423_vm0, %v429_v15, %v431_v11  ;;  %s2696_s21 = sld [smem:[#allocation10 + $0x8]]  ;;  %s2698_s3 = sld [smem:[#allocation10 + $0x7]] }
  0xe0   : > { %453 = vrot.lane.b32.xlu0 %v2597_v19, %s3586_s11  ;;  %465 = vrot.lane.b32.xlu1 %v2600_v20, %s3586_s11  ;;  %v2611_v25 = vsel %vm423_vm0, %v447_v16, %v449_v12  ;;  %v1038_v26 = vmul.f32 %v1642_v18, %v1003_v21  ;;  %v1004_v33 = vmul.f32 %v1003_v21, %v1002_v28  ;;  %3720 = sst [smem:[#allocation45_spill]] %s2688_s5  ;;  %s2702_s12 = sld [smem:[#allocation10 + $0xa]]  ;;  %v481_v5 = vstv %s2688_s5 }
  0xe1   : > { %v1032_v30 = vrot.slane %v1027_v22, 1  ;;  %v1016_v34 = vmul.f32 %v1638_v29, %v1003_v21  ;;  %s2700_s13 = sld [smem:[#allocation10 + $0x9]]  ;;  %s2704_s23 = sld [smem:[#allocation10 + $0xc]] }
  0xe2   : > { %v1043_v31 = vrot.slane %v1038_v26, 1  ;;  %v1009_v37 = vrot.slane %v1004_v33, 1  ;;  %3721 = sst [smem:[#allocation46_spill]] %s2690_s24  ;;  %s2706_s14 = sld [smem:[#allocation10 + $0xb]]  ;;  %v638_v8 = vstv %s2690_s24 }
  0xe3   : > { %v2621_v32 = vsel %vm1011_vm1, %v1029_v23, %v1032_v30  ;;  %v1021_v39 = vrot.slane %v1016_v34, 1  ;;  %3722 = sst [smem:[#allocation47_spill]] %s2692_s26  ;;  %s2708_s15 = sld [smem:[#allocation10 + $0xd]]  ;;  %v503_v6 = vstv %s2692_s26 }
  0xe4   : > { %459 = vrot.lane.b32.xlu0 %v2608_v24, %s3586_s11  ;;  %471 = vrot.lane.b32.xlu1 %v2611_v25, %s3586_s11  ;;  %v2624_v35 = vsel %vm1011_vm1, %v1040_v27, %v1043_v31  ;;  %v2637_v40 = vsel %vm1011_vm1, %v1006_v36, %v1009_v37  ;;  %3723 = sst [smem:[#allocation48_spill]] %s2694_s16  ;;  %s2710_s9 = sld [smem:[#allocation10 + $0xe]]  ;;  %v525_v11 = vstv %s2694_s16 }
  0xe5   : > { %v2640_v41 = vsel %vm1011_vm1, %v1018_v38, %v1021_v39  ;;  %3724 = sst [smem:[#allocation49_spill]] %s2696_s21  ;;  %s2712_s4 = sld [smem:[#allocation10 + $0xf]]  ;;  %v485_v9 = vstv %s2696_s21  ;;  %v547_v12 = vstv %s2698_s3 }
  0xe6   : > { %3725 = sst [smem:[#allocation50_spill]] %s2698_s3  ;;  %s2714_s18 = sld [smem:[#allocation10 + $0x24]]  ;;  %v529_v15 = vstv %s2702_s12 }
  0xe7   : > { %3726 = sst [smem:[#allocation51_spill]] %s2700_s13  ;;  %s2718_s2 = sld [smem:[#allocation10 + $0x21]]  ;;  %v507_v10 = vstv %s2700_s13  ;;  %v489_v13 = vstv %s2704_s23 }
  0xe8   : > { %729 = vrot.lane.b32.xlu0 %v2579_v0, %s3586_s11  ;;  %735 = vrot.lane.b32.xlu1 %v2585_v3, %s3586_s11  ;;  %3727 = sst [smem:[#allocation52_spill]] %s2702_s12  ;;  %s2720_s30 = sld [smem:[#allocation10 + $0x2c]]  ;;  %v551_v16 = vstv %s2706_s14 }
  0xe9   : > { %3728 = sst [smem:[#allocation53_spill]] %s2704_s23  ;;  %s2722_s25 = sld [smem:[#allocation10 + $0x25]]  ;;  %v511_v14 = vstv %s2708_s15 }
  0xea   : > { %3729 = sst [smem:[#allocation54_spill]] %s2706_s14  ;;  %s2724_s22 = sld [smem:[#allocation10 + $0x29]]  ;;  %v533_v17 = vstv %s2710_s9 }
  0xeb   : > { %3730 = sst [smem:[#allocation55_spill]] %s2708_s15  ;;  %s2726_s10 = sld [smem:[#allocation10 + $0x22]]  ;;  %v555_v18 = vstv %s2712_s4 }
  0xec   : > { %741 = vrot.lane.b32.xlu0 %v2582_v1, %s3586_s11  ;;  %747 = vrot.lane.b32.xlu1 %v2588_v4, %s3586_s11  ;;  %3731 = sst [smem:[#allocation56_spill]] %s2710_s9  ;;  %s2728_s20 = sld [smem:[#allocation10 + $0x26]]  ;;  %v641_v21 = vstv %s2714_s18 }
  0xed   : > { %3732 = sst [smem:[#allocation57_spill]] %s2712_s4  ;;  %s2730_s19 = sld [smem:[#allocation10 + $0x23]]  ;;  %v660_v26 = vstv %s2718_s2 }
  0xee   : > { %3733 = sst [smem:[#allocation58_spill]] %s2714_s18  ;;  %s2732_s6 = sld [smem:[#allocation10 + $0x2d]]  ;;  %v649_v23 = vstv %s2720_s30 }
  0xef   : > { %3735 = sst [smem:[#allocation60_spill]] %s2720_s30  ;;  %s2734_s1 = sld [smem:[#allocation10 + $0x27]]  ;;  %v663_v27 = vstv %s2722_s25 }
  0xf0   : > { %1046 = vrot.lane.b32.xlu0 %v2637_v40, %s3586_s11  ;;  %1052 = vrot.lane.b32.xlu1 %v2640_v41, %s3586_s11  ;;  %3736 = sst [smem:[#allocation61_spill]] %s2722_s25  ;;  %s2736_s0 = sld [smem:[#allocation10 + $0x2a]] }
  0xf1   : > { %3737 = sst [smem:[#allocation62_spill]] %s2724_s22  ;;  %s2738_s28 = sld [smem:[#allocation10 + $0x2b]] }
  0xf2   : > { %3738 = sst [smem:[#allocation63_spill]] %s2726_s10  ;;  %s2740_s29 = sld [smem:[#allocation10 + $0x2e]] }
  0xf3   : > { %3739 = sst [smem:[#allocation64_spill]] %s2728_s20  ;;  %s2742_s22 = sld [smem:[#allocation10 + $0x2f]] }
  0xf4   : > { %3740 = sst [smem:[#allocation65_spill]] %s2730_s19  ;;  %s2744_s10 = sld [smem:[#allocation10 + $0x30]] }
  0xf5   : > { %3741 = sst [smem:[#allocation66_spill]] %s2732_s6  ;;  %s2746_s20 = sld [smem:[#allocation10 + $0x34]] }
  0xf6   : > { %3742 = sst [smem:[#allocation67_spill]] %s2734_s1  ;;  %s2748_s19 = sld [smem:[#allocation10 + $0x38]] }
  0xf7   : > { %3743 = sst [smem:[#allocation68_spill]] %s2736_s0  ;;  %s2750_s6 = sld [smem:[#allocation10 + $0x3c]] }
  0xf8   : > { %3744 = sst [smem:[#allocation69_spill]] %s2738_s28  ;;  %s2754_s28 = sld [smem:[#allocation10 + $0x35]] }
  0xf9   : > { %3745 = sst [smem:[#allocation70_spill]] %s2740_s29  ;;  %s2752_s0 = sld [smem:[#allocation10 + $0x31]]  ;;  %v715_v39 = vstv %s2742_s22 }
  0xfa   : > { %3746 = sst [smem:[#allocation71_spill]] %s2742_s22  ;;  %s2756_s29 = sld [smem:[#allocation10 + $0x39]] }
  0xfb   : > { %3747 = sst [smem:[#allocation72_spill]] %s2744_s10  ;;  %s2758_s1 = sld [smem:[#allocation10 + $0x3d]] }
  0xfc   : > { %3748 = sst [smem:[#allocation73_spill]] %s2746_s20  ;;  %s2760_s10 = sld [smem:[#allocation10 + $0x32]] }
  0xfd   : > { %3749 = sst [smem:[#allocation74_spill]] %s2748_s19  ;;  %s2764_s19 = sld [smem:[#allocation10 + $0x3a]] }
  0xfe   : > { %3750 = sst [smem:[#allocation75_spill]] %s2750_s6  ;;  %s2762_s20 = sld [smem:[#allocation10 + $0x36]] }
  0xff   : > { %s2766_s6 = sld [smem:[#allocation10 + $0x3e]]  ;;  %s2781_s7 = sld [smem:[#allocation10 + $0x3f]] }
 0x100   : > { %3751 = sst [smem:[#allocation76_spill]] %s2756_s29  ;;  %s2771_s29 = sld [smem:[#allocation10 + $0x33]] }
 0x101   : > { %3752 = sst [smem:[#allocation77_spill]] %s2758_s1  ;;  %s2773_s1 = sld [smem:[#allocation10 + $0x37]] }
 0x102   : > { %s2787_s17 = sld [smem:[#allocation10 + $0x50]]  ;;  %s2789_s26 = sld [smem:[#allocation10 + $0x54]] }
 0x103   : > { %3754 = sst [smem:[#allocation79_spill]] %s2764_s19  ;;  %s3761_s24 = sld [smem:[#allocation62_spill]] }
 0x104   : > { %3753 = sst [smem:[#allocation78_spill]] %s2762_s20  ;;  %s2779_s19 = sld [smem:[#allocation10 + $0x3b]] }
 0x105   : > { %3755 = sst [smem:[#allocation80_spill]] %s2766_s6  ;;  %s3760_s5 = sld [smem:[#allocation63_spill]] }
 0x106   : > { %3757 = sst [smem:[#allocation82_spill]] %s2781_s7  ;;  %s3762_s27 = sld [smem:[#allocation64_spill]] }
 0x107   : > { %s2795_s8 = sld [smem:[#allocation10 + $0x58]]  ;;  %s3764_s21 = sld [smem:[#allocation65_spill]] }
 0x108   : > { %3758 = sst [smem:[#allocation83_spill]] %s2787_s17  ;;  %s2797_s13 = sld [smem:[#allocation10 + $0x5c]] }
 0x109   : > { %3759 = sst [smem:[#allocation84_spill]] %s2789_s26  ;;  %s3766_s16 = sld [smem:[#allocation67_spill]]  ;;  %v667_v29 = vstv %s3761_s24 }
 0x10a   : > { %3756 = sst [smem:[#allocation81_spill]] %s2779_s19  ;;  %s3767_s3 = sld [smem:[#allocation66_spill]] }
 0x10b   : > { %s3768_s17 = sld [smem:[#allocation68_spill]]  ;;  %s2803_s26 = sld [smem:[#allocation10 + $0x51]]  ;;  %v682_v28 = vstv %s3760_s5 }
 0x10c   : > { %s3770_s23 = sld [smem:[#allocation70_spill]]  ;;  %s2805_s15 = sld [smem:[#allocation10 + $0x55]]  ;;  %v685_v30 = vstv %s3762_s27 }
 0x10d   : > { %3763 = sst [smem:[#allocation85_spill]] %s2795_s8  ;;  %s3773_s14 = sld [smem:[#allocation72_spill]]  ;;  %v704_v31 = vstv %s3764_s21 }
 0x10e   : > { %3765 = sst [smem:[#allocation65_spill]] %s2797_s13  ;;  %s3772_s12 = sld [smem:[#allocation69_spill]] }
 0x10f   : > { %s2811_s13 = sld [smem:[#allocation10 + $0x59]]  ;;  %s3775_s9 = sld [smem:[#allocation73_spill]]  ;;  %v707_v33 = vstv %s3766_s16 }
 0x110   : > { %s2813_s4 = sld [smem:[#allocation10 + $0x5d]]  ;;  %s3777_s18 = sld [smem:[#allocation74_spill]]  ;;  %v671_v34 = vstv %s3767_s3 }
 0x111   : > { %3769 = sst [smem:[#allocation86_spill]] %s2803_s26  ;;  %s3779_s2 = sld [smem:[#allocation76_spill]]  ;;  %v689_v36 = vstv %s3768_s17 }
 0x112   : > { %3771 = sst [smem:[#allocation87_spill]] %s2805_s15  ;;  %s2819_s15 = sld [smem:[#allocation10 + $0x52]]  ;;  %v693_v37 = vstv %s3770_s23 }
 0x113   : > { %s2821_s25 = sld [smem:[#allocation10 + $0x56]]  ;;  %s2827_s27 = sld [smem:[#allocation10 + $0x5a]] }
 0x114   : > { %v711_v38 = vstv %s3772_s12  ;;  %s2829_s24 = sld [smem:[#allocation10 + $0x5e]]  ;;  %s2835_s3 = sld [smem:[#allocation11]] }
 0x115   : > { %3774 = sst [smem:[#allocation72_spill]] %s2811_s13  ;;  %s3784_s12 = sld [smem:[#allocation65_spill]] }
 0x116   : > { %3776 = sst [smem:[#allocation73_spill]] %s2813_s4  ;;  %s3785_s23 = sld [smem:[#allocation87_spill]] }
 0x117   : > { %s2888_s20 = sld [smem:[#allocation11 + $0x1]]  ;;  %s3806_s17 = smov 16  }
 0x118   : > { %s2166_s8 = smov 113   ;;  %s2931_s21 = sld [smem:[#allocation10 + $0x53]] }
 0x119   : > { %s2964_s19 = sld [smem:[#allocation10 + $0x57]]  ;;  %s3830_s26 = sld [smem:[#allocation84_spill]] }
 0x11a   : > { %s3832_s16 = sld [smem:[#allocation85_spill]]  ;;  %s3844_s13 = sld [smem:[#allocation73_spill]] }
 0x11b   : > { %s1532_s4 = sld [smem:[#allocation11 + $0x3]]  ;;  %s3093_s22 = sld [smem:[#allocation10 + $0x62]] }
 0x11c   : > { %s3095_s30 = sld [smem:[#allocation10 + $0x10]]  ;;  %s3097_s6 = sld [smem:[#allocation10 + $0x14]] }
 0x11d   : > { %s3099_s5 = sld [smem:[#allocation10 + $0x66]]  ;;  %s3101_s7 = sld [smem:[#allocation10 + $0x81]] }
 0x152   : > { %v454_v42 = vpop.permute.xlu0 %453  ;;  %v466_v43 = vpop.permute.xlu1 %465 }
 0x153   : > { %v455_v44 = vsel %vm452_vm2, %v454_v42, %v2597_v19  ;;  %v467_v45 = vsel %vm452_vm2, %v466_v43, %v2600_v20  ;;  %v754_v42 = vstv %s3773_s14  ;;  %v757_v43 = vstv %s3775_s9  ;;  %s3817_s14 = sld [smem:[#allocation78_spill]]  ;;  %s3818_s9 = sld [smem:[#allocation79_spill]] }
 0x154   : > { %456 = vrot.lane.b32.xlu0 %v455_v44, %s3586_s11  ;;  %v761_v44 = vstv %s3777_s18  ;;  %s3819_s18 = sld [smem:[#allocation77_spill]] }
 0x156   : > { %v460_v46 = vpop.permute.xlu0 %459  ;;  %v472_v47 = vpop.permute.xlu1 %471 }
 0x157   : > { %v461_v48 = vsel %vm452_vm2, %v460_v46, %v2608_v24  ;;  %v473_v49 = vsel %vm452_vm2, %v472_v47, %v2611_v25  ;;  %v776_v46 = vstv %s2752_s0  ;;  %v779_v47 = vstv %s2754_s28  ;;  %s2167_s0 = smov 127   ;;  %s3821_s28 = sld [smem:[#allocation80_spill]] }
 0x158   : > { %468 = vrot.lane.b32.xlu0 %v467_v45, %s3586_s11  ;;  %462 = vrot.lane.b32.xlu1 %v461_v48, %s3586_s11  ;;  %v783_v48 = vstv %s3779_s2  ;;  %s3823_s2 = sld [smem:[#allocation81_spill]] }
 0x15a   : > { %v730_v50 = vpop.permute.xlu0 %729  ;;  %v736_v51 = vpop.permute.xlu1 %735 }
 0x15b   : > { %v731_v52 = vsel %vm452_vm2, %v730_v50, %v2579_v0  ;;  %v737_v54 = vsel %vm452_vm2, %v736_v51, %v2585_v3 }
 0x15c   : > { %474 = vrot.lane.b32.xlu0 %v473_v49, %s3586_s11  ;;  %1058 = vrot.lane.b32.xlu1 %v2621_v32, %s3586_s11 }
 0x15e   : > { %v742_v53 = vpop.permute.xlu0 %741  ;;  %v748_v56 = vpop.permute.xlu1 %747 }
 0x15f   : > { %v743_v55 = vsel %vm452_vm2, %v742_v53, %v2582_v1  ;;  %v749_v58 = vsel %vm452_vm2, %v748_v56, %v2588_v4 }
 0x160   : > { %1064 = vrot.lane.b32.xlu1 %v2624_v35, %s3586_s11  ;;  %732 = vrot.lane.b32.xlu0 %v731_v52, %s3586_s11 }
 0x162   : > { %v1047_v57 = vpop.permute.xlu0 %1046  ;;  %v1053_v60 = vpop.permute.xlu1 %1052 }
 0x163   : > { %v1048_v59 = vsel %vm452_vm2, %v1047_v57, %v2637_v40  ;;  %v1054_v61 = vsel %vm452_vm2, %v1053_v60, %v2640_v41 }
 0x164   : > { %738 = vrot.lane.b32.xlu1 %v737_v54, %s3586_s11  ;;  %744 = vrot.lane.b32.xlu0 %v743_v55, %s3586_s11  ;;  %v401_v55 = vstv %s2835_s3  ;;  %s2911_s3 = sld [smem:[#allocation11 + $0x2]] }
 0x165   : > { %403 = vst.msk [vmem:[#allocation2] sm:$0xff] %vm402_vm3, %v401_v55 }
 0x168   : > { %750 = vrot.lane.b32.xlu1 %v749_v58, %s3586_s11  ;;  %1049 = vrot.lane.b32.xlu0 %v1048_v59, %s3586_s11 }
 0x16c   : > { %1055 = vrot.lane.b32.xlu1 %v1054_v61, %s3586_s11  ;;  %s2716_s11 = sld [smem:[#allocation10 + $0x28]] }
 0x172   : > { %3734 = sst [smem:[#allocation59_spill]] %s2716_s11  ;;  %v645_v22 = vstv %s2716_s11 }
 0x173   : > { %s3778_s11 = sld [smem:[#allocation75_spill]] }
 0x1c6   : > { %v457_v57 = vpop.permute.xlu0 %456 }
 0x1c7   : > { %v458_v49 = vsel %vm452_vm2, %v457_v57, %v2597_v19 }
 0x1c8   : > { %v479_v58 = vmul.f32 %v478_v62, %v458_v49  ;;  %v501_v54 = vmul.f32 %v500_v63, %v458_v49  ;;  %v523_v56 = vmul.f32 %v522_v2, %v458_v49  ;;  %v545_v51 = vmul.f32 %v544_v7, %v458_v49 }
 0x1c9   : > { %v639_v59 = vmul.f32 %v638_v8, %v458_v49  ;;  %v661_v60 = vmul.f32 %v660_v26, %v458_v49 }
 0x1ca   : > { %v463_v57 = vpop.permute.xlu1 %462  ;;  %v469_v52 = vpop.permute.xlu0 %468 }
 0x1cb   : > { %v464_v62 = vsel %vm452_vm2, %v463_v57, %v2608_v24  ;;  %v470_v61 = vsel %vm452_vm2, %v469_v52, %v2600_v20 }
 0x1cc   : > { %v482_v63 = vmul.f32 %v481_v5, %v464_v62  ;;  %v486_v2 = vmul.f32 %v485_v9, %v470_v61  ;;  %v504_v7 = vmul.f32 %v503_v6, %v464_v62  ;;  %v508_v53 = vmul.f32 %v507_v10, %v470_v61 }
 0x1cd   : > { %v526_v57 = vmul.f32 %v525_v11, %v464_v62  ;;  %v530_v8 = vmul.f32 %v529_v15, %v470_v61  ;;  %v548_v26 = vmul.f32 %v547_v12, %v464_v62  ;;  %v552_v52 = vmul.f32 %v551_v16, %v470_v61 }
 0x1ce   : > { %v1059_v55 = vpop.permute.xlu1 %1058  ;;  %v475_v5 = vpop.permute.xlu0 %474  ;;  %v483_v9 = vadd.f32 %v482_v63, %v479_v58  ;;  %v505_v45 = vadd.f32 %v504_v7, %v501_v54  ;;  %v642_v6 = vmul.f32 %v641_v21, %v464_v62  ;;  %v646_v10 = vmul.f32 %v645_v22, %v470_v61 }
 0x1cf   : > { %v476_v11 = vsel %vm452_vm2, %v475_v5, %v2611_v25  ;;  %v1060_v15 = vsel %vm452_vm2, %v1059_v55, %v2621_v32  ;;  %v527_v12 = vadd.f32 %v526_v57, %v523_v56  ;;  %v549_v16 = vadd.f32 %v548_v26, %v545_v51 }
 0x1d0   : > { %1061 = vrot.lane.b32.xlu0 %v1060_v15, %s3806_s17  ;;  %v487_v50 = vadd.f32 %v486_v2, %v483_v9  ;;  %v490_v54 = vmul.f32 %v489_v13, %v476_v11  ;;  %v509_v58 = vadd.f32 %v508_v53, %v505_v45  ;;  %v512_v21 = vmul.f32 %v511_v14, %v476_v11 }
 0x1d1   : > { %v531_v22 = vadd.f32 %v530_v8, %v527_v12  ;;  %v534_v63 = vmul.f32 %v533_v17, %v476_v11  ;;  %v553_v7 = vadd.f32 %v552_v52, %v549_v16  ;;  %v556_v56 = vmul.f32 %v555_v18, %v476_v11 }
 0x1d2   : > { %v1065_v51 = vpop.permute.xlu1 %1064  ;;  %v491_v57 = vadd.f32 %v490_v54, %v487_v50  ;;  %v643_v2 = vadd.f32 %v642_v6, %v639_v59  ;;  %v683_v13 = vmul.f32 %v682_v28, %v458_v49  ;;  %v705_v45 = vmul.f32 %v704_v31, %v458_v49  ;;  %v733_v53 = vpop.permute.xlu0 %732 }
 0x1d3   : > { %v1066_v14 = vsel %vm452_vm2, %v1065_v51, %v2624_v35  ;;  %v513_v8 = vadd.f32 %v512_v21, %v509_v58  ;;  %v650_v17 = vmul.f32 %v649_v23, %v476_v11  ;;  %v664_v18 = vmul.f32 %v663_v27, %v464_v62 }
 0x1d4   : > { %1067 = vrot.lane.b32.xlu1 %v1066_v14, %s3806_s17  ;;  %494 = vrot.lane.b32.xlu0 %v491_v57, %s2166_s8  ;;  %v535_v28 = vadd.f32 %v534_v63, %v531_v22  ;;  %v557_v31 = vadd.f32 %v556_v56, %v553_v7  ;;  %v668_v49 = vmul.f32 %v667_v29, %v470_v61  ;;  %v405_v50 = vstv %s2888_s20  ;;  %s2998_s17 = sld [smem:[#allocation10 + $0x5b]]  ;;  %s3105_s20 = sld [smem:[#allocation10 + $0x80]] }
 0x1d5   : > { %v647_v59 = vadd.f32 %v646_v10, %v643_v2  ;;  %v665_v26 = vadd.f32 %v664_v18, %v661_v60  ;;  %v686_v23 = vmul.f32 %v685_v30, %v464_v62  ;;  %v690_v27 = vmul.f32 %v689_v36, %v470_v61  ;;  %407 = vst.msk [vmem:[#allocation2 + $0x8] sm:$0xff] %vm402_vm3, %v405_v50 }
 0x1d6   : > { %v672_v52 = vmul.f32 %v671_v34, %v476_v11  ;;  %v694_v55 = vmul.f32 %v693_v37, %v476_v11  ;;  %v708_v5 = vmul.f32 %v707_v33, %v464_v62  ;;  %v712_v29 = vmul.f32 %v711_v38, %v470_v61  ;;  %v739_v9 = vpop.permute.xlu1 %738  ;;  %v745_v60 = vpop.permute.xlu0 %744 }
 0x1d7   : > { %v669_v6 = vadd.f32 %v668_v49, %v665_v26  ;;  %v687_v30 = vadd.f32 %v686_v23, %v683_v13  ;;  %v2949_v36 = vsel %vm452_vm2, %v733_v53, %v2579_v0  ;;  %v2953_v34 = vsel %vm452_vm2, %v739_v9, %v2585_v3 }
 0x1d8   : > { %516 = vrot.lane.b32.xlu1 %v513_v8, %s2166_s8  ;;  %538 = vrot.lane.b32.xlu0 %v535_v28, %s2166_s8  ;;  %v709_v33 = vadd.f32 %v708_v5, %v705_v45  ;;  %v2959_v37 = vsel %vm452_vm2, %v745_v60, %v2582_v1  ;;  %v755_v0 = vmul.f32 %v754_v42, %v2949_v36  ;;  %v409_v38 = vstv %s2911_s3  ;;  %s3834_s3 = sld [smem:[#allocation86_spill]] }
 0x1d9   : > { %v651_v3 = vadd.f32 %v650_v17, %v647_v59  ;;  %v691_v61 = vadd.f32 %v690_v27, %v687_v30  ;;  %v758_v62 = vmul.f32 %v757_v43, %v2953_v34  ;;  %v762_v10 = vmul.f32 %v761_v44, %v2959_v37  ;;  %411 = vst.msk [vmem:[#allocation2 + $0x10] sm:$0xff] %vm402_vm3, %v409_v38 }
 0x1da   : > { %v716_v1 = vmul.f32 %v715_v39, %v476_v11  ;;  %v751_v15 = vpop.permute.xlu1 %750  ;;  %v777_v42 = vmul.f32 %v776_v46, %v2949_v36  ;;  %v780_v12 = vmul.f32 %v779_v47, %v2953_v34  ;;  %v784_v43 = vmul.f32 %v783_v48, %v2959_v37 }
 0x1db   : > { %v713_v16 = vadd.f32 %v712_v29, %v709_v33  ;;  %v2987_v44 = vsel %vm452_vm2, %v751_v15, %v2588_v4  ;;  %v759_v54 = vadd.f32 %v758_v62, %v755_v0  ;;  %v3820_v39 = vstv %s2760_s10  ;;  %s3824_s10 = sld [smem:[#allocation83_spill]] }
 0x1dc   : > { %v799_v11 = vmul.f32 %v3820_v39, %v2949_v36  ;;  %560 = vrot.lane.b32.xlu1 %v557_v31, %s2166_s8  ;;  %654 = vrot.lane.b32.xlu0 %v651_v3, %s2167_s0  ;;  %v673_v46 = vadd.f32 %v672_v52, %v669_v6  ;;  %v3822_v47 = vstv %s3778_s11  ;;  %v781_v4 = vadd.f32 %v780_v12, %v777_v42  ;;  %s3828_s11 = sld [smem:[#allocation82_spill]] }
 0x1dd   : > { %v766_v48 = vmul.f32 %v3822_v47, %v2987_v44  ;;  %v980_v58 = vstv %s2931_s21  ;;  %v695_v21 = vadd.f32 %v694_v55, %v691_v61  ;;  %v763_v22 = vadd.f32 %v762_v10, %v759_v54  ;;  %s3103_s21 = sld [smem:[#allocation10 + $0x85]] }
 0x1de   : > { %v3825_v63 = vstv %s3817_s14  ;;  %v3826_v56 = vstv %s3818_s9  ;;  %v785_v57 = vadd.f32 %v784_v43, %v781_v4  ;;  %v3827_v2 = vstv %s3819_s18  ;;  %s3109_s14 = sld [smem:[#allocation10 + $0x18]]  ;;  %s3111_s9 = sld [smem:[#allocation10 + $0x11]] }
 0x1df   : > { %v802_v7 = vmul.f32 %v3825_v63, %v2953_v34  ;;  %v806_v51 = vmul.f32 %v3826_v56, %v2959_v37  ;;  %v788_v13 = vmul.f32 %v3827_v2, %v2987_v44  ;;  %v3829_v45 = vstv %s2771_s29  ;;  %s3836_s29 = sld [smem:[#allocation72_spill]]  ;;  %s3113_s18 = sld [smem:[#allocation10 + $0x15]] }
 0x1e0   : > { %v821_v53 = vmul.f32 %v3829_v45, %v2949_v36  ;;  %v3831_v14 = vstv %s2773_s1  ;;  %v717_v17 = vadd.f32 %v716_v1, %v713_v16  ;;  %v3833_v28 = vstv %s3821_s28  ;;  %676 = vrot.lane.b32.xlu1 %v673_v46, %s2167_s0  ;;  %698 = vrot.lane.b32.xlu0 %v695_v21, %s2167_s0  ;;  %s3027_s1 = sld [smem:[#allocation10 + $0x5f]]  ;;  %s3115_s28 = sld [smem:[#allocation10 + $0x6d]] }
 0x1e1   : > { %v824_v8 = vmul.f32 %v3831_v14, %v2953_v34  ;;  %v803_v18 = vadd.f32 %v802_v7, %v799_v11  ;;  %v810_v31 = vmul.f32 %v3833_v28, %v2987_v44  ;;  %v3835_v49 = vstv %s3823_s2  ;;  %s3117_s2 = sld [smem:[#allocation10 + $0x12]] }
 0x1e2   : > { %v828_v50 = vmul.f32 %v3835_v49, %v2959_v37  ;;  %v767_v59 = vadd.f32 %v766_v48, %v763_v22  ;;  %v3837_v23 = vstv %s3824_s10  ;;  %v983_v52 = vstv %s2964_s19  ;;  %s3107_s19 = sld [smem:[#allocation10 + $0x69]]  ;;  %v1050_v49 = vpop.permute.xlu0 %1049  ;;  %s3122_s10 = sld [smem:[#allocation10 + $0x1c]] }
 0x1e3   : > { %v825_v26 = vadd.f32 %v824_v8, %v821_v53  ;;  %v915_v27 = vmul.f32 %v3837_v23, %v2949_v36  ;;  %v807_v55 = vadd.f32 %v806_v51, %v803_v18  ;;  %v3838_v5 = vstv %s3828_s11  ;;  %s3126_s11 = sld [smem:[#allocation10 + $0x68]] }
 0x1e4   : > { %v832_v29 = vmul.f32 %v3838_v5, %v2987_v44  ;;  %v3839_v9 = vstv %s3830_s26  ;;  %v3840_v6 = vstv %s3832_s16  ;;  %v789_v33 = vadd.f32 %v788_v13, %v785_v57  ;;  %720 = vrot.lane.b32.xlu1 %v717_v17, %s2167_s0  ;;  %770 = vrot.lane.b32.xlu0 %v767_v59, %s2166_s8  ;;  %s3130_s26 = sld [smem:[#allocation10 + $0x19]]  ;;  %s3133_s16 = sld [smem:[#allocation10 + $0x6c]] }
 0x1e5   : > { %v918_v60 = vmul.f32 %v3839_v9, %v2953_v34  ;;  %v922_v30 = vmul.f32 %v3840_v6, %v2959_v37  ;;  %v3841_v0 = vstv %s3784_s12  ;;  %v3842_v3 = vstv %s3834_s3  ;;  %s3087_s12 = sld [smem:[#allocation10 + $0x64]]  ;;  %s3147_s3 = sld [smem:[#allocation10 + $0x1a]] }
 0x1e6   : > { %v926_v38 = vmul.f32 %v3841_v0, %v2987_v44  ;;  %v937_v61 = vmul.f32 %v3842_v3, %v2949_v36  ;;  %v3843_v62 = vstv %s3785_s23  ;;  %v829_v1 = vadd.f32 %v828_v50, %v825_v26  ;;  %s3089_s23 = sld [smem:[#allocation10 + $0x63]] }
 0x1e7   : > { %v940_v10 = vmul.f32 %v3843_v62, %v2953_v34  ;;  %v919_v15 = vadd.f32 %v918_v60, %v915_v27  ;;  %v3845_v42 = vstv %s3836_s29  ;;  %v3846_v43 = vstv %s2819_s15  ;;  %s3091_s15 = sld [smem:[#allocation10 + $0x67]]  ;;  %s3153_s29 = sld [smem:[#allocation10 + $0x6b]] }
 0x1e8   : > { %v944_v12 = vmul.f32 %v3845_v42, %v2959_v37  ;;  %v959_v16 = vmul.f32 %v3846_v43, %v2949_v36  ;;  %v811_v54 = vadd.f32 %v810_v31, %v807_v55  ;;  %v3847_v11 = vstv %s2821_s25  ;;  %792 = vrot.lane.b32.xlu1 %v789_v33, %s2166_s8  ;;  %s3081_s25 = sld [smem:[#allocation10 + $0x61]] }
 0x1e9   : > { %v941_v39 = vadd.f32 %v940_v10, %v937_v61  ;;  %v962_v46 = vmul.f32 %v3847_v11, %v2953_v34  ;;  %v987_v47 = vstv %s2998_s17  ;;  %v923_v48 = vadd.f32 %v922_v30, %v919_v15  ;;  %s3119_s17 = sld [smem:[#allocation10 + $0x16]] }
 0x1ea   : > { %v3848_v4 = vstv %s2827_s27  ;;  %v981_v22 = vmul.f32 %v980_v58, %v2949_v36  ;;  %v3849_v63 = vstv %s3844_s13  ;;  %v984_v51 = vmul.f32 %v983_v52, %v2953_v34  ;;  %814 = vrot.lane.b32.xlu0 %v811_v54, %s2166_s8  ;;  %s3083_s27 = sld [smem:[#allocation10 + $0x65]] }
 0x1eb   : > { %v966_v21 = vmul.f32 %v3848_v4, %v2959_v37  ;;  %v948_v7 = vmul.f32 %v3849_v63, %v2987_v44  ;;  %v963_v56 = vadd.f32 %v962_v46, %v959_v16  ;;  %v833_v57 = vadd.f32 %v832_v29, %v829_v1  ;;  %s3161_s13 = sld [smem:[#allocation10 + $0x1d]] }
 0x1ec   : > { %v945_v2 = vadd.f32 %v944_v12, %v941_v39  ;;  %v3850_v13 = vstv %s2829_s24  ;;  %v988_v53 = vmul.f32 %v987_v47, %v2959_v37  ;;  %v927_v14 = vadd.f32 %v926_v38, %v923_v48  ;;  %s3085_s24 = sld [smem:[#allocation10 + $0x60]] }
 0x1ed   : > { %v970_v45 = vmul.f32 %v3850_v13, %v2987_v44  ;;  %v967_v8 = vadd.f32 %v966_v21, %v963_v56  ;;  %v985_v36 = vadd.f32 %v984_v51, %v981_v22  ;;  %v991_v58 = vstv %s3027_s1  ;;  %836 = vrot.lane.b32.xlu1 %v833_v57, %s2166_s8  ;;  %s3157_s1 = sld [smem:[#allocation10 + $0x6f]] }
 0x1ee   : > { %v413_v17 = vstv %s1532_s4  ;;  %v992_v18 = vmul.f32 %v991_v58, %v2987_v44  ;;  %930 = vrot.lane.b32.xlu0 %v927_v14, %s2167_s0  ;;  %v949_v34 = vadd.f32 %v948_v7, %v945_v2  ;;  %v1056_v44 = vpop.permute.xlu1 %1055  ;;  %v1093_v50 = vstv %s3081_s25  ;;  %s3168_s4 = sld [smem:[#allocation10 + $0x1e]]  ;;  %s3170_s25 = sld [smem:[#allocation10 + $0x84]] }
 0x1ef   : > { %415 = vst.msk [vmem:[#allocation2 + $0x18] sm:$0xff] %vm402_vm3, %v413_v17  ;;  %v971_v28 = vadd.f32 %v970_v45, %v967_v8  ;;  %v989_v37 = vadd.f32 %v988_v53, %v985_v36  ;;  %v566_v23 = vstv %s3095_s30  ;;  %v569_v27 = vstv %s3097_s6  ;;  %s3205_s30 = sld [smem:[#allocation10 + $0x88]]  ;;  %s3207_s6 = sld [smem:[#allocation10 + $0x13]] }
 0x1f0   : > { %v1096_v59 = vstv %s3083_s27  ;;  %v1074_v52 = vstv %s3087_s12  ;;  %v1137_v55 = vstv %s3089_s23  ;;  %v1140_v5 = vstv %s3091_s15  ;;  %s3174_s27 = sld [smem:[#allocation10 + $0x6a]]  ;;  %s3187_s12 = sld [smem:[#allocation10 + $0x89]] }
 0x1f1   : > { %952 = vrot.lane.b32.xlu1 %v949_v34, %s2167_s0  ;;  %v993_v31 = vadd.f32 %v992_v18, %v989_v37  ;;  %v1115_v29 = vstv %s3093_s22  ;;  %v3140_v9 = vsel %vm452_vm2, %v1056_v44, %v2640_v41  ;;  %v3144_v60 = vsel %vm452_vm2, %v1050_v49, %v2637_v40  ;;  %s3189_s23 = sld [smem:[#allocation10 + $0x8d]]  ;;  %s3196_s15 = sld [smem:[#allocation10 + $0x17]] }
 0x1f2   : > { %974 = vrot.lane.b32.xlu0 %v971_v28, %s2167_s0  ;;  %v1071_v26 = vstv %s3085_s24  ;;  %v1118_v6 = vstv %s3099_s5  ;;  %v1253_v30 = vstv %s3101_s7  ;;  %v570_v33 = vmul.f32 %v569_v27, %v2608_v24  ;;  %s3176_s24 = sld [smem:[#allocation10 + $0x6e]]  ;;  %s3198_s22 = sld [smem:[#allocation10 + $0x1b]] }
 0x1f3   : > { %v573_v0 = vstv %s3109_s14  ;;  %v567_v38 = vmul.f32 %v566_v23, %v2597_v19  ;;  %v1256_v3 = vstv %s3103_s21  ;;  %v1100_v61 = vstv %s3107_s19  ;;  %s3211_s5 = sld [smem:[#allocation10 + $0x8c]]  ;;  %s3218_s21 = sld [smem:[#allocation10 + $0x1f]] }
 0x1f4   : > { %v584_v62 = vstv %s3111_s9  ;;  %v587_v10 = vstv %s3113_s18  ;;  %v1231_v1 = vstv %s3105_s20  ;;  %v1094_v15 = vmul.f32 %v1093_v50, %v3144_v60  ;;  %s3223_s20 = sld [smem:[#allocation10 + $0x83]]  ;;  %s3225_s14 = sld [smem:[#allocation10 + $0x87]] }
 0x1f5   : > { %996 = vrot.lane.b32.xlu1 %v993_v31, %s2167_s0  ;;  %v1097_v42 = vmul.f32 %v1096_v59, %v3140_v9  ;;  %v1104_v12 = vstv %s3115_s28  ;;  %v1072_v43 = vmul.f32 %v1071_v26, %v3144_v60  ;;  %v1075_v16 = vmul.f32 %v1074_v52, %v3140_v9  ;;  %s3242_s7 = sld [smem:[#allocation10 + $0x82]]  ;;  %s3244_s9 = sld [smem:[#allocation10 + $0x86]] }
 0x1f6   : > { %v574_v54 = vmul.f32 %v573_v0, %v2600_v20  ;;  %v602_v39 = vstv %s3117_s2  ;;  %v605_v11 = vstv %s3119_s17  ;;  %v577_v46 = vstv %s3122_s10  ;;  %s3264_s18 = sld [smem:[#allocation10 + $0x8b]]  ;;  %s3273_s2 = sld [smem:[#allocation10 + $0x8a]] }
 0x1f7   : > { %v571_v47 = vadd.f32 %v570_v33, %v567_v38  ;;  %v588_v48 = vmul.f32 %v587_v10, %v2608_v24  ;;  %v585_v4 = vmul.f32 %v584_v62, %v2597_v19  ;;  %v1078_v21 = vstv %s3126_s11  ;;  %s3286_s19 = sld [smem:[#allocation10 + $0x8f]]  ;;  %s3288_s17 = sld [smem:[#allocation10 + $0x8e]] }
 0x1f8   : > { %v1138_v22 = vmul.f32 %v1137_v55, %v3144_v60  ;;  %v1141_v63 = vmul.f32 %v1140_v5, %v3140_v9  ;;  %v591_v7 = vstv %s3130_s26  ;;  %v3191_v56 = vadd.f32 %v1097_v42, %v1094_v15  ;;  %s3340_s28 = sld [smem:[#allocation10 + $0x44]]  ;;  %s3346_s10 = sld [smem:[#allocation10 + $0x48]] }
 0x1f9   : > { %v1082_v51 = vstv %s3133_s16  ;;  %v606_v57 = vmul.f32 %v605_v11, %v2608_v24  ;;  %v603_v2 = vmul.f32 %v602_v39, %v2597_v19  ;;  %v3200_v13 = vadd.f32 %v1075_v16, %v1072_v43  ;;  %s3350_s11 = sld [smem:[#allocation10 + $0x41]]  ;;  %s3352_s26 = sld [smem:[#allocation10 + $0x45]] }
 0x1fa   : > { %v578_v45 = vmul.f32 %v577_v46, %v2611_v25  ;;  %v1116_v53 = vmul.f32 %v1115_v29, %v3144_v60  ;;  %v609_v14 = vstv %s3147_s3  ;;  %v575_v8 = vadd.f32 %v574_v54, %v571_v47  ;;  %v492_v54 = vld [vmem:[#allocation2] sm:$0xff]  ;;  %s3356_s16 = sld [smem:[#allocation10 + $0x42]]  ;;  %s3358_s3 = sld [smem:[#allocation10 + $0x46]] }
 0x1fb   : > { %v1119_v36 = vmul.f32 %v1118_v6, %v3140_v9  ;;  %v592_v58 = vmul.f32 %v591_v7, %v2600_v20  ;;  %v589_v17 = vadd.f32 %v588_v48, %v585_v4  ;;  %v3213_v18 = vadd.f32 %v1141_v63, %v1138_v22 }
 0x1fc   : > { %v1144_v34 = vstv %s3153_s29  ;;  %v1148_v28 = vstv %s3157_s1  ;;  %v595_v37 = vstv %s3161_s13  ;;  %v610_v31 = vmul.f32 %v609_v14, %v2600_v20  ;;  %s3851_s29 = sld [smem:[#allocation40_spill]]  ;;  %s3365_s13 = sld [smem:[#allocation10 + $0x49]] }
 0x1fd   : > { %v613_v44 = vstv %s3168_s4  ;;  %v607_v49 = vadd.f32 %v606_v57, %v603_v2  ;;  %v1234_v50 = vstv %s3170_s25  ;;  %v1122_v59 = vstv %s3174_s27  ;;  %s3360_s1 = sld [smem:[#allocation10 + $0x4c]]  ;;  %s3369_s4 = sld [smem:[#allocation10 + $0x43]] }
 0x1fe   : > { %v1126_v26 = vstv %s3176_s24  ;;  %v1254_v23 = vmul.f32 %v1253_v30, %v3144_v60  ;;  %v1257_v27 = vmul.f32 %v1256_v3, %v3140_v9  ;;  %v3233_v52 = vadd.f32 %v578_v45, %v575_v8  ;;  %v514_v8 = vld [vmem:[#allocation2 + $0x8] sm:$0xff]  ;;  %s3371_s25 = sld [smem:[#allocation10 + $0x47]]  ;;  %s3377_s27 = sld [smem:[#allocation10 + $0x4d]] }
 0x1ff   : > { %v3235_v55 = vadd.f32 %v1119_v36, %v1116_v53  ;;  %v596_v5 = vmul.f32 %v595_v37, %v2611_v25  ;;  %v593_v29 = vadd.f32 %v592_v58, %v589_v17  ;;  %v614_v6 = vmul.f32 %v613_v44, %v2611_v25  ;;  %s3383_s24 = sld [smem:[#allocation10 + $0x4e]] }
 0x200   : > { %v1260_v33 = vstv %s3187_s12  ;;  %v1232_v0 = vmul.f32 %v1231_v1, %v3144_v60  ;;  %v1235_v30 = vmul.f32 %v1234_v50, %v3140_v9  ;;  %v611_v3 = vadd.f32 %v610_v31, %v607_v49  ;;  %s3385_s12 = sld [smem:[#allocation10 + $0x4b]] }
 0x201   : > { %v1264_v62 = vstv %s3189_s23  ;;  %v623_v10 = vstv %s3196_s15  ;;  %v627_v15 = vstv %s3198_s22  ;;  %v3253_v43 = vadd.f32 %v1257_v27, %v1254_v23  ;;  %s3395_s23 = sld [smem:[#allocation10 + $0x4f]]  ;;  %s1663_s15 = sld [smem:[#allocation10 + $0x71]] }
 0x202   : > { %v1238_v1 = vstv %s3205_s30  ;;  %v620_v16 = vstv %s3207_s6  ;;  %v3261_v46 = vadd.f32 %v596_v5, %v593_v29  ;;  %v1242_v47 = vstv %s3211_s5  ;;  %v558_v29 = vld [vmem:[#allocation2 + $0x18] sm:$0xff]  ;;  %s1664_s22 = sld [smem:[#allocation10 + $0x75]]  ;;  %s1659_s30 = sld [smem:[#allocation10 + $0x70]] }
 0x203   : > { %v3266_v48 = vadd.f32 %v1235_v30, %v1232_v0  ;;  %v624_v4 = vmul.f32 %v623_v10, %v2608_v24  ;;  %v3270_v22 = vmul.f32 %v627_v15, %v2600_v20  ;;  %v631_v63 = vstv %s3218_s21  ;;  %s1660_s6 = sld [smem:[#allocation10 + $0x74]]  ;;  %s1665_s5 = sld [smem:[#allocation10 + $0x79]] }
 0x204   : > { %v621_v57 = vmul.f32 %v620_v16, %v2597_v19  ;;  %v1297_v2 = vstv %s3223_s20  ;;  %v1300_v45 = vstv %s3225_s14  ;;  %v536_v19 = vld [vmem:[#allocation2 + $0x10] sm:$0xff]  ;;  %v1275_v44 = vstv %s3242_s7  ;;  %s1661_s21 = sld [smem:[#allocation10 + $0x78]]  ;;  %s3415_s20 = sld [smem:[#allocation10 + $0x73]] }
 0x205   : > { %v1298_v31 = vmul.f32 %v1297_v2, %v3144_v60  ;;  %v1278_v49 = vstv %s3244_s9  ;;  %v1276_v30 = vmul.f32 %v1275_v44, %v3144_v60  ;;  %s1672_s14 = sld [smem:[#allocation10 + $0x77]]  ;;  %s1667_s7 = sld [smem:[#allocation10 + $0x72]] }
 0x206   : > { %s1668_s9 = sld [smem:[#allocation10 + $0x76]] }
 0x242   : > { %v1062_v38 = vpop.permute.xlu0 %1061 }
 0x243   : > { %v3251_v42 = vsel %vm452_vm2, %v1062_v38, %v2621_v32  ;;  %v1279_v38 = vmul.f32 %v1278_v49, %v3140_v9 }
 0x244   : > { %v1101_v39 = vmul.f32 %v1100_v61, %v3251_v42  ;;  %v1079_v11 = vmul.f32 %v1078_v21, %v3251_v42  ;;  %v3275_v21 = vadd.f32 %v614_v6, %v611_v3  ;;  %v1145_v53 = vmul.f32 %v1144_v34, %v3251_v42 }
 0x245   : > { %v1123_v14 = vmul.f32 %v1122_v59, %v3251_v42  ;;  %v632_v34 = vmul.f32 %v631_v63, %v2611_v25  ;;  %v1261_v5 = vmul.f32 %v1260_v33, %v3251_v42  ;;  %v1301_v25 = vmul.f32 %v1300_v45, %v3140_v9 }
 0x246   : > { %v1068_v7 = vpop.permute.xlu1 %1067  ;;  %v495_v61 = vpop.permute.xlu0 %494  ;;  %v1102_v36 = vadd.f32 %v1101_v39, %v3191_v56  ;;  %v1080_v17 = vadd.f32 %v1079_v11, %v3200_v13  ;;  %v1146_v6 = vadd.f32 %v1145_v53, %v3213_v18  ;;  %v625_v33 = vadd.f32 %v624_v4, %v621_v57 }
 0x247   : > { %v3282_v24 = vsel %vm452_vm2, %v1068_v7, %v2624_v35  ;;  %v497_v20 = vadd.f32 %v495_v61, %v492_v54  ;;  %v1124_v0 = vadd.f32 %v1123_v14, %v3235_v55  ;;  %v1282_v3 = vstv %s3273_s2  ;;  %s3419_s2 = sld [smem:[#allocation10 + $0x7c]] }
 0x248   : > { %v1105_v58 = vmul.f32 %v1104_v12, %v3282_v24  ;;  %v1083_v37 = vmul.f32 %v1082_v51, %v3282_v24  ;;  %v1149_v12 = vmul.f32 %v1148_v28, %v3282_v24  ;;  %v1127_v13 = vmul.f32 %v1126_v26, %v3282_v24 }
 0x249   : > { %498 = vst.msk [vmem:[#allocation2] sm:$0xff] %vm402_vm3, %v497_v20  ;;  %v1239_v28 = vmul.f32 %v1238_v1, %v3251_v42  ;;  %v1304_v26 = vstv %s3264_s18  ;;  %v1265_v55 = vmul.f32 %v1264_v62, %v3282_v24  ;;  %v1243_v1 = vmul.f32 %v1242_v47, %v3282_v24  ;;  %s3417_s18 = sld [smem:[#allocation10 + $0x7d]] }
 0x24a   : > { %v517_v50 = vpop.permute.xlu1 %516  ;;  %v539_v59 = vpop.permute.xlu0 %538  ;;  %v1106_v56 = vadd.f32 %v1105_v58, %v1102_v36  ;;  %v1084_v23 = vadd.f32 %v1083_v37, %v1080_v17  ;;  %v1150_v15 = vadd.f32 %v1149_v12, %v1146_v6  ;;  %v1128_v18 = vadd.f32 %v1127_v13, %v1124_v0 }
 0x24b   : > { %v519_v27 = vadd.f32 %v517_v50, %v514_v8  ;;  %v541_v51 = vadd.f32 %v539_v59, %v536_v19  ;;  %v1305_v54 = vmul.f32 %v1304_v26, %v3251_v42  ;;  %v1308_v39 = vstv %s3286_s19  ;;  %v1865_v50 = vld [vmem:[%s3851_s29] sm:$0xff]  ;;  %s3421_s19 = sld [smem:[#allocation10 + $0x7b]] }
 0x24c   : > { %1109 = vrot.lane.b32.xlu1 %v1106_v56, %s2166_s8  ;;  %1087 = vrot.lane.b32.xlu0 %v1084_v23, %s2166_s8  ;;  %v1286_v11 = vstv %s3288_s17  ;;  %v1262_v9 = vadd.f32 %v1261_v5, %v3253_v43  ;;  %v1240_v60 = vadd.f32 %v1239_v28, %v3266_v48  ;;  %v1283_v4 = vmul.f32 %v1282_v3, %v3251_v42  ;;  %v1866_v56 = vld [vmem:[%s3851_s29 + $0x8] sm:$0xff]  ;;  %s3423_s17 = sld [smem:[#allocation10 + $0x7a]] }
 0x24d   : > { %520 = vst.msk [vmem:[#allocation2 + $0x8] sm:$0xff] %vm402_vm3, %v519_v27  ;;  %542 = vst.msk [vmem:[#allocation2 + $0x10] sm:$0xff] %vm402_vm3, %v541_v51  ;;  %v629_v47 = vadd.f32 %v3270_v22, %v625_v33  ;;  %v1302_v7 = vadd.f32 %v1301_v25, %v1298_v31  ;;  %v1280_v61 = vadd.f32 %v1279_v38, %v1276_v30  ;;  %v849_v12 = vstv %s3346_s10  ;;  %v1867_v30 = vld [vmem:[%s3851_s29 + $0x10] sm:$0xff]  ;;  %s3852_s10 = sld [smem:[#allocation28_spill]] }
 0x24e   : > { %v561_v10 = vpop.permute.xlu1 %560  ;;  %v1266_v57 = vadd.f32 %v1265_v55, %v1262_v9  ;;  %v1244_v2 = vadd.f32 %v1243_v1, %v1240_v60  ;;  %v1309_v45 = vmul.f32 %v1308_v39, %v3282_v24  ;;  %v1287_v20 = vmul.f32 %v1286_v11, %v3282_v24  ;;  %v655_v24 = vpop.permute.xlu0 %654  ;;  %v1868_v60 = vld [vmem:[%s3851_s29 + $0x18] sm:$0xff] }
 0x24f   : > { %v563_v16 = vadd.f32 %v561_v10, %v558_v29  ;;  %v1284_v48 = vadd.f32 %v1283_v4, %v1280_v61  ;;  %v633_v14 = vadd.f32 %v632_v34, %v629_v47  ;;  %v845_v34 = vstv %s3340_s28  ;;  %s3432_s28 = sld [smem:[#allocation10 + $0x7e]] }
 0x250   : > { %v580_v63 = vld [vmem:[#allocation2] sm:$0xff]  ;;  %1153 = vrot.lane.b32.xlu1 %v1150_v15, %s2166_s8  ;;  %1131 = vrot.lane.b32.xlu0 %v1128_v18, %s2166_s8  ;;  %s3338_s8 = sld [smem:[#allocation10 + $0x40]]  ;;  %v846_v23 = vmul.f32 %v1866_v56, %v845_v34  ;;  %v860_v51 = vstv %s3350_s11  ;;  %v863_v5 = vstv %s3352_s26  ;;  %v850_v38 = vmul.f32 %v1867_v30, %v849_v12  ;;  %s3853_s11 = sld [smem:[#allocation27_spill]] }
 0x251   : > { %564 = vst.msk [vmem:[#allocation2 + $0x18] sm:$0xff] %vm402_vm3, %v563_v16  ;;  %v581_v62 = vadd.f32 %v580_v63, %v3233_v52  ;;  %v1306_v52 = vadd.f32 %v1305_v54, %v1302_v7  ;;  %v1288_v19 = vadd.f32 %v1287_v20, %v1284_v48  ;;  %v878_v6 = vstv %s3356_s16  ;;  %s3854_s26 = sld [smem:[#allocation39_spill]] }
 0x252   : > { %v677_v58 = vpop.permute.xlu1 %676  ;;  %v699_v31 = vpop.permute.xlu0 %698  ;;  %v881_v0 = vstv %s3358_s3  ;;  %v853_v28 = vstv %s3360_s1  ;;  %v861_v3 = vmul.f32 %v1865_v50, %v860_v51  ;;  %v864_v10 = vmul.f32 %v1866_v56, %v863_v5 }
 0x253   : > { %582 = vst.msk [vmem:[#allocation2] sm:$0xff] %vm402_vm3, %v581_v62  ;;  %v1310_v8 = vadd.f32 %v1309_v45, %v1306_v52  ;;  %v867_v18 = vstv %s3365_s13  ;;  %v879_v55 = vmul.f32 %v1865_v50, %v878_v6  ;;  %v882_v1 = vmul.f32 %v1866_v56, %v881_v0  ;;  %s1695_s16 = sshll.u32 %s3852_s10, 3 }
 0x254   : > { %v598_v42 = vld [vmem:[#allocation2 + $0x8] sm:$0xff]  ;;  %v616_v43 = vld [vmem:[#allocation2 + $0x10] sm:$0xff]  ;;  %1269 = vrot.lane.b32.xlu1 %v1266_v57, %s2167_s0  ;;  %1247 = vrot.lane.b32.xlu0 %v1244_v2, %s2167_s0  ;;  %v896_v11 = vstv %s3369_s4  ;;  %v899_v63 = vstv %s3371_s25  ;;  %v854_v4 = vmul.f32 %v1868_v60, %v853_v28  ;;  %v865_v7 = vadd.f32 %v864_v10, %v861_v3 }
 0x255   : > { %v599_v22 = vadd.f32 %v598_v42, %v3261_v46  ;;  %v617_v53 = vadd.f32 %v616_v43, %v3275_v21  ;;  %v868_v61 = vmul.f32 %v1867_v30, %v867_v18  ;;  %v871_v57 = vstv %s3377_s27 }
 0x256   : > { %v842_v37 = vstv %s3338_s8  ;;  %v721_v25 = vpop.permute.xlu1 %720  ;;  %v771_v29 = vpop.permute.xlu0 %770  ;;  %v883_v2 = vadd.f32 %v882_v1, %v879_v55  ;;  %v897_v20 = vmul.f32 %v1865_v50, %v896_v11  ;;  %v900_v42 = vmul.f32 %v1866_v56, %v899_v63  ;;  %s3429_s8 = sld [smem:[#allocation10 + $0x7f]]  ;;  %s1345_s3 = sadd.s32 %s3853_s11, %s1695_s16 }
 0x257   : > { %600 = vst.msk [vmem:[#allocation2 + $0x8] sm:$0xff] %vm402_vm3, %v599_v22  ;;  %618 = vst.msk [vmem:[#allocation2 + $0x10] sm:$0xff] %vm402_vm3, %v617_v53  ;;  %v843_v59 = vmul.f32 %v1865_v50, %v842_v37  ;;  %v889_v48 = vstv %s3383_s24  ;;  %v903_v22 = vstv %s3385_s12  ;;  %v907_v34 = vstv %s3395_s23  ;;  %s3855_s29 = sshll.u32 %s3854_s26, 5  ;;  %s1696_s4 = sshll.u32 %s1345_s3, 7 }
 0x258   : > { %v634_v36 = vld [vmem:[#allocation2 + $0x18] sm:$0xff]  ;;  %1313 = vrot.lane.b32.xlu1 %v1310_v8, %s2167_s0  ;;  %1291 = vrot.lane.b32.xlu0 %v1288_v19, %s2167_s0  ;;  %s3367_s0 = sld [smem:[#allocation10 + $0x4a]]  ;;  %v869_v19 = vadd.f32 %v868_v61, %v865_v7  ;;  %v1177_v1 = vstv %s1663_s15  ;;  %v1216_v7 = vstv %s1672_s14  ;;  %s387_s1 = scalar_lea.vmem [#allocation13], %s3855_s29 }
 0x259   : > { %v635_v46 = vadd.f32 %v634_v36, %v633_v14  ;;  %v847_v33 = vadd.f32 %v846_v23, %v843_v59  ;;  %v872_v36 = vmul.f32 %v1868_v60, %v871_v57  ;;  %v908_v23 = vmul.f32 %v1868_v60, %v907_v34  ;;  %s1348_s13 = sshll.u32 %s387_s1, 4  ;;  %s3857_s24 = sld [smem:[#allocation93_spill]]  ;;  %s3470_s13 = int_to_ptr.vmem [resolvable:$true] %s1348_s13 }
 0x25a   : > { %v652_v21 = vld [vmem:[#allocation2] sm:$0xff]  ;;  %v793_v54 = vpop.permute.xlu1 %792  ;;  %v1178_v11 = vmul.f32 %v1177_v1, %v2637_v40  ;;  %v1195_v61 = vstv %s1667_s7  ;;  %v1198_v57 = vstv %s1668_s9  ;;  %s1334_s15 = scalar_lea.sflag [#allocation5], %s3854_s26 }
 0x25b   : > { %v657_v17 = vadd.f32 %v655_v24, %v652_v21  ;;  %636 = vst.msk [vmem:[#allocation2 + $0x18] sm:$0xff] %vm402_vm3, %v635_v46  ;;  %v851_v47 = vadd.f32 %v850_v38, %v847_v33  ;;  %v890_v21 = vmul.f32 %v1868_v60, %v889_v48 }
 0x25c   : > { %v815_v62 = vpop.permute.xlu0 %814 }
 0x25d   : > { %658 = vst.msk [vmem:[#allocation2] sm:$0xff] %vm402_vm3, %v657_v17  ;;  %v855_v8 = vadd.f32 %v854_v4, %v851_v47  ;;  %v904_v17 = vmul.f32 %v1867_v30, %v903_v22  ;;  %v1213_v47 = vstv %s3415_s20  ;;  %v1217_v22 = vmul.f32 %v1216_v7, %v2640_v41 }
 0x25e   : > { %v674_v44 = vld [vmem:[#allocation2 + $0x8] sm:$0xff]  ;;  %v696_v49 = vld [vmem:[#allocation2 + $0x10] sm:$0xff]  ;;  %v885_v39 = vstv %s3367_s0  ;;  %v1214_v48 = vmul.f32 %v1213_v47, %v2637_v40 }
 0x25f   : > { %v679_v13 = vadd.f32 %v677_v58, %v674_v44  ;;  %v701_v27 = vadd.f32 %v699_v31, %v696_v49  ;;  %v886_v45 = vmul.f32 %v1867_v30, %v885_v39  ;;  %v837_v24 = vpop.permute.xlu1 %836  ;;  %v901_v58 = vadd.f32 %v900_v42, %v897_v20  ;;  %s3858_s12 = smov %s3857_s24  ;;  %s3475_s23 = scalar_lea.hbm %s3857_s24, %s1696_s4 }
 0x260   : > { %v873_v49 = vadd.f32 %v872_v36, %v869_v19  ;;  %v1162_v39 = vstv %s1660_s6 }
 0x261   : > { %680 = vst.msk [vmem:[#allocation2 + $0x8] sm:$0xff] %vm402_vm3, %v679_v13  ;;  %702 = vst.msk [vmem:[#allocation2 + $0x10] sm:$0xff] %vm402_vm3, %v701_v27  ;;  %v887_v46 = vadd.f32 %v886_v45, %v883_v2  ;;  %v905_v56 = vadd.f32 %v904_v17, %v901_v58  ;;  %v1163_v4 = vmul.f32 %v1162_v39, %v2640_v41  ;;  %v1188_v45 = vstv %s3417_s18 }
 0x262   : > { %v718_v26 = vld [vmem:[#allocation2 + $0x18] sm:$0xff] }
 0x263   : > { %v723_v15 = vadd.f32 %v721_v25, %v718_v26  ;;  %v891_v59 = vadd.f32 %v890_v21, %v887_v46  ;;  %v909_v5 = vadd.f32 %v908_v23, %v905_v56  ;;  %v931_v25 = vpop.permute.xlu0 %930  ;;  %v953_v28 = vpop.permute.xlu1 %952  ;;  %v1220_v46 = vstv %s3421_s19 }
 0x264   : > { %v768_v16 = vld [vmem:[#allocation2] sm:$0xff]  ;;  %v1202_v21 = vstv %s3423_s17 }
 0x265   : > { %724 = vst.msk [vmem:[#allocation2 + $0x18] sm:$0xff] %vm402_vm3, %v723_v15  ;;  %v773_v9 = vadd.f32 %v771_v29, %v768_v16  ;;  %v1180_v16 = vstv %s1664_s22  ;;  %s1989_s22 = scalar_lea.vmem %s3470_s13, 512 }
 0x266   : > { %v1181_v63 = vmul.f32 %v1180_v16, %v2640_v41  ;;  %p1990_p10 = scmp.ne.s32.totalorder %s3470_s13, %s1989_s22 }
 0x267   : > { %774 = vst.msk [vmem:[#allocation2] sm:$0xff] %vm402_vm3, %v773_v9  ;;  %v975_v33 = vpop.permute.xlu0 %974  ;;  %v997_v15 = vpop.permute.xlu1 %996  ;;  %v1184_v9 = vstv %s1665_s5 }
 0x268   : > { %v790_v43 = vld [vmem:[#allocation2 + $0x8] sm:$0xff]  ;;  %v812_v52 = vld [vmem:[#allocation2 + $0x10] sm:$0xff]  ;;  %v1185_v2 = vmul.f32 %v1184_v9, %v2621_v32  ;;  %v1182_v20 = vadd.f32 %v1181_v63, %v1178_v11  ;;  %p1991_p11 = pnand %p1990_p10, %p2436_p4 }
 0x269   : > { %v795_v53 = vadd.f32 %v793_v54, %v790_v43  ;;  %v817_v14 = vadd.f32 %v815_v62, %v812_v52  ;;  %v1159_v54 = vstv %s1659_s30  ;;  %v1166_v62 = vstv %s1661_s21  ;;  %s2168_s30 = smov [#allocation13]  }
 0x26a   : > { %v1160_v60 = vmul.f32 %v1159_v54, %v2637_v40  ;;  %v1167_v43 = vmul.f32 %v1166_v62, %v2621_v32  ;;  %v1170_v52 = vstv %s3419_s2  ;;  %v1186_v34 = vadd.f32 %v1185_v2, %v1182_v20  ;;  %p1992_p5 = pneg %p1991_p11  ;;  %s1993_s6 = sshll.u32 %s2168_s30, 4  ;;  %s1994_s6 = int_to_ptr.vmem [resolvable:$false] %s1993_s6 }
 0x26b   : > { %796 = vst.msk [vmem:[#allocation2 + $0x8] sm:$0xff] %vm402_vm3, %v795_v53  ;;  %818 = vst.msk [vmem:[#allocation2 + $0x10] sm:$0xff] %vm402_vm3, %v817_v14  ;;  %v1196_v53 = vmul.f32 %v1195_v61, %v2637_v40  ;;  %v1199_v14 = vmul.f32 %v1198_v57, %v2640_v41  ;;  %v1218_v40 = vadd.f32 %v1217_v22, %v1214_v48  ;;  %s1995_s5 = scalar_lea.vmem %s1994_s6, 1024  ;;  %p1996_p0 = scmp.lt.s32.totalorder %s3470_s13, %s1994_s6 }
 0x26c   : > { %v834_v37 = vld [vmem:[#allocation2 + $0x18] sm:$0xff]  ;;  %v1164_v42 = vadd.f32 %v1163_v4, %v1160_v60  ;;  %v1221_v41 = vmul.f32 %v1220_v46, %v2621_v32  ;;  %p1997_p13 = scmp.lt.s32.totalorder %s1995_s5, %s1989_s22 }
 0x26d   : > { %v839_v31 = vadd.f32 %v837_v24, %v834_v37  ;;  %v1189_v37 = vmul.f32 %v1188_v45, %v2624_v35 }
 0x26e   : > { %v856_v44 = vld [vmem:[#allocation2] sm:$0xff]  ;;  %p1998_p12 = por %p1997_p13, %p1996_p0 }
 0x26f   : > { %840 = vst.msk [vmem:[#allocation2 + $0x18] sm:$0xff] %vm402_vm3, %v839_v31  ;;  %v857_v50 = vadd.f32 %v856_v44, %v855_v8  ;;  %v1168_v31 = vadd.f32 %v1167_v43, %v1164_v42  ;;  %v1171_v44 = vmul.f32 %v1170_v52, %v2624_v35 }
 0x270   : > { %p1999_p9 = pnand %p1998_p12, %p1992_p5 }
 0x271   : > { %858 = vst.msk [vmem:[#allocation2] sm:$0xff] %vm402_vm3, %v857_v50  ;;  %v1200_v50 = vadd.f32 %v1199_v14, %v1196_v53 }
 0x272   : > { %v874_v12 = vld [vmem:[#allocation2 + $0x8] sm:$0xff]  ;;  %v892_v13 = vld [vmem:[#allocation2 + $0x10] sm:$0xff] }
 0x273   : > { %v875_v27 = vadd.f32 %v874_v12, %v873_v49  ;;  %v893_v51 = vadd.f32 %v892_v13, %v891_v59  ;;  %v1224_v49 = vstv %s3429_s8  ;;  %v1203_v59 = vmul.f32 %v1202_v21, %v2621_v32 }
 0x275   : > { %876 = vst.msk [vmem:[#allocation2 + $0x8] sm:$0xff] %vm402_vm3, %v875_v27  ;;  %894 = vst.msk [vmem:[#allocation2 + $0x10] sm:$0xff] %vm402_vm3, %v893_v51  ;;  %v1206_v27 = vstv %s3432_s28 }
 0x276   : > { %v910_v29 = vld [vmem:[#allocation2 + $0x18] sm:$0xff] }
 0x277   : > { %v911_v6 = vadd.f32 %v910_v29, %v909_v5  ;;  %v1225_v29 = vmul.f32 %v1224_v49, %v2624_v35 }
 0x278   : > { %v928_v0 = vld [vmem:[#allocation2] sm:$0xff] }
 0x279   : > { %v933_v26 = vadd.f32 %v931_v25, %v928_v0  ;;  %912 = vst.msk [vmem:[#allocation2 + $0x18] sm:$0xff] %vm402_vm3, %v911_v6  ;;  %v1190_v25 = vadd.f32 %v1189_v37, %v1186_v34  ;;  %v1172_v6 = vadd.f32 %v1171_v44, %v1168_v31  ;;  %v1222_v0 = vadd.f32 %v1221_v41, %v1218_v40 }
 0x27b   : > { %934 = vst.msk [vmem:[#allocation2] sm:$0xff] %vm402_vm3, %v933_v26  ;;  %v1207_v26 = vmul.f32 %v1206_v27, %v2624_v35 }
 0x27c   : > { %v950_v30 = vld [vmem:[#allocation2 + $0x8] sm:$0xff]  ;;  %v972_v38 = vld [vmem:[#allocation2 + $0x10] sm:$0xff] }
 0x27d   : > { %v955_v3 = vadd.f32 %v953_v28, %v950_v30  ;;  %v977_v10 = vadd.f32 %v975_v33, %v972_v38  ;;  %v1204_v28 = vadd.f32 %v1203_v59, %v1200_v50 }
 0x27f   : > { %956 = vst.msk [vmem:[#allocation2 + $0x8] sm:$0xff] %vm402_vm3, %v955_v3  ;;  %978 = vst.msk [vmem:[#allocation2 + $0x10] sm:$0xff] %vm402_vm3, %v977_v10  ;;  %v1226_v3 = vadd.f32 %v1225_v29, %v1222_v0  ;;  %v1208_v10 = vadd.f32 %v1207_v26, %v1204_v28 }
 0x280   : > { %v994_v18 = vld [vmem:[#allocation2 + $0x18] sm:$0xff] }
 0x281   : > { %v999_v55 = vadd.f32 %v997_v15, %v994_v18 }
 0x282   : > { %v1085_v36 = vld [vmem:[#allocation2] sm:$0xff] }
 0x283   : > { %1000 = vst.msk [vmem:[#allocation2 + $0x18] sm:$0xff] %vm402_vm3, %v999_v55 }
 0x286   : > { %v1107_v8 = vld [vmem:[#allocation2 + $0x8] sm:$0xff]  ;;  %v1129_v13 = vld [vmem:[#allocation2 + $0x10] sm:$0xff] }
 0x28a   : > { %v1151_v23 = vld [vmem:[#allocation2 + $0x18] sm:$0xff] }
 0x2be   : > { %v1110_v24 = vpop.permute.xlu1 %1109  ;;  %v1088_v19 = vpop.permute.xlu0 %1087 }
 0x2bf   : > { %v1112_v58 = vadd.f32 %v1110_v24, %v1107_v8  ;;  %v1090_v17 = vadd.f32 %v1088_v19, %v1085_v36 }
 0x2c1   : > { %1113 = vst.msk [vmem:[#allocation2 + $0x8] sm:$0xff] %vm402_vm3, %v1112_v58  ;;  %1091 = vst.msk [vmem:[#allocation2] sm:$0xff] %vm402_vm3, %v1090_v17 }
 0x2c2   : > { %v1154_v56 = vpop.permute.xlu1 %1153  ;;  %v1132_v12 = vpop.permute.xlu0 %1131 }
 0x2c3   : > { %v1156_v51 = vadd.f32 %v1154_v56, %v1151_v23  ;;  %v1134_v5 = vadd.f32 %v1132_v12, %v1129_v13 }
 0x2c5   : > { %1157 = vst.msk [vmem:[#allocation2 + $0x18] sm:$0xff] %vm402_vm3, %v1156_v51  ;;  %1135 = vst.msk [vmem:[#allocation2 + $0x10] sm:$0xff] %vm402_vm3, %v1134_v5 }
 0x2c6   : > { %v1270_v35 = vpop.permute.xlu1 %1269  ;;  %v1248_v16 = vpop.permute.xlu0 %1247 }
 0x2c8   : > { %v1191_v32 = vld [vmem:[#allocation2 + $0x8] sm:$0xff]  ;;  %v1173_v33 = vld [vmem:[#allocation2] sm:$0xff] }
 0x2c9   : > { %v1192_v30 = vadd.f32 %v1191_v32, %v1190_v25  ;;  %v1174_v38 = vadd.f32 %v1173_v33, %v1172_v6 }
 0x2ca   : > { %v1314_v9 = vpop.permute.xlu1 %1313  ;;  %v1292_v4 = vpop.permute.xlu0 %1291 }
 0x2cb   : > { %1193 = vst.msk [vmem:[#allocation2 + $0x8] sm:$0xff] %vm402_vm3, %v1192_v30  ;;  %1175 = vst.msk [vmem:[#allocation2] sm:$0xff] %vm402_vm3, %v1174_v38 }
 0x2cc   : > { %v1227_v15 = vld [vmem:[#allocation2 + $0x18] sm:$0xff]  ;;  %v1209_v18 = vld [vmem:[#allocation2 + $0x10] sm:$0xff] }
 0x2cd   : > { %v1228_v55 = vadd.f32 %v1227_v15, %v1226_v3  ;;  %v1210_v1 = vadd.f32 %v1209_v18, %v1208_v10 }
 0x2cf   : > { %1229 = vst.msk [vmem:[#allocation2 + $0x18] sm:$0xff] %vm402_vm3, %v1228_v55  ;;  %1211 = vst.msk [vmem:[#allocation2 + $0x10] sm:$0xff] %vm402_vm3, %v1210_v1 }
 0x2d2   : > { %v1267_v54 = vld [vmem:[#allocation2 + $0x8] sm:$0xff]  ;;  %v1245_v39 = vld [vmem:[#allocation2] sm:$0xff] }
 0x2d3   : > { %v1272_v11 = vadd.f32 %v1270_v35, %v1267_v54  ;;  %v1250_v63 = vadd.f32 %v1248_v16, %v1245_v39 }
 0x2d5   : > { %1273 = vst.msk [vmem:[#allocation2 + $0x8] sm:$0xff] %vm402_vm3, %v1272_v11  ;;  %1251 = vst.msk [vmem:[#allocation2] sm:$0xff] %vm402_vm3, %v1250_v63 }
 0x2d6   : > { %v1311_v60 = vld [vmem:[#allocation2 + $0x18] sm:$0xff]  ;;  %v1289_v62 = vld [vmem:[#allocation2 + $0x10] sm:$0xff] }
 0x2d7   : > { %v1316_v47 = vadd.f32 %v1314_v9, %v1311_v60  ;;  %v1294_v7 = vadd.f32 %v1292_v4, %v1289_v62 }
 0x2d9   : > { %1317 = vst.msk [vmem:[#allocation2 + $0x18] sm:$0xff] %vm402_vm3, %v1316_v47  ;;  %1295 = vst.msk [vmem:[#allocation2 + $0x10] sm:$0xff] %vm402_vm3, %v1294_v7 }
 0x2dc   : > { %v1318_v61 = vld [vmem:[#allocation2] sm:$0xff]  ;;  %v1321_v57 = vld [vmem:[#allocation2 + $0x8] sm:$0xff] }
 0x2dd   : > { %v1319_v2 = vmax.f32 %v1318_v61, 0.0  ;;  %v1322_v45 = vmax.f32 %v1321_v57, 0.0 }
 0x2df   : > { %1320 = vst.msk [vmem:[%s387_s1] sm:$0xff] %vm402_vm3, %v1319_v2  ;;  %1691 = vst.msk [vmem:[%s387_s1 + $0x8] sm:$0xff] %vm402_vm3, %v1322_v45 }
 0x2e0   : > { %v1325_v20 = vld [vmem:[#allocation2 + $0x10] sm:$0xff]  ;;  %v1329_v42 = vld [vmem:[#allocation2 + $0x18] sm:$0xff] }
 0x2e1   : > { %v1326_v43 = vmax.f32 %v1325_v20, 0.0  ;;  %v1330_v52 = vmax.f32 %v1329_v42, 0.0 }
 0x2e3   : > { %1692 = vst.msk [vmem:[%s387_s1 + $0x10] sm:$0xff] %vm402_vm3, %v1326_v43  ;;  %1693 = vst.msk [vmem:[%s387_s1 + $0x18] sm:$0xff] %vm402_vm3, %v1330_v52 }
 0x2e4   : > { %2002 = shalt.err (!%p1999_p9)
}
 0x2e5   : > { %s2003_s21 = scalar_lea.hbm %s3475_s23, 512  ;;  %s2007_s7 = scalar_lea.hbm %s3858_s12, 2048 }
 0x2e6   : > { %p2004_p7 = scmp.ne.s32.totalorder %s3475_s23, %s2003_s21  ;;  %p2008_p3 = scmp.lt.u32.totalorder %s3475_s23, %s3858_s12 }
 0x2e7   : > { %p2009_p8 = scmp.lt.u32.totalorder %s2007_s7, %s2003_s21  ;;  %p2011_p10 = scmp.lt.u32.totalorder %s2003_s21, %s3475_s23 }
 0x2e8   : > { %p2005_p6 = pnand %p2004_p7, %p2436_p4 }
 0x2e9   : > { %p2010_p1 = por %p2009_p8, %p2008_p3 }
 0x2ea   : > { %p2006_p2 = pneg %p2005_p6 }
 0x2eb   : > { %p2012_p11 = por %p2011_p10, %p2010_p1 }
 0x2ed   : > { %p2013_p5 = pnand %p2012_p11, %p2006_p2 }
 0x2ef   : > { %2016 = shalt.err (!%p2013_p5)
}
 0x2f0   : > { %s2169_s2 = smov 128   ;;  %s2170_s19 = smov 256  }
 0x2f1   : > { %s2171_s17 = smov 8  }
 0x2f2   : > { %1713 = dma.vmem_to_hbm [thread:$0]  (%p2436_p4), %s3470_s13, 512, %s3475_s23, %s1334_s15, %s2169_s2, %s2170_s19, %s2171_s17  }
 0x2f3 PF: > { %s3859_s8 = sld [smem:[#allocation31_spill]]  ;;  %s3860_s28 = sld [smem:[#allocation24_spill]] }
 0x2f4   : > { %s3861_s10 = sld [smem:[#allocation35_spill]] }
 0x2f9   : > { %p1741_p0 = scmp.ge.s32.totalorder %s3859_s8, 2  ;;  %s1363_s11 = sand.u32 1, %s3860_s28  }
 0x2fa   : > { %p3862_p13 = scmp.ne.s32.totalorder %s3861_s10, 0  ;;  %s1364_s16 = scalar_lea.sflag [#allocation5], %s1363_s11 }
 0x2fc   : > { %p1733_p12 = pnand %p1741_p0, %p3862_p13 }
 0x2fe   : > { %2094 = dma.done.wait (!%p1733_p12), %s1364_s16, 512  }
 0x2ff   : > { %2096 = vsyncadd (!%p1733_p12), %s1364_s16, 4294966784  ;;  %s26_s6 = sadd.s32 1, %s3859_s8   ;;  %s3864_s18 = sld [smem:[#allocation20_spill]] }
 0x300   : > { %p3508_p9 = scmp.ge.s32.totalorder %s26_s6, 6   ;;  %s3865_s19 = sld [smem:[#allocation21_spill]] }
 0x301   : > { %s3866_s20 = sld [smem:[#allocation38_spill]]  ;;  %s3867_s21 = sld [smem:[#allocation22_spill]] }
 0x302   : > { %s3868_s22 = sld [smem:[#allocation23_spill]]  ;;  %s3869_s23 = sld [smem:[#allocation34_spill]] }
 0x303   : > { %s3870_s24 = sld [smem:[#allocation25_spill]]  ;;  %s3871_s25 = sld [smem:[#allocation26_spill]] }
 0x304   : > { %s3872_s26 = sld [smem:[#allocation36_spill]]  ;;  %s3873_s27 = sld [smem:[#allocation29_spill]] }
 0x305   : > { %s3874_s28 = sld [smem:[#allocation30_spill]]  ;;  %s3875_s29 = sld [smem:[#allocation32_spill]] }
 0x306   : > { %s3876_s30 = sld [smem:[#allocation33_spill]]  ;;  %25 = sbr.rel (!%p3508_p9) target bundleno = 21 (0x15), region = 133 }
 0x30d   :  { %1369 = vsyncpa [#allocation4], 1 }
 0x30e   :  { %1371 = vsyncpa [#allocation4 + $0x1], 1 }
 0x30f   :  { %1372 = vsyncpa [#allocation8], 1 }
 0x310   :  { %1374 = vsyncpa [#allocation8 + $0x1], 1 }
 0x311   :  { %1375 = vsyncpa [#allocation5], 1 }
 0x312   :  { %1377 = vsyncpa [#allocation5 + $0x1], 1 }
 0x313   :  { %1378 = vsyncpa [#allocation6], 1 }
 0x314   :  { %1380 = vsyncpa [#allocation6 + $0x1], 1 }
 0x315   :  { %1381 = vsyncpa [#allocation12], 1 }

</bundles_post_ra>
